<compile_context>
chip_gen: v7x
topology: tpu7x:2x2x1
jax: 0.10.0
libtpu: 0.0.40
codegen_flags: <defaults>
</compile_context>

<pallas_src>
import functools

import jax
import jax.numpy as jnp
import numpy as np
from jax.experimental import pallas as pl
from jax.experimental.pallas import tpu as pltpu

_NEG_BIG = -1e30  # finite "-inf": keeps the online softmax NaN-free for all-masked rows


def _round_up(x, m):
    return (x + m - 1) // m * m


def _pad2(a, rows, cols):
    return jnp.pad(a, ((0, rows - a.shape[0]), (0, cols - a.shape[1])))


def _choose_tile(pref, n_pad):
    """Largest multiple of 128 that is <= pref and divides n_pad."""
    t = min(pref, n_pad)
    while n_pad % t:
        t -= 128
    return t


# -----------------------------------------------------------------------------
# Kernel 1: per-node projection  h = x @ W,  a_src = <h, att_src>, a_dst = <h, att_dst>
# (O(N) work hoisted out of the O(N^2) attention loop)
# -----------------------------------------------------------------------------
def _gat_project_kernel(x_ref, w_ref, asrc_w_ref, adst_w_ref,
                        h_ref, asrc_ref, adst_ref, *, mxu_dtype):
    x = x_ref[...].astype(mxu_dtype)
    w = w_ref[...].astype(mxu_dtype)
    h = jnp.dot(x, w, preferred_element_type=jnp.float32)          # (TI, Hp) f32 acc
    # Attention scalars as VPU multiply + XLU lane reduce (no (H,1) MXU matvec).
    asrc_ref[...] = jnp.sum(h * asrc_w_ref[...], axis=1, keepdims=True)
    adst_ref[...] = jnp.sum(h * adst_w_ref[...], axis=1, keepdims=True)
    h_ref[...] = h.astype(h_ref.dtype)


# -----------------------------------------------------------------------------
# Kernel 2: tiled attention + aggregation with online (flash-style) softmax
# -----------------------------------------------------------------------------
def _gat_attention_kernel(counts_ref,                       # scalar-prefetch (SMEM)
                          adst_ref, asrc_ref, adj_ref, h_ref, bias_ref,
                          out_ref,
                          m_sc, l_sc, acc_sc, *,
                          negative_slope, apply_relu, apply_log_softmax,
                          valid_out_dim, mxu_dtype, approx_recip):
    i = pl.program_id(0)
    j = pl.program_id(1)
    nj = pl.num_programs(1)

    @pl.when(j == 0)
    def _init():
        m_sc[...] = jnp.full_like(m_sc, _NEG_BIG)
        l_sc[...] = jnp.zeros_like(l_sc)
        acc_sc[...] = jnp.zeros_like(acc_sc)

    # Block-sparsity skip: only do O(TI*TJ) work if this tile contains any edge.
    @pl.when(counts_ref[i * nj + j] > 0)
    def _compute():
        # e[ti, tj] = LeakyReLU(a_dst[ti] + a_src[tj]), masked by adjacency.
        e = adst_ref[...] + asrc_ref[...]                      # (TI,1)+(1,TJ) -> (TI,TJ)
        e = jnp.where(e > 0, e, negative_slope * e)
        mask = adj_ref[...] != 0                               # int8 adjacency
        e = jnp.where(mask, e, _NEG_BIG)

        m_prev = m_sc[...]
        m_new = jnp.maximum(m_prev, jnp.max(e, axis=1, keepdims=True))
        alpha = jnp.exp(m_prev - m_new)
        p = jnp.exp(e - m_new)
        p = jnp.where(mask, p, 0.0)          # masked entries contribute exactly 0

        l_sc[...] = alpha * l_sc[...] + jnp.sum(p, axis=1, keepdims=True)
        acc_sc[...] = alpha * acc_sc[...] + jnp.dot(
            p.astype(mxu_dtype), h_ref[...].astype(mxu_dtype),
            preferred_element_type=jnp.float32)
        m_sc[...] = m_new

    @pl.when(j == nj - 1)
    def _finalize():
        l = l_sc[...]
        l_safe = jnp.where(l > 0.0, l, 1.0)   # guard rows with no edges at all
        if approx_recip:
            inv = pl.reciprocal(l_safe, approx=True)
        else:
            inv = 1.0 / l_safe
        out = acc_sc[...] * inv + bias_ref[...]
        if apply_relu:
            out = jnp.maximum(out, 0.0)
        if apply_log_softmax:
            # log_softmax over the VALID columns only (last dim is 128-padded).
            col = jax.lax.broadcasted_iota(jnp.int32, out.shape, 1)
            valid = col < valid_out_dim
            z = jnp.where(valid, out, _NEG_BIG)
            mm = jnp.max(z, axis=1, keepdims=True)
            lse = mm + jnp.log(jnp.sum(jnp.where(valid, jnp.exp(z - mm), 0.0),
                                       axis=1, keepdims=True))
            out = out - lse                   # padded columns are sliced off outside
        out_ref[...] = out.astype(out_ref.dtype)


# -----------------------------------------------------------------------------
# Layer wrapper (operates entirely in padded space)
# -----------------------------------------------------------------------------
def _gat_layer_padded(x_pad, w_pad, asrc_row, adst_row, bias_pad, adj_pad, counts, *,
                      tile_i, tile_j, apply_relu, apply_log_softmax, valid_out_dim,
                      fast_math, negative_slope=0.2):
    n_pad, f_pad = x_pad.shape
    h_dim = w_pad.shape[1]
    ni = n_pad // tile_i
    nj = n_pad // tile_j

    mxu_dtype = jnp.bfloat16 if fast_math else jnp.float32
    h_store_dtype = jnp.bfloat16 if fast_math else jnp.float32

    # ---- projection kernel (row tiled, both TCs via "parallel") ----
    h, a_src_col, a_dst = pl.pallas_call(
        functools.partial(_gat_project_kernel, mxu_dtype=mxu_dtype),
        out_shape=(jax.ShapeDtypeStruct((n_pad, h_dim), h_store_dtype),
                   jax.ShapeDtypeStruct((n_pad, 1), jnp.float32),
                   jax.ShapeDtypeStruct((n_pad, 1), jnp.float32)),
        grid_spec=pltpu.PrefetchScalarGridSpec(
            num_scalar_prefetch=0,
            grid=(ni,),
            in_specs=[pl.BlockSpec((tile_i, f_pad), lambda i: (i, 0)),
                      pl.BlockSpec((f_pad, h_dim), lambda i: (0, 0)),
                      pl.BlockSpec((1, h_dim), lambda i: (0, 0)),
                      pl.BlockSpec((1, h_dim), lambda i: (0, 0))],
            out_specs=[pl.BlockSpec((tile_i, h_dim), lambda i: (i, 0)),
                       pl.BlockSpec((tile_i, 1), lambda i: (i, 0)),
                       pl.BlockSpec((tile_i, 1), lambda i: (i, 0))]),
        compiler_params=pltpu.CompilerParams(dimension_semantics=("parallel",)),
    )(x_pad, w_pad, asrc_row, adst_row)

    a_src_row = a_src_col.reshape(1, n_pad)   # O(N) layout glue, fused by outer jit

    # ---- tiled attention kernel with online softmax ----
    kernel = functools.partial(
        _gat_attention_kernel,
        negative_slope=negative_slope,
        apply_relu=apply_relu,
        apply_log_softmax=apply_log_softmax,
        valid_out_dim=valid_out_dim,
        mxu_dtype=mxu_dtype,
        approx_recip=fast_math,
    )
    out = pl.pallas_call(
        kernel,
        out_shape=jax.ShapeDtypeStruct((n_pad, h_dim), jnp.float32),
        grid_spec=pltpu.PrefetchScalarGridSpec(
            num_scalar_prefetch=1,                 # per-tile nonzero-count table
            grid=(ni, nj),                         # reduction axis j last
            in_specs=[
                pl.BlockSpec((tile_i, 1), lambda i, j, c: (i, 0)),        # a_dst
                pl.BlockSpec((1, tile_j), lambda i, j, c: (0, j)),        # a_src
                pl.BlockSpec((tile_i, tile_j), lambda i, j, c: (i, j)),   # adj (int8)
                pl.BlockSpec((tile_j, h_dim), lambda i, j, c: (j, 0)),    # h (sources)
                pl.BlockSpec((1, h_dim), lambda i, j, c: (0, 0)),         # bias
            ],
            out_specs=pl.BlockSpec((tile_i, h_dim), lambda i, j, c: (i, 0)),
            scratch_shapes=[pltpu.VMEM((tile_i, 1), jnp.float32),         # m
                            pltpu.VMEM((tile_i, 1), jnp.float32),         # l
                            pltpu.VMEM((tile_i, h_dim), jnp.float32)]),   # acc
        compiler_params=pltpu.CompilerParams(
            dimension_semantics=("parallel", "arbitrary")),
    )(counts, a_dst, a_src_row, adj_pad, h, bias_pad)

    return out


def _block_nonzero_counts(adj_pad, tile_i, tile_j):
    ni = adj_pad.shape[0] // tile_i
    nj = adj_pad.shape[1] // tile_j
    c = adj_pad.astype(jnp.int32).reshape(ni, tile_i, nj, tile_j).sum(axis=(1, 3))
    return c.reshape(ni * nj).astype(jnp.int32)


@functools.partial(jax.jit,
                   static_argnames=("fast_math", "tile_i_pref", "tile_j_pref"))
def gat_forward(x, adj, params, *, fast_math=True, tile_i_pref=256, tile_j_pref=512):
    """GAT.forward: gat1 -> relu -> dropout(eval: identity) -> gat2 -> log_softmax."""
    n, f_in = x.shape
    hidden = params["w1"].shape[1]
    out_dim = params["w2"].shape[1]

    # Node-axis padding and tile choice (tile sizes fit the 64 MiB-VMEM generation).
    n_pad = _round_up(n, 128)
    ti = _choose_tile(tile_i_pref, n_pad)
    tj = _choose_tile(tile_j_pref, n_pad)

    # Lane-dense (multiple-of-128) feature padding.
    f_pad = _round_up(f_in, 128)
    h_pad = _round_up(hidden, 128)
    o_pad = _round_up(out_dim, 128)

    x_pad = _pad2(x.astype(jnp.float32), n_pad, f_pad)
    adj_pad = _pad2(adj.astype(jnp.int8), n_pad, n_pad)
    counts = _block_nonzero_counts(adj_pad, ti, tj)   # shared by both layers

    w1 = _pad2(params["w1"], f_pad, h_pad)
    asrc1 = _pad2(params["att_src1"].T, 1, h_pad)
    adst1 = _pad2(params["att_dst1"].T, 1, h_pad)
    b1 = _pad2(params["b1"], 1, h_pad)

    w2 = _pad2(params["w2"], h_pad, o_pad)
    asrc2 = _pad2(params["att_src2"].T, 1, o_pad)
    adst2 = _pad2(params["att_dst2"].T, 1, o_pad)
    b2 = _pad2(params["b2"], 1, o_pad)

    h1 = _gat_layer_padded(x_pad, w1, asrc1, adst1, b1, adj_pad, counts,
                           tile_i=ti, tile_j=tj, apply_relu=True,
                           apply_log_softmax=False, valid_out_dim=hidden,
                           fast_math=fast_math)
    # nn.Dropout(0.1) is identity at inference time.
    # TODO(synk): training-mode dropout (pltpu.prng_random_bits mask) not implemented.
    out = _gat_layer_padded(h1, w2, asrc2, adst2, b2, adj_pad, counts,
                            tile_i=ti, tile_j=tj, apply_relu=False,
                            apply_log_softmax=True, valid_out_dim=out_dim,
                            fast_math=fast_math)
    return out[:n, :out_dim]


# -----------------------------------------------------------------------------
# Pure-JAX reference and test harness
# -----------------------------------------------------------------------------
def _reference_layer(x, w, att_src, att_dst, bias, adj, *, negative_slope=0.2,
                     apply_relu=False, apply_log_softmax=False):
    h = x @ w
    a_src = h @ att_src
    a_dst = h @ att_dst
    e = a_dst + a_src.T
    e = jnp.where(e > 0, e, negative_slope * e)
    masked = jnp.where(adj != 0, e, -1e30)
    attn = jax.nn.softmax(masked, axis=1)
    out = attn @ h + bias
    if apply_relu:
        out = jnp.maximum(out, 0.0)
    if apply_log_softmax:
        out = jax.nn.log_softmax(out, axis=1)
    return out


def _reference_forward(x, adj, params):
    h = _reference_layer(x, params["w1"], params["att_src1"], params["att_dst1"],
                         params["b1"], adj, apply_relu=True)
    return _reference_layer(h, params["w2"], params["att_src2"], params["att_dst2"],
                            params["b2"], adj, apply_log_softmax=True)


def init_params(key, input_dim, hidden_dim, output_dim):
    ks = jax.random.split(key, 8)

    def glorot(k, shape):
        fan_in, fan_out = shape[0], shape[-1]
        lim = float(np.sqrt(6.0 / (fan_in + fan_out)))
        return jax.random.uniform(k, shape, jnp.float32, -lim, lim)

    return {
        "w1": glorot(ks[0], (input_dim, hidden_dim)),
        "att_src1": glorot(ks[1], (hidden_dim, 1)),
        "att_dst1": glorot(ks[2], (hidden_dim, 1)),
        "b1": jnp.zeros((1, hidden_dim), jnp.float32),
        "w2": glorot(ks[3], (hidden_dim, output_dim)),
        "att_src2": glorot(ks[4], (output_dim, 1)),
        "att_dst2": glorot(ks[5], (output_dim, 1)),
        "b2": jnp.zeros((1, output_dim), jnp.float32),
        # NOTE: self.fc and self.output_layer exist in __init__ but are unused in
        # forward(), so they are omitted here.
    }


def edge_index_to_dense_adj(edge_index, num_nodes):
    """adj[i, j] = 1 iff edge j -> i exists; self-loops added (PyG default). int8."""
    src = edge_index[0]
    dst = edge_index[1]
    adj = jnp.zeros((num_nodes, num_nodes), jnp.int8)
    adj = adj.at[dst, src].set(1)
    adj = jnp.maximum(adj, jnp.eye(num_nodes, dtype=jnp.int8))
    return adj


if __name__ == "__main__":
    key = jax.random.PRNGKey(0)
    k_x, k_p, k_e = jax.random.split(key, 3)

    # Small shapes consistent with the module (tabular features per node,
    # hidden_dim / output_dim scaled down, num_heads = 1).
    num_nodes = 16
    input_dim = 10
    hidden_dim = 32
    output_dim = 4

    x = jax.random.normal(k_x, (num_nodes, input_dim), jnp.float32)

    num_edges = 40
    src = jax.random.randint(k_e, (num_edges,), 0, num_nodes)
    dst = jax.random.randint(jax.random.fold_in(k_e, 1), (num_edges,), 0, num_nodes)
    edge_index = jnp.stack([src, dst], axis=0)

    adj = edge_index_to_dense_adj(edge_index, num_nodes)
    params = init_params(k_p, input_dim, hidden_dim, output_dim)

    # Precise mode: f32 MXU inputs + exact reciprocal -> tight check vs f32 reference.
    out_precise = jax.block_until_ready(gat_forward(x, adj, params, fast_math=False))
    # Fast mode (performance config): bf16 MXU inputs with f32 accumulation + approx
    # EUP reciprocal in the softmax finalize -> loose check vs f32 reference.
    out_fast = jax.block_until_ready(gat_forward(x, adj, params, fast_math=True))

    ref = _reference_forward(x, adj, params)

    np.testing.assert_allclose(np.asarray(out_precise), np.asarray(ref),
                               rtol=1e-4, atol=1e-4)
    np.testing.assert_allclose(np.asarray(out_fast), np.asarray(ref),
                               rtol=0.1, atol=0.1)
    assert out_precise.shape == (num_nodes, output_dim)
    assert out_fast.shape == (num_nodes, output_dim)
    # Rows of log_softmax should exp-sum to 1 (computed in f32 inside the kernel).
    np.testing.assert_allclose(np.exp(np.asarray(out_precise)).sum(axis=1),
                               np.ones(num_nodes), rtol=1e-4, atol=1e-4)
    np.testing.assert_allclose(np.exp(np.asarray(out_fast)).sum(axis=1),
                               np.ones(num_nodes), rtol=1e-4, atol=1e-4)

    print("KERNEL_OK")
</pallas_src>

<mosaic_0001>
module attributes {stable_mosaic.version = 11 : i64} {
  func.func @_gat_project_kernel(%arg0: i32, %arg1: memref<128x128xf32, #tpu.memory_space<vmem>>, %arg2: memref<128x128xf32, #tpu.memory_space<vmem>>, %arg3: memref<1x128xf32, #tpu.memory_space<vmem>>, %arg4: memref<1x128xf32, #tpu.memory_space<vmem>>, %arg5: memref<128x128xf32, #tpu.memory_space<vmem>>, %arg6: memref<128x1xf32, #tpu.memory_space<vmem>>, %arg7: memref<128x1xf32, #tpu.memory_space<vmem>>) attributes {dimension_semantics = [#tpu.dimension_semantics<parallel>], iteration_bounds = array<i64: 1>, scalar_prefetch = 0 : i64, scratch_operands = 0 : i64, tpu.core_type = #tpu.core_type<tc>, window_params = [{transform_indices = @transform_0, window_bounds = array<i64: 128, 128>}, {pipeline_mode = #tpu.pipeline_mode<synchronous>, transform_indices = @transform_1, window_bounds = array<i64: 128, 128>}, {pipeline_mode = #tpu.pipeline_mode<synchronous>, transform_indices = @transform_2, window_bounds = array<i64: 1, 128>}, {pipeline_mode = #tpu.pipeline_mode<synchronous>, transform_indices = @transform_3, window_bounds = array<i64: 1, 128>}, {transform_indices = @transform_4, window_bounds = array<i64: 128, 128>}, {transform_indices = @transform_5, window_bounds = array<i64: 128, 1>}, {transform_indices = @transform_6, window_bounds = array<i64: 128, 1>}]} {
    %c0 = arith.constant 0 : index
    %c0_0 = arith.constant 0 : index
    %0 = vector.load %arg1[%c0, %c0_0] : memref<128x128xf32, #tpu.memory_space<vmem>>, vector<128x128xf32>
    %c0_1 = arith.constant 0 : index
    %c0_2 = arith.constant 0 : index
    %1 = vector.load %arg2[%c0_1, %c0_2] : memref<128x128xf32, #tpu.memory_space<vmem>>, vector<128x128xf32>
    %cst = arith.constant dense<0.000000e+00> : vector<128x128xf32>
    %2 = tpu.matmul %0, %1, %cst {dimension_numbers = #tpu.dot_dimension_numbers<[1], [0], [0], [1], [0, 0, 1, 1], [], []>} : vector<128x128xf32>, vector<128x128xf32>, vector<128x128xf32> -> vector<128x128xf32>
    %c0_3 = arith.constant 0 : index
    %c0_4 = arith.constant 0 : index
    %3 = vector.load %arg3[%c0_3, %c0_4] : memref<1x128xf32, #tpu.memory_space<vmem>>, vector<1x128xf32>
    %4 = vector.broadcast %3 : vector<1x128xf32> to vector<128x128xf32>
    %5 = arith.mulf %2, %4 : vector<128x128xf32>
    %cst_5 = arith.constant dense<0.000000e+00> : vector<128xf32>
    %6 = vector.multi_reduction <add>, %5, %cst_5 [1] : vector<128x128xf32> to vector<128xf32>
    %7 = vector.shape_cast %6 : vector<128xf32> to vector<128x1xf32>
    %c0_6 = arith.constant 0 : index
    %c0_7 = arith.constant 0 : index
    %8 = vector.load %arg6[%c0_6, %c0_7] : memref<128x1xf32, #tpu.memory_space<vmem>>, vector<128x1xf32>
    tpu.vector_store %arg6[%c0_6, %c0_7], %7 {strides = array<i32>} : memref<128x1xf32, #tpu.memory_space<vmem>>, vector<128x1xf32>,
    %c0_8 = arith.constant 0 : index
    %c0_9 = arith.constant 0 : index
    %9 = vector.load %arg4[%c0_8, %c0_9] : memref<1x128xf32, #tpu.memory_space<vmem>>, vector<1x128xf32>
    %10 = vector.broadcast %9 : vector<1x128xf32> to vector<128x128xf32>
    %11 = arith.mulf %2, %10 : vector<128x128xf32>
    %cst_10 = arith.constant dense<0.000000e+00> : vector<128xf32>
    %12 = vector.multi_reduction <add>, %11, %cst_10 [1] : vector<128x128xf32> to vector<128xf32>
    %13 = vector.shape_cast %12 : vector<128xf32> to vector<128x1xf32>
    %c0_11 = arith.constant 0 : index
    %c0_12 = arith.constant 0 : index
    %14 = vector.load %arg7[%c0_11, %c0_12] : memref<128x1xf32, #tpu.memory_space<vmem>>, vector<128x1xf32>
    tpu.vector_store %arg7[%c0_11, %c0_12], %13 {strides = array<i32>} : memref<128x1xf32, #tpu.memory_space<vmem>>, vector<128x1xf32>,
    %c0_13 = arith.constant 0 : index
    %c0_14 = arith.constant 0 : index
    %15 = vector.load %arg5[%c0_13, %c0_14] : memref<128x128xf32, #tpu.memory_space<vmem>>, vector<128x128xf32>
    tpu.vector_store %arg5[%c0_13, %c0_14], %2 {strides = array<i32>} : memref<128x128xf32, #tpu.memory_space<vmem>>, vector<128x128xf32>,
    return
  }
  func.func @transform_0(%arg0: i32) -> (i32, i32) {
    %c0_i32 = arith.constant 0 : i32
    %c0_i32_0 = arith.constant 0 : i32
    return %arg0, %c0_i32 : i32, i32
  }
  func.func @transform_1(%arg0: i32) -> (i32, i32) {
    %c0_i32 = arith.constant 0 : i32
    %c0_i32_0 = arith.constant 0 : i32
    %c0_i32_1 = arith.constant 0 : i32
    return %c0_i32, %c0_i32_0 : i32, i32
  }
  func.func @transform_2(%arg0: i32) -> (i32, i32) {
    %c0_i32 = arith.constant 0 : i32
    %c0_i32_0 = arith.constant 0 : i32
    %c0_i32_1 = arith.constant 0 : i32
    return %c0_i32, %c0_i32_0 : i32, i32
  }
  func.func @transform_3(%arg0: i32) -> (i32, i32) {
    %c0_i32 = arith.constant 0 : i32
    %c0_i32_0 = arith.constant 0 : i32
    %c0_i32_1 = arith.constant 0 : i32
    return %c0_i32, %c0_i32_0 : i32, i32
  }
  func.func @transform_4(%arg0: i32) -> (i32, i32) {
    %c0_i32 = arith.constant 0 : i32
    %c0_i32_0 = arith.constant 0 : i32
    return %arg0, %c0_i32 : i32, i32
  }
  func.func @transform_5(%arg0: i32) -> (i32, i32) {
    %c0_i32 = arith.constant 0 : i32
    %c0_i32_0 = arith.constant 0 : i32
    return %arg0, %c0_i32 : i32, i32
  }
  func.func @transform_6(%arg0: i32) -> (i32, i32) {
    %c0_i32 = arith.constant 0 : i32
    %c0_i32_0 = arith.constant 0 : i32
    return %arg0, %c0_i32 : i32, i32
  }
}

module attributes {stable_mosaic.version = 11 : i64} {
  func.func @_gat_attention_kernel(%arg0: i32, %arg1: i32, %arg2: memref<1xi32, #tpu.memory_space<smem>>, %arg3: memref<128x1xf32, #tpu.memory_space<vmem>>, %arg4: memref<1x128xf32, #tpu.memory_space<vmem>>, %arg5: memref<128x128xi8, #tpu.memory_space<vmem>>, %arg6: memref<128x128xf32, #tpu.memory_space<vmem>>, %arg7: memref<1x128xf32, #tpu.memory_space<vmem>>, %arg8: memref<128x128xf32, #tpu.memory_space<vmem>>, %arg9: memref<128x1xf32, #tpu.memory_space<vmem>>, %arg10: memref<128x1xf32, #tpu.memory_space<vmem>>, %arg11: memref<128x128xf32, #tpu.memory_space<vmem>>) attributes {dimension_semantics = [#tpu.dimension_semantics<parallel>, #tpu.dimension_semantics<arbitrary>], iteration_bounds = array<i64: 1, 1>, scalar_prefetch = 1 : i64, scratch_operands = 3 : i64, tpu.core_type = #tpu.core_type<tc>, window_params = [{transform_indices = @transform_0, window_bounds = array<i64: 128, 1>}, {transform_indices = @transform_1, window_bounds = array<i64: 1, 128>}, {transform_indices = @transform_2, window_bounds = array<i64: 128, 128>}, {transform_indices = @transform_3, window_bounds = array<i64: 128, 128>}, {pipeline_mode = #tpu.pipeline_mode<synchronous>, transform_indices = @transform_4, window_bounds = array<i64: 1, 128>}, {transform_indices = @transform_5, window_bounds = array<i64: 128, 128>}]} {
    %c0_i32 = arith.constant 0 : i32
    %0 = arith.cmpi eq, %arg1, %c0_i32 : i32
    %1 = arith.extui %0 : i1 to i32
    %c0_i32_0 = arith.constant 0 : i32
    %2 = arith.cmpi ne, %1, %c0_i32_0 : i32
    scf.if %2 {
      %cst = arith.constant -1.000000e+30 : f32
      %13 = vector.broadcast %cst : f32 to vector<128x1xf32>
      %c0 = arith.constant 0 : index
      %c0_5 = arith.constant 0 : index
      %14 = vector.load %arg9[%c0, %c0_5] : memref<128x1xf32, #tpu.memory_space<vmem>>, vector<128x1xf32>
      tpu.vector_store %arg9[%c0, %c0_5], %13 {strides = array<i32>} : memref<128x1xf32, #tpu.memory_space<vmem>>, vector<128x1xf32>,
      %cst_6 = arith.constant 0.000000e+00 : f32
      %15 = vector.broadcast %cst_6 : f32 to vector<128x1xf32>
      %c0_7 = arith.constant 0 : index
      %c0_8 = arith.constant 0 : index
      %16 = vector.load %arg10[%c0_7, %c0_8] : memref<128x1xf32, #tpu.memory_space<vmem>>, vector<128x1xf32>
      tpu.vector_store %arg10[%c0_7, %c0_8], %15 {strides = array<i32>} : memref<128x1xf32, #tpu.memory_space<vmem>>, vector<128x1xf32>,
      %cst_9 = arith.constant 0.000000e+00 : f32
      %17 = vector.broadcast %cst_9 : f32 to vector<128x128xf32>
      %c0_10 = arith.constant 0 : index
      %c0_11 = arith.constant 0 : index
      %18 = vector.load %arg11[%c0_10, %c0_11] : memref<128x128xf32, #tpu.memory_space<vmem>>, vector<128x128xf32>
      tpu.vector_store %arg11[%c0_10, %c0_11], %17 {strides = array<i32>} : memref<128x128xf32, #tpu.memory_space<vmem>>, vector<128x128xf32>,
    } else {
    }
    %c1_i32 = arith.constant 1 : i32
    %3 = arith.muli %arg0, %c1_i32 : i32
    %4 = arith.addi %3, %arg1 : i32
    %5 = arith.index_cast %4 : i32 to index
    %6 = memref.load %arg2[%5] : memref<1xi32, #tpu.memory_space<smem>>
    %c0_i32_1 = arith.constant 0 : i32
    %7 = arith.cmpi sgt, %6, %c0_i32_1 : i32
    %8 = arith.extui %7 : i1 to i32
    %c0_i32_2 = arith.constant 0 : i32
    %9 = arith.cmpi ne, %8, %c0_i32_2 : i32
    scf.if %9 {
      %c0 = arith.constant 0 : index
      %c0_5 = arith.constant 0 : index
      %13 = vector.load %arg3[%c0, %c0_5] : memref<128x1xf32, #tpu.memory_space<vmem>>, vector<128x1xf32>
      %c0_6 = arith.constant 0 : index
      %c0_7 = arith.constant 0 : index
      %14 = vector.load %arg4[%c0_6, %c0_7] : memref<1x128xf32, #tpu.memory_space<vmem>>, vector<1x128xf32>
      %15 = vector.broadcast %13 : vector<128x1xf32> to vector<128x128xf32>
      %16 = vector.broadcast %14 : vector<1x128xf32> to vector<128x128xf32>
      %17 = arith.addf %15, %16 : vector<128x128xf32>
      %cst = arith.constant 0.000000e+00 : f32
      %18 = vector.broadcast %cst : f32 to vector<128x128xf32>
      %19 = arith.cmpf ogt, %17, %18 : vector<128x128xf32>
      %cst_8 = arith.constant 2.000000e-01 : f32
      %20 = vector.broadcast %cst_8 : f32 to vector<128x128xf32>
      %21 = arith.mulf %20, %17 : vector<128x128xf32>
      %22 = arith.select %19, %17, %21 : vector<128x128xi1>, vector<128x128xf32>
      %c0_9 = arith.constant 0 : index
      %c0_10 = arith.constant 0 : index
      %23 = vector.load %arg5[%c0_9, %c0_10] : memref<128x128xi8, #tpu.memory_space<vmem>>, vector<128x128xi8>
      %c0_i8 = arith.constant 0 : i8
      %24 = vector.broadcast %c0_i8 : i8 to vector<128x128xi8>
      %25 = arith.cmpi ne, %23, %24 : vector<128x128xi8>
      %cst_11 = arith.constant -1.000000e+30 : f32
      %26 = vector.broadcast %cst_11 : f32 to vector<128x128xf32>
      %27 = arith.select %25, %22, %26 : vector<128x128xi1>, vector<128x128xf32>
      %c0_12 = arith.constant 0 : index
      %c0_13 = arith.constant 0 : index
      %28 = vector.load %arg9[%c0_12, %c0_13] : memref<128x1xf32, #tpu.memory_space<vmem>>, vector<128x1xf32>
      %cst_14 = arith.constant dense<0xFF800000> : vector<128xf32>
      %29 = vector.multi_reduction <maximumf>, %27, %cst_14 [1] : vector<128x128xf32> to vector<128xf32>
      %30 = vector.shape_cast %29 : vector<128xf32> to vector<128x1xf32>
      %31 = arith.maximumf %28, %30 : vector<128x1xf32>
      %32 = arith.subf %28, %31 : vector<128x1xf32>
      %33 = math.exp %32 : vector<128x1xf32>
      %34 = vector.broadcast %31 : vector<128x1xf32> to vector<128x128xf32>
      %35 = arith.subf %27, %34 : vector<128x128xf32>
      %36 = math.exp %35 : vector<128x128xf32>
      %cst_15 = arith.constant 0.000000e+00 : f32
      %37 = vector.broadcast %cst_15 : f32 to vector<128x128xf32>
      %38 = arith.select %25, %36, %37 : vector<128x128xi1>, vector<128x128xf32>
      %c0_16 = arith.constant 0 : index
      %c0_17 = arith.constant 0 : index
      %39 = vector.load %arg10[%c0_16, %c0_17] : memref<128x1xf32, #tpu.memory_space<vmem>>, vector<128x1xf32>
      %40 = arith.mulf %33, %39 : vector<128x1xf32>
      %cst_18 = arith.constant dense<0.000000e+00> : vector<128xf32>
      %41 = vector.multi_reduction <add>, %38, %cst_18 [1] : vector<128x128xf32> to vector<128xf32>
      %42 = vector.shape_cast %41 : vector<128xf32> to vector<128x1xf32>
      %43 = arith.addf %40, %42 : vector<128x1xf32>
      %c0_19 = arith.constant 0 : index
      %c0_20 = arith.constant 0 : index
      %44 = vector.load %arg10[%c0_19, %c0_20] : memref<128x1xf32, #tpu.memory_space<vmem>>, vector<128x1xf32>
      tpu.vector_store %arg10[%c0_19, %c0_20], %43 {strides = array<i32>} : memref<128x1xf32, #tpu.memory_space<vmem>>, vector<128x1xf32>,
      %c0_21 = arith.constant 0 : index
      %c0_22 = arith.constant 0 : index
      %45 = vector.load %arg11[%c0_21, %c0_22] : memref<128x128xf32, #tpu.memory_space<vmem>>, vector<128x128xf32>
      %46 = vector.broadcast %33 : vector<128x1xf32> to vector<128x128xf32>
      %47 = arith.mulf %46, %45 : vector<128x128xf32>
      %c0_23 = arith.constant 0 : index
      %c0_24 = arith.constant 0 : index
      %48 = vector.load %arg6[%c0_23, %c0_24] : memref<128x128xf32, #tpu.memory_space<vmem>>, vector<128x128xf32>
      %cst_25 = arith.constant dense<0.000000e+00> : vector<128x128xf32>
      %49 = tpu.matmul %38, %48, %cst_25 {dimension_numbers = #tpu.dot_dimension_numbers<[1], [0], [0], [1], [0, 0, 1, 1], [], []>} : vector<128x128xf32>, vector<128x128xf32>, vector<128x128xf32> -> vector<128x128xf32>
      %50 = arith.addf %47, %49 : vector<128x128xf32>
      %c0_26 = arith.constant 0 : index
      %c0_27 = arith.constant 0 : index
      %51 = vector.load %arg11[%c0_26, %c0_27] : memref<128x128xf32, #tpu.memory_space<vmem>>, vector<128x128xf32>
      tpu.vector_store %arg11[%c0_26, %c0_27], %50 {strides = array<i32>} : memref<128x128xf32, #tpu.memory_space<vmem>>, vector<128x128xf32>,
      %c0_28 = arith.constant 0 : index
      %c0_29 = arith.constant 0 : index
      %52 = vector.load %arg9[%c0_28, %c0_29] : memref<128x1xf32, #tpu.memory_space<vmem>>, vector<128x1xf32>
      tpu.vector_store %arg9[%c0_28, %c0_29], %31 {strides = array<i32>} : memref<128x1xf32, #tpu.memory_space<vmem>>, vector<128x1xf32>,
    } else {
    }
    %c0_i32_3 = arith.constant 0 : i32
    %10 = arith.cmpi eq, %arg1, %c0_i32_3 : i32
    %11 = arith.extui %10 : i1 to i32
    %c0_i32_4 = arith.constant 0 : i32
    %12 = arith.cmpi ne, %11, %c0_i32_4 : i32
    scf.if %12 {
      %c0 = arith.constant 0 : index
      %c0_5 = arith.constant 0 : index
      %13 = vector.load %arg10[%c0, %c0_5] : memref<128x1xf32, #tpu.memory_space<vmem>>, vector<128x1xf32>
      %cst = arith.constant 0.000000e+00 : f32
      %14 = vector.broadcast %cst : f32 to vector<128x1xf32>
      %15 = arith.cmpf ogt, %13, %14 : vector<128x1xf32>
      %cst_6 = arith.constant 1.000000e+00 : f32
      %16 = vector.broadcast %cst_6 : f32 to vector<128x1xf32>
      %17 = arith.select %15, %13, %16 : vector<128x1xi1>, vector<128x1xf32>
      %cst_7 = arith.constant 1.000000e+00 : f32
      %18 = vector.broadcast %cst_7 : f32 to vector<128x1xf32>
      %19 = arith.divf %18, %17 : vector<128x1xf32>
      %c0_8 = arith.constant 0 : index
      %c0_9 = arith.constant 0 : index
      %20 = vector.load %arg11[%c0_8, %c0_9] : memref<128x128xf32, #tpu.memory_space<vmem>>, vector<128x128xf32>
      %21 = vector.broadcast %19 : vector<128x1xf32> to vector<128x128xf32>
      %22 = arith.mulf %20, %21 : vector<128x128xf32>
      %c0_10 = arith.constant 0 : index
      %c0_11 = arith.constant 0 : index
      %23 = vector.load %arg7[%c0_10, %c0_11] : memref<1x128xf32, #tpu.memory_space<vmem>>, vector<1x128xf32>
      %24 = vector.broadcast %23 : vector<1x128xf32> to vector<128x128xf32>
      %25 = arith.addf %22, %24 : vector<128x128xf32>
      %cst_12 = arith.constant 0.000000e+00 : f32
      %26 = vector.broadcast %cst_12 : f32 to vector<128x128xf32>
      %27 = arith.maximumf %25, %26 : vector<128x128xf32>
      %c0_13 = arith.constant 0 : index
      %c0_14 = arith.constant 0 : index
      %28 = vector.load %arg8[%c0_13, %c0_14] : memref<128x128xf32, #tpu.memory_space<vmem>>, vector<128x128xf32>
      tpu.vector_store %arg8[%c0_13, %c0_14], %27 {strides = array<i32>} : memref<128x128xf32, #tpu.memory_space<vmem>>, vector<128x128xf32>,
    } else {
    }
    return
  }
  func.func @transform_0(%arg0: i32, %arg1: i32, %arg2: memref<1xi32, #tpu.memory_space<smem>>) -> (i32, i32) {
    %c0_i32 = arith.constant 0 : i32
    %c0_i32_0 = arith.constant 0 : i32
    return %arg0, %c0_i32 : i32, i32
  }
  func.func @transform_1(%arg0: i32, %arg1: i32, %arg2: memref<1xi32, #tpu.memory_space<smem>>) -> (i32, i32) {
    %c0_i32 = arith.constant 0 : i32
    %c0_i32_0 = arith.constant 0 : i32
    return %c0_i32, %arg1 : i32, i32
  }
  func.func @transform_2(%arg0: i32, %arg1: i32, %arg2: memref<1xi32, #tpu.memory_space<smem>>) -> (i32, i32) {
    %c0_i32 = arith.constant 0 : i32
    return %arg0, %arg1 : i32, i32
  }
  func.func @transform_3(%arg0: i32, %arg1: i32, %arg2: memref<1xi32, #tpu.memory_space<smem>>) -> (i32, i32) {
    %c0_i32 = arith.constant 0 : i32
    %c0_i32_0 = arith.constant 0 : i32
    return %arg1, %c0_i32 : i32, i32
  }
  func.func @transform_4(%arg0: i32, %arg1: i32, %arg2: memref<1xi32, #tpu.memory_space<smem>>) -> (i32, i32) {
    %c0_i32 = arith.constant 0 : i32
    %c0_i32_0 = arith.constant 0 : i32
    %c0_i32_1 = arith.constant 0 : i32
    return %c0_i32, %c0_i32_0 : i32, i32
  }
  func.func @transform_5(%arg0: i32, %arg1: i32, %arg2: memref<1xi32, #tpu.memory_space<smem>>) -> (i32, i32) {
    %c0_i32 = arith.constant 0 : i32
    %c0_i32_0 = arith.constant 0 : i32
    return %arg0, %c0_i32 : i32, i32
  }
}

module attributes {stable_mosaic.version = 11 : i64} {
  func.func @_gat_attention_kernel(%arg0: i32, %arg1: i32, %arg2: memref<1xi32, #tpu.memory_space<smem>>, %arg3: memref<128x1xf32, #tpu.memory_space<vmem>>, %arg4: memref<1x128xf32, #tpu.memory_space<vmem>>, %arg5: memref<128x128xi8, #tpu.memory_space<vmem>>, %arg6: memref<128x128xf32, #tpu.memory_space<vmem>>, %arg7: memref<1x128xf32, #tpu.memory_space<vmem>>, %arg8: memref<128x128xf32, #tpu.memory_space<vmem>>, %arg9: memref<128x1xf32, #tpu.memory_space<vmem>>, %arg10: memref<128x1xf32, #tpu.memory_space<vmem>>, %arg11: memref<128x128xf32, #tpu.memory_space<vmem>>) attributes {dimension_semantics = [#tpu.dimension_semantics<parallel>, #tpu.dimension_semantics<arbitrary>], iteration_bounds = array<i64: 1, 1>, scalar_prefetch = 1 : i64, scratch_operands = 3 : i64, tpu.core_type = #tpu.core_type<tc>, window_params = [{transform_indices = @transform_0, window_bounds = array<i64: 128, 1>}, {transform_indices = @transform_1, window_bounds = array<i64: 1, 128>}, {transform_indices = @transform_2, window_bounds = array<i64: 128, 128>}, {transform_indices = @transform_3, window_bounds = array<i64: 128, 128>}, {pipeline_mode = #tpu.pipeline_mode<synchronous>, transform_indices = @transform_4, window_bounds = array<i64: 1, 128>}, {transform_indices = @transform_5, window_bounds = array<i64: 128, 128>}]} {
    %c0_i32 = arith.constant 0 : i32
    %0 = arith.cmpi eq, %arg1, %c0_i32 : i32
    %1 = arith.extui %0 : i1 to i32
    %c0_i32_0 = arith.constant 0 : i32
    %2 = arith.cmpi ne, %1, %c0_i32_0 : i32
    scf.if %2 {
      %cst = arith.constant -1.000000e+30 : f32
      %13 = vector.broadcast %cst : f32 to vector<128x1xf32>
      %c0 = arith.constant 0 : index
      %c0_5 = arith.constant 0 : index
      %14 = vector.load %arg9[%c0, %c0_5] : memref<128x1xf32, #tpu.memory_space<vmem>>, vector<128x1xf32>
      tpu.vector_store %arg9[%c0, %c0_5], %13 {strides = array<i32>} : memref<128x1xf32, #tpu.memory_space<vmem>>, vector<128x1xf32>,
      %cst_6 = arith.constant 0.000000e+00 : f32
      %15 = vector.broadcast %cst_6 : f32 to vector<128x1xf32>
      %c0_7 = arith.constant 0 : index
      %c0_8 = arith.constant 0 : index
      %16 = vector.load %arg10[%c0_7, %c0_8] : memref<128x1xf32, #tpu.memory_space<vmem>>, vector<128x1xf32>
      tpu.vector_store %arg10[%c0_7, %c0_8], %15 {strides = array<i32>} : memref<128x1xf32, #tpu.memory_space<vmem>>, vector<128x1xf32>,
      %cst_9 = arith.constant 0.000000e+00 : f32
      %17 = vector.broadcast %cst_9 : f32 to vector<128x128xf32>
      %c0_10 = arith.constant 0 : index
      %c0_11 = arith.constant 0 : index
      %18 = vector.load %arg11[%c0_10, %c0_11] : memref<128x128xf32, #tpu.memory_space<vmem>>, vector<128x128xf32>
      tpu.vector_store %arg11[%c0_10, %c0_11], %17 {strides = array<i32>} : memref<128x128xf32, #tpu.memory_space<vmem>>, vector<128x128xf32>,
    } else {
    }
    %c1_i32 = arith.constant 1 : i32
    %3 = arith.muli %arg0, %c1_i32 : i32
    %4 = arith.addi %3, %arg1 : i32
    %5 = arith.index_cast %4 : i32 to index
    %6 = memref.load %arg2[%5] : memref<1xi32, #tpu.memory_space<smem>>
    %c0_i32_1 = arith.constant 0 : i32
    %7 = arith.cmpi sgt, %6, %c0_i32_1 : i32
    %8 = arith.extui %7 : i1 to i32
    %c0_i32_2 = arith.constant 0 : i32
    %9 = arith.cmpi ne, %8, %c0_i32_2 : i32
    scf.if %9 {
      %c0 = arith.constant 0 : index
      %c0_5 = arith.constant 0 : index
      %13 = vector.load %arg3[%c0, %c0_5] : memref<128x1xf32, #tpu.memory_space<vmem>>, vector<128x1xf32>
      %c0_6 = arith.constant 0 : index
      %c0_7 = arith.constant 0 : index
      %14 = vector.load %arg4[%c0_6, %c0_7] : memref<1x128xf32, #tpu.memory_space<vmem>>, vector<1x128xf32>
      %15 = vector.broadcast %13 : vector<128x1xf32> to vector<128x128xf32>
      %16 = vector.broadcast %14 : vector<1x128xf32> to vector<128x128xf32>
      %17 = arith.addf %15, %16 : vector<128x128xf32>
      %cst = arith.constant 0.000000e+00 : f32
      %18 = vector.broadcast %cst : f32 to vector<128x128xf32>
      %19 = arith.cmpf ogt, %17, %18 : vector<128x128xf32>
      %cst_8 = arith.constant 2.000000e-01 : f32
      %20 = vector.broadcast %cst_8 : f32 to vector<128x128xf32>
      %21 = arith.mulf %20, %17 : vector<128x128xf32>
      %22 = arith.select %19, %17, %21 : vector<128x128xi1>, vector<128x128xf32>
      %c0_9 = arith.constant 0 : index
      %c0_10 = arith.constant 0 : index
      %23 = vector.load %arg5[%c0_9, %c0_10] : memref<128x128xi8, #tpu.memory_space<vmem>>, vector<128x128xi8>
      %c0_i8 = arith.constant 0 : i8
      %24 = vector.broadcast %c0_i8 : i8 to vector<128x128xi8>
      %25 = arith.cmpi ne, %23, %24 : vector<128x128xi8>
      %cst_11 = arith.constant -1.000000e+30 : f32
      %26 = vector.broadcast %cst_11 : f32 to vector<128x128xf32>
      %27 = arith.select %25, %22, %26 : vector<128x128xi1>, vector<128x128xf32>
      %c0_12 = arith.constant 0 : index
      %c0_13 = arith.constant 0 : index
      %28 = vector.load %arg9[%c0_12, %c0_13] : memref<128x1xf32, #tpu.memory_space<vmem>>, vector<128x1xf32>
      %cst_14 = arith.constant dense<0xFF800000> : vector<128xf32>
      %29 = vector.multi_reduction <maximumf>, %27, %cst_14 [1] : vector<128x128xf32> to vector<128xf32>
      %30 = vector.shape_cast %29 : vector<128xf32> to vector<128x1xf32>
      %31 = arith.maximumf %28, %30 : vector<128x1xf32>
      %32 = arith.subf %28, %31 : vector<128x1xf32>
      %33 = math.exp %32 : vector<128x1xf32>
      %34 = vector.broadcast %31 : vector<128x1xf32> to vector<128x128xf32>
      %35 = arith.subf %27, %34 : vector<128x128xf32>
      %36 = math.exp %35 : vector<128x128xf32>
      %cst_15 = arith.constant 0.000000e+00 : f32
      %37 = vector.broadcast %cst_15 : f32 to vector<128x128xf32>
      %38 = arith.select %25, %36, %37 : vector<128x128xi1>, vector<128x128xf32>
      %c0_16 = arith.constant 0 : index
      %c0_17 = arith.constant 0 : index
      %39 = vector.load %arg10[%c0_16, %c0_17] : memref<128x1xf32, #tpu.memory_space<vmem>>, vector<128x1xf32>
      %40 = arith.mulf %33, %39 : vector<128x1xf32>
      %cst_18 = arith.constant dense<0.000000e+00> : vector<128xf32>
      %41 = vector.multi_reduction <add>, %38, %cst_18 [1] : vector<128x128xf32> to vector<128xf32>
      %42 = vector.shape_cast %41 : vector<128xf32> to vector<128x1xf32>
      %43 = arith.addf %40, %42 : vector<128x1xf32>
      %c0_19 = arith.constant 0 : index
      %c0_20 = arith.constant 0 : index
      %44 = vector.load %arg10[%c0_19, %c0_20] : memref<128x1xf32, #tpu.memory_space<vmem>>, vector<128x1xf32>
      tpu.vector_store %arg10[%c0_19, %c0_20], %43 {strides = array<i32>} : memref<128x1xf32, #tpu.memory_space<vmem>>, vector<128x1xf32>,
      %c0_21 = arith.constant 0 : index
      %c0_22 = arith.constant 0 : index
      %45 = vector.load %arg11[%c0_21, %c0_22] : memref<128x128xf32, #tpu.memory_space<vmem>>, vector<128x128xf32>
      %46 = vector.broadcast %33 : vector<128x1xf32> to vector<128x128xf32>
      %47 = arith.mulf %46, %45 : vector<128x128xf32>
      %c0_23 = arith.constant 0 : index
      %c0_24 = arith.constant 0 : index
      %48 = vector.load %arg6[%c0_23, %c0_24] : memref<128x128xf32, #tpu.memory_space<vmem>>, vector<128x128xf32>
      %cst_25 = arith.constant dense<0.000000e+00> : vector<128x128xf32>
      %49 = tpu.matmul %38, %48, %cst_25 {dimension_numbers = #tpu.dot_dimension_numbers<[1], [0], [0], [1], [0, 0, 1, 1], [], []>} : vector<128x128xf32>, vector<128x128xf32>, vector<128x128xf32> -> vector<128x128xf32>
      %50 = arith.addf %47, %49 : vector<128x128xf32>
      %c0_26 = arith.constant 0 : index
      %c0_27 = arith.constant 0 : index
      %51 = vector.load %arg11[%c0_26, %c0_27] : memref<128x128xf32, #tpu.memory_space<vmem>>, vector<128x128xf32>
      tpu.vector_store %arg11[%c0_26, %c0_27], %50 {strides = array<i32>} : memref<128x128xf32, #tpu.memory_space<vmem>>, vector<128x128xf32>,
      %c0_28 = arith.constant 0 : index
      %c0_29 = arith.constant 0 : index
      %52 = vector.load %arg9[%c0_28, %c0_29] : memref<128x1xf32, #tpu.memory_space<vmem>>, vector<128x1xf32>
      tpu.vector_store %arg9[%c0_28, %c0_29], %31 {strides = array<i32>} : memref<128x1xf32, #tpu.memory_space<vmem>>, vector<128x1xf32>,
    } else {
    }
    %c0_i32_3 = arith.constant 0 : i32
    %10 = arith.cmpi eq, %arg1, %c0_i32_3 : i32
    %11 = arith.extui %10 : i1 to i32
    %c0_i32_4 = arith.constant 0 : i32
    %12 = arith.cmpi ne, %11, %c0_i32_4 : i32
    scf.if %12 {
      %c0 = arith.constant 0 : index
      %c0_5 = arith.constant 0 : index
      %13 = vector.load %arg10[%c0, %c0_5] : memref<128x1xf32, #tpu.memory_space<vmem>>, vector<128x1xf32>
      %cst = arith.constant 0.000000e+00 : f32
      %14 = vector.broadcast %cst : f32 to vector<128x1xf32>
      %15 = arith.cmpf ogt, %13, %14 : vector<128x1xf32>
      %cst_6 = arith.constant 1.000000e+00 : f32
      %16 = vector.broadcast %cst_6 : f32 to vector<128x1xf32>
      %17 = arith.select %15, %13, %16 : vector<128x1xi1>, vector<128x1xf32>
      %cst_7 = arith.constant 1.000000e+00 : f32
      %18 = vector.broadcast %cst_7 : f32 to vector<128x1xf32>
      %19 = arith.divf %18, %17 : vector<128x1xf32>
      %c0_8 = arith.constant 0 : index
      %c0_9 = arith.constant 0 : index
      %20 = vector.load %arg11[%c0_8, %c0_9] : memref<128x128xf32, #tpu.memory_space<vmem>>, vector<128x128xf32>
      %21 = vector.broadcast %19 : vector<128x1xf32> to vector<128x128xf32>
      %22 = arith.mulf %20, %21 : vector<128x128xf32>
      %c0_10 = arith.constant 0 : index
      %c0_11 = arith.constant 0 : index
      %23 = vector.load %arg7[%c0_10, %c0_11] : memref<1x128xf32, #tpu.memory_space<vmem>>, vector<1x128xf32>
      %24 = vector.broadcast %23 : vector<1x128xf32> to vector<128x128xf32>
      %25 = arith.addf %22, %24 : vector<128x128xf32>
      %26 = tpu.iota {dimensions = array<i32: 1>} : vector<128x128xi32>
      %c4_i32 = arith.constant 4 : i32
      %27 = vector.broadcast %c4_i32 : i32 to vector<128x128xi32>
      %28 = arith.cmpi slt, %26, %27 : vector<128x128xi32>
      %cst_12 = arith.constant -1.000000e+30 : f32
      %29 = vector.broadcast %cst_12 : f32 to vector<128x128xf32>
      %30 = arith.select %28, %25, %29 : vector<128x128xi1>, vector<128x128xf32>
      %cst_13 = arith.constant dense<0xFF800000> : vector<128xf32>
      %31 = vector.multi_reduction <maximumf>, %30, %cst_13 [1] : vector<128x128xf32> to vector<128xf32>
      %32 = vector.shape_cast %31 : vector<128xf32> to vector<128x1xf32>
      %33 = vector.broadcast %32 : vector<128x1xf32> to vector<128x128xf32>
      %34 = arith.subf %30, %33 : vector<128x128xf32>
      %35 = math.exp %34 : vector<128x128xf32>
      %cst_14 = arith.constant 0.000000e+00 : f32
      %36 = vector.broadcast %cst_14 : f32 to vector<128x128xf32>
      %37 = arith.select %28, %35, %36 : vector<128x128xi1>, vector<128x128xf32>
      %cst_15 = arith.constant dense<0.000000e+00> : vector<128xf32>
      %38 = vector.multi_reduction <add>, %37, %cst_15 [1] : vector<128x128xf32> to vector<128xf32>
      %39 = vector.shape_cast %38 : vector<128xf32> to vector<128x1xf32>
      %40 = math.log %39 : vector<128x1xf32>
      %41 = arith.addf %32, %40 : vector<128x1xf32>
      %42 = vector.broadcast %41 : vector<128x1xf32> to vector<128x128xf32>
      %43 = arith.subf %25, %42 : vector<128x128xf32>
      %c0_16 = arith.constant 0 : index
      %c0_17 = arith.constant 0 : index
      %44 = vector.load %arg8[%c0_16, %c0_17] : memref<128x128xf32, #tpu.memory_space<vmem>>, vector<128x128xf32>
      tpu.vector_store %arg8[%c0_16, %c0_17], %43 {strides = array<i32>} : memref<128x128xf32, #tpu.memory_space<vmem>>, vector<128x128xf32>,
    } else {
    }
    return
  }
  func.func @transform_0(%arg0: i32, %arg1: i32, %arg2: memref<1xi32, #tpu.memory_space<smem>>) -> (i32, i32) {
    %c0_i32 = arith.constant 0 : i32
    %c0_i32_0 = arith.constant 0 : i32
    return %arg0, %c0_i32 : i32, i32
  }
  func.func @transform_1(%arg0: i32, %arg1: i32, %arg2: memref<1xi32, #tpu.memory_space<smem>>) -> (i32, i32) {
    %c0_i32 = arith.constant 0 : i32
    %c0_i32_0 = arith.constant 0 : i32
    return %c0_i32, %arg1 : i32, i32
  }
  func.func @transform_2(%arg0: i32, %arg1: i32, %arg2: memref<1xi32, #tpu.memory_space<smem>>) -> (i32, i32) {
    %c0_i32 = arith.constant 0 : i32
    return %arg0, %arg1 : i32, i32
  }
  func.func @transform_3(%arg0: i32, %arg1: i32, %arg2: memref<1xi32, #tpu.memory_space<smem>>) -> (i32, i32) {
    %c0_i32 = arith.constant 0 : i32
    %c0_i32_0 = arith.constant 0 : i32
    return %arg1, %c0_i32 : i32, i32
  }
  func.func @transform_4(%arg0: i32, %arg1: i32, %arg2: memref<1xi32, #tpu.memory_space<smem>>) -> (i32, i32) {
    %c0_i32 = arith.constant 0 : i32
    %c0_i32_0 = arith.constant 0 : i32
    %c0_i32_1 = arith.constant 0 : i32
    return %c0_i32, %c0_i32_0 : i32, i32
  }
  func.func @transform_5(%arg0: i32, %arg1: i32, %arg2: memref<1xi32, #tpu.memory_space<smem>>) -> (i32, i32) {
    %c0_i32 = arith.constant 0 : i32
    %c0_i32_0 = arith.constant 0 : i32
    return %arg0, %c0_i32 : i32, i32
  }
}

</mosaic_0001>

<bundles_post_ra>
// kernel: gat_forward.4
= control target key start
LH: loop header
LB: loop body
LE: loop exit
PB: predicated region body
PF: predicated region fallthrough
CT: control target
= control target key end

     0   :  { %vm252_vm0 = vcmask 7168   ;;  %s855_s1 = inlined_call_operand.vmem [shape: f32[128,128], index: 1, kind: input, shape index: {}]   ;;  %s856_s0 = inlined_call_operand.vmem [shape: f32[128,128], index: 0, kind: input, shape index: {}]   ;;  %s857_s2 = inlined_call_operand.vmem [shape: f32[1,128], index: 2, kind: input, shape index: {}]   ;;  %s858_s4 = inlined_call_operand.vmem [shape: f32[128,128], index: 4, kind: output, shape index: {0}]   ;;  %s859_s3 = inlined_call_operand.vmem [shape: f32[1,128], index: 3, kind: input, shape index: {}]   ;;  %s860_s5 = inlined_call_operand.vmem [shape: f32[128,1], index: 5, kind: output, shape index: {1}]   ;;  %s861_s6 = inlined_call_operand.vmem [shape: f32[128,1], index: 6, kind: output, shape index: {2}]  }
   0x1   :  { %v36_v0 = vld [vmem:[%s855_s1] sm:$0xff]  ;;  %v37_v1 = vld [vmem:[%s855_s1 + $0x8] sm:$0xff]  ;;  %v38_v2 = vld [vmem:[%s855_s1 + $0x10] sm:$0xff] }
   0x2   :  { %v458_v3 = vpack.c.bf16 %v37_v1, %v36_v0  ;;  %v39_v4 = vld [vmem:[%s855_s1 + $0x18] sm:$0xff]  ;;  %v40_v6 = vld [vmem:[%s855_s1 + $0x20] sm:$0xff]  ;;  %v41_v7 = vld [vmem:[%s855_s1 + $0x28] sm:$0xff] }
   0x3   :  { %v462_v5 = vpack.c.bf16 %v39_v4, %v38_v2  ;;  %v466_v8 = vpack.c.bf16 %v41_v7, %v40_v6  ;;  %v20_v9 = vld [vmem:[%s856_s0] sm:$0xff]  ;;  %v42_v11 = vld [vmem:[%s855_s1 + $0x30] sm:$0xff]  ;;  %v43_v12 = vld [vmem:[%s855_s1 + $0x38] sm:$0xff] }
   0x4   :  { %459 = vmatprep.subr.bf16.mxu0 %v458_v3  ;;  %490 = vmatprep.subr.bf16.mxu1 %v458_v3  ;;  %v28_v10 = vld [vmem:[%s856_s0 + $0x40] sm:$0xff]  ;;  %v470_v13 = vpack.c.bf16 %v43_v12, %v42_v11  ;;  %v45_v15 = vld [vmem:[%s855_s1 + $0x48] sm:$0xff]  ;;  %v46_v17 = vld [vmem:[%s855_s1 + $0x50] sm:$0xff] }
   0x5   :  { %461 = vmatpush3.bf16.msra.mxu0 %v458_v3  ;;  %498 = vmatpush3.bf16.msra.mxu1 %v458_v3  ;;  %v44_v14 = vld [vmem:[%s855_s1 + $0x40] sm:$0xff]  ;;  %v47_v18 = vld [vmem:[%s855_s1 + $0x58] sm:$0xff]  ;;  %v49_v21 = vld [vmem:[%s855_s1 + $0x68] sm:$0xff] }
   0x6   :  { %463 = vmatprep.subr.bf16.mxu0 %v462_v5  ;;  %491 = vmatprep.subr.bf16.mxu1 %v462_v5  ;;  %v474_v16 = vpack.c.bf16 %v45_v15, %v44_v14  ;;  %v478_v19 = vpack.c.bf16 %v47_v18, %v46_v17  ;;  %v48_v20 = vld [vmem:[%s855_s1 + $0x60] sm:$0xff]  ;;  %v50_v23 = vld [vmem:[%s855_s1 + $0x70] sm:$0xff]  ;;  %v51_v24 = vld [vmem:[%s855_s1 + $0x78] sm:$0xff] }
   0x7   :  { %434 = vmatprep.mubr.f32.mxu0 %v20_v9  ;;  %446 = vmatprep.mubr.f32.mxu1 %v28_v10  ;;  %v482_v22 = vpack.c.bf16 %v49_v21, %v48_v20  ;;  %v486_v25 = vpack.c.bf16 %v51_v24, %v50_v23  ;;  %v21_v26 = vld [vmem:[%s856_s0 + $0x8] sm:$0xff]  ;;  %v22_v28 = vld [vmem:[%s856_s0 + $0x10] sm:$0xff]  ;;  %v23_v30 = vld [vmem:[%s856_s0 + $0x18] sm:$0xff] }
   0x8   :  { %v29_v27 = vld [vmem:[%s856_s0 + $0x48] sm:$0xff]  ;;  %v30_v29 = vld [vmem:[%s856_s0 + $0x50] sm:$0xff]  ;;  %v31_v31 = vld [vmem:[%s856_s0 + $0x58] sm:$0xff] }
   0x9   :  { %465 = vmatpush3.bf16.msra.mxu0 %v462_v5  ;;  %499 = vmatpush3.bf16.msra.mxu1 %v462_v5  ;;  %v24_v32 = vld [vmem:[%s856_s0 + $0x20] sm:$0xff]  ;;  %v25_v34 = vld [vmem:[%s856_s0 + $0x28] sm:$0xff]  ;;  %v26_v36 = vld [vmem:[%s856_s0 + $0x30] sm:$0xff] }
   0xa   :  { %467 = vmatprep.subr.bf16.mxu0 %v466_v8  ;;  %492 = vmatprep.subr.bf16.mxu1 %v466_v8  ;;  %v32_v33 = vld [vmem:[%s856_s0 + $0x60] sm:$0xff]  ;;  %v33_v35 = vld [vmem:[%s856_s0 + $0x68] sm:$0xff]  ;;  %v34_v37 = vld [vmem:[%s856_s0 + $0x70] sm:$0xff] }
   0xb   :  { %v27_v38 = vld [vmem:[%s856_s0 + $0x38] sm:$0xff]  ;;  %v640_v40 = vld [vmem:[%s857_s2] ss:$0 sm:$0xff] }
   0xc   :  { %v35_v39 = vld [vmem:[%s856_s0 + $0x78] sm:$0xff]  ;;  %v659_v47 = vld [vmem:[%s859_s3] ss:$0 sm:$0xff] }
   0xd   :  { %469 = vmatpush3.bf16.msra.mxu0 %v466_v8  ;;  %500 = vmatpush3.bf16.msra.mxu1 %v466_v8 }
   0xe   :  { %471 = vmatprep.subr.bf16.mxu0 %v470_v13  ;;  %493 = vmatprep.subr.bf16.mxu1 %v470_v13 }
  0x11   :  { %473 = vmatpush3.bf16.msra.mxu0 %v470_v13  ;;  %501 = vmatpush3.bf16.msra.mxu1 %v470_v13 }
  0x12   :  { %475 = vmatprep.subr.bf16.mxu0 %v474_v16  ;;  %494 = vmatprep.subr.bf16.mxu1 %v474_v16 }
  0x15   :  { %477 = vmatpush3.bf16.msra.mxu0 %v474_v16  ;;  %502 = vmatpush3.bf16.msra.mxu1 %v474_v16 }
  0x16   :  { %479 = vmatprep.subr.bf16.mxu0 %v478_v19  ;;  %495 = vmatprep.subr.bf16.mxu1 %v478_v19 }
  0x19   :  { %481 = vmatpush3.bf16.msra.mxu0 %v478_v19  ;;  %503 = vmatpush3.bf16.msra.mxu1 %v478_v19 }
  0x1a   :  { %483 = vmatprep.subr.bf16.mxu0 %v482_v22  ;;  %496 = vmatprep.subr.bf16.mxu1 %v482_v22 }
  0x1d   :  { %485 = vmatpush3.bf16.msra.mxu0 %v482_v22  ;;  %504 = vmatpush3.bf16.msra.mxu1 %v482_v22 }
  0x1e   :  { %487 = vmatprep.subr.bf16.mxu0 %v486_v25  ;;  %497 = vmatprep.subr.bf16.mxu1 %v486_v25 }
  0x21   :  { %489 = vmatpush3.bf16.msra.mxu0 %v486_v25  ;;  %505 = vmatpush3.bf16.msra.mxu1 %v486_v25 }
  0x24   :  { %435 = vmatmul.mubr.f32.vlgmr.msra.gmra.mrb[0].mxu0 %v21_v26  ;;  %447 = vmatmul.mubr.f32.vlgmr.msra.gmra.mrb[0].mxu1 %v29_v27 }
  0x25   :  { %437 = vmatprep.mubr.f32.mxu0 %v22_v28  ;;  %449 = vmatprep.mubr.f32.mxu1 %v30_v29 }
  0x28   :  { %438 = vmatmul.mubr.f32.gmra.mrb[2].mxu0 %v23_v30  ;;  %450 = vmatmul.mubr.f32.gmra.mrb[2].mxu1 %v31_v31 }
  0x29   :  { %440 = vmatprep.mubr.f32.mxu0 %v24_v32  ;;  %452 = vmatprep.mubr.f32.mxu1 %v32_v33 }
  0x2c   :  { %441 = vmatmul.mubr.f32.gmra.mrb[4].mxu0 %v25_v34  ;;  %453 = vmatmul.mubr.f32.gmra.mrb[4].mxu1 %v33_v35 }
  0x2d   :  { %443 = vmatprep.mubr.f32.mxu0 %v26_v36  ;;  %455 = vmatprep.mubr.f32.mxu1 %v34_v37 }
  0x30   :  { %444 = vmatmul.mubr.f32.gmra.mrb[6].mxu0 %v27_v38  ;;  %456 = vmatmul.mubr.f32.gmra.mrb[6].mxu1 %v35_v39 }
  0xf7   :  { %v436_v41 = vpop.f32.mrb[0].mxu0  ;;  %v448_v42 = vpop.f32.mrb[0].mxu1 }
  0xf8   :  { %341 = vst [vmem:[%s858_s4 + $0x8] sm:$0xff] %v436_v41  ;;  %349 = vst [vmem:[%s858_s4 + $0x48] sm:$0xff] %v448_v42  ;;  %v118_v43 = vpop.f32.mrb[1].mxu0  ;;  %v158_v44 = vpop.f32.mrb[1].mxu1  ;;  %v213_v45 = vmul.f32 %v448_v42, %v640_v40  ;;  %v205_v46 = vmul.f32 %v436_v41, %v640_v40  ;;  %v277_v50 = vmul.f32 %v436_v41, %v659_v47 }
  0xf9   :  { %340 = vst [vmem:[%s858_s4] sm:$0xff] %v118_v43  ;;  %348 = vst [vmem:[%s858_s4 + $0x40] sm:$0xff] %v158_v44  ;;  %v204_v51 = vmul.f32 %v640_v40, %v118_v43  ;;  %v285_v56 = vmul.f32 %v448_v42, %v659_v47  ;;  %v212_v57 = vmul.f32 %v640_v40, %v158_v44 }
  0xfa   :  { %238 = vadd.xlane.f32.xlu1 %v213_v45  ;;  %222 = vadd.xlane.f32.xlu0 %v205_v46  ;;  %v276_v63 = vmul.f32 %v659_v47, %v118_v43  ;;  %v284_v3 = vmul.f32 %v659_v47, %v158_v44 }
  0xfb   :  { %v439_v48 = vpop.f32.mrb[2].mxu0  ;;  %v451_v49 = vpop.f32.mrb[2].mxu1 }
  0xfc   :  { %343 = vst [vmem:[%s858_s4 + $0x18] sm:$0xff] %v439_v48  ;;  %v128_v52 = vpop.f32.mrb[3].mxu0  ;;  %351 = vst [vmem:[%s858_s4 + $0x58] sm:$0xff] %v451_v49  ;;  %v168_v53 = vpop.f32.mrb[3].mxu1  ;;  %v207_v60 = vmul.f32 %v439_v48, %v640_v40  ;;  %v215_v2 = vmul.f32 %v451_v49, %v640_v40  ;;  %v279_v5 = vmul.f32 %v439_v48, %v659_v47 }
  0xfd   :  { %342 = vst [vmem:[%s858_s4 + $0x10] sm:$0xff] %v128_v52  ;;  %350 = vst [vmem:[%s858_s4 + $0x50] sm:$0xff] %v168_v53  ;;  %v214_v4 = vmul.f32 %v640_v40, %v168_v53  ;;  %v287_v6 = vmul.f32 %v451_v49, %v659_v47  ;;  %v278_v7 = vmul.f32 %v659_v47, %v128_v52 }
  0xfe   :  { %294 = vadd.xlane.f32.xlu1 %v277_v50  ;;  %220 = vadd.xlane.f32.xlu0 %v204_v51  ;;  %v286_v8 = vmul.f32 %v659_v47, %v168_v53  ;;  %v206_v9 = vmul.f32 %v640_v40, %v128_v52 }
  0xff   :  { %v442_v54 = vpop.f32.mrb[4].mxu0  ;;  %v454_v55 = vpop.f32.mrb[4].mxu1 }
 0x100   :  { %345 = vst [vmem:[%s858_s4 + $0x28] sm:$0xff] %v442_v54  ;;  %v138_v58 = vpop.f32.mrb[5].mxu0  ;;  %353 = vst [vmem:[%s858_s4 + $0x68] sm:$0xff] %v454_v55  ;;  %v178_v59 = vpop.f32.mrb[5].mxu1  ;;  %v209_v10 = vmul.f32 %v442_v54, %v640_v40  ;;  %v217_v12 = vmul.f32 %v454_v55, %v640_v40  ;;  %v281_v14 = vmul.f32 %v442_v54, %v659_v47 }
 0x101   :  { %344 = vst [vmem:[%s858_s4 + $0x20] sm:$0xff] %v138_v58  ;;  %352 = vst [vmem:[%s858_s4 + $0x60] sm:$0xff] %v178_v59  ;;  %v208_v11 = vmul.f32 %v640_v40, %v138_v58  ;;  %v216_v13 = vmul.f32 %v640_v40, %v178_v59  ;;  %v280_v15 = vmul.f32 %v659_v47, %v138_v58 }
 0x102   :  { %310 = vadd.xlane.f32.xlu1 %v285_v56  ;;  %236 = vadd.xlane.f32.xlu0 %v212_v57  ;;  %v289_v16 = vmul.f32 %v454_v55, %v659_v47  ;;  %v288_v17 = vmul.f32 %v659_v47, %v178_v59 }
 0x103   :  { %v445_v61 = vpop.f32.mrb[6].mxu0  ;;  %v457_v62 = vpop.f32.mrb[6].mxu1 }
 0x104   :  { %347 = vst [vmem:[%s858_s4 + $0x38] sm:$0xff] %v445_v61  ;;  %v148_v0 = vpop.f32.mrb[7].mxu0  ;;  %355 = vst [vmem:[%s858_s4 + $0x78] sm:$0xff] %v457_v62  ;;  %v188_v1 = vpop.f32.mrb[7].mxu1  ;;  %v211_v18 = vmul.f32 %v445_v61, %v640_v40  ;;  %v219_v20 = vmul.f32 %v457_v62, %v640_v40  ;;  %v283_v22 = vmul.f32 %v445_v61, %v659_v47 }
 0x105   :  { %346 = vst [vmem:[%s858_s4 + $0x30] sm:$0xff] %v148_v0  ;;  %354 = vst [vmem:[%s858_s4 + $0x70] sm:$0xff] %v188_v1  ;;  %v210_v19 = vmul.f32 %v640_v40, %v148_v0  ;;  %v218_v21 = vmul.f32 %v640_v40, %v188_v1  ;;  %v282_v23 = vmul.f32 %v659_v47, %v148_v0 }
 0x106   :  { %292 = vadd.xlane.f32.xlu0 %v276_v63  ;;  %226 = vadd.xlane.f32.xlu1 %v207_v60  ;;  %v291_v24 = vmul.f32 %v457_v62, %v659_v47  ;;  %v290_v25 = vmul.f32 %v659_v47, %v188_v1 }
 0x10a   :  { %308 = vadd.xlane.f32.xlu0 %v284_v3  ;;  %242 = vadd.xlane.f32.xlu1 %v215_v2 }
 0x10e   :  { %240 = vadd.xlane.f32.xlu0 %v214_v4  ;;  %298 = vadd.xlane.f32.xlu1 %v279_v5 }
 0x112   :  { %314 = vadd.xlane.f32.xlu1 %v287_v6  ;;  %296 = vadd.xlane.f32.xlu0 %v278_v7 }
 0x116   :  { %312 = vadd.xlane.f32.xlu0 %v286_v8  ;;  %224 = vadd.xlane.f32.xlu1 %v206_v9 }
 0x11a   :  { %230 = vadd.xlane.f32.xlu1 %v209_v10  ;;  %228 = vadd.xlane.f32.xlu0 %v208_v11 }
 0x11e   :  { %246 = vadd.xlane.f32.xlu1 %v217_v12  ;;  %244 = vadd.xlane.f32.xlu0 %v216_v13 }
 0x122   :  { %302 = vadd.xlane.f32.xlu1 %v281_v14  ;;  %300 = vadd.xlane.f32.xlu0 %v280_v15 }
 0x126   :  { %318 = vadd.xlane.f32.xlu1 %v289_v16  ;;  %316 = vadd.xlane.f32.xlu0 %v288_v17 }
 0x12a   :  { %234 = vadd.xlane.f32.xlu1 %v211_v18  ;;  %232 = vadd.xlane.f32.xlu0 %v210_v19 }
 0x12e   :  { %250 = vadd.xlane.f32.xlu1 %v219_v20  ;;  %248 = vadd.xlane.f32.xlu0 %v218_v21 }
 0x132   :  { %306 = vadd.xlane.f32.xlu1 %v283_v22  ;;  %304 = vadd.xlane.f32.xlu0 %v282_v23 }
 0x136   :  { %322 = vadd.xlane.f32.xlu1 %v291_v24  ;;  %320 = vadd.xlane.f32.xlu0 %v290_v25 }
 0x187   :  { %v239_v26 = vpop.xlane.xlu1 %238  ;;  %v223_v27 = vpop.xlane.xlu0 %222 }
 0x188   :  { %262 = vst.msk [vmem:[%s860_s5 + $0x48] sm:$0xff] %vm252_vm0, %v239_v26  ;;  %254 = vst.msk [vmem:[%s860_s5 + $0x8] sm:$0xff] %vm252_vm0, %v223_v27 }
 0x18b   :  { %v295_v28 = vpop.xlane.xlu1 %294  ;;  %v221_v29 = vpop.xlane.xlu0 %220 }
 0x18c   :  { %325 = vst.msk [vmem:[%s861_s6 + $0x8] sm:$0xff] %vm252_vm0, %v295_v28  ;;  %253 = vst.msk [vmem:[%s860_s5] sm:$0xff] %vm252_vm0, %v221_v29 }
 0x18f   :  { %v311_v30 = vpop.xlane.xlu1 %310  ;;  %v237_v31 = vpop.xlane.xlu0 %236 }
 0x190   :  { %333 = vst.msk [vmem:[%s861_s6 + $0x48] sm:$0xff] %vm252_vm0, %v311_v30  ;;  %261 = vst.msk [vmem:[%s860_s5 + $0x40] sm:$0xff] %vm252_vm0, %v237_v31 }
 0x193   :  { %v293_v32 = vpop.xlane.xlu0 %292  ;;  %v227_v33 = vpop.xlane.xlu1 %226 }
 0x194   :  { %324 = vst.msk [vmem:[%s861_s6] sm:$0xff] %vm252_vm0, %v293_v32  ;;  %256 = vst.msk [vmem:[%s860_s5 + $0x18] sm:$0xff] %vm252_vm0, %v227_v33 }
 0x197   :  { %v309_v34 = vpop.xlane.xlu0 %308  ;;  %v243_v35 = vpop.xlane.xlu1 %242 }
 0x198   :  { %332 = vst.msk [vmem:[%s861_s6 + $0x40] sm:$0xff] %vm252_vm0, %v309_v34  ;;  %264 = vst.msk [vmem:[%s860_s5 + $0x58] sm:$0xff] %vm252_vm0, %v243_v35 }
 0x19b   :  { %v241_v36 = vpop.xlane.xlu0 %240  ;;  %v299_v37 = vpop.xlane.xlu1 %298 }
 0x19c   :  { %263 = vst.msk [vmem:[%s860_s5 + $0x50] sm:$0xff] %vm252_vm0, %v241_v36  ;;  %327 = vst.msk [vmem:[%s861_s6 + $0x18] sm:$0xff] %vm252_vm0, %v299_v37 }
 0x19f   :  { %v315_v38 = vpop.xlane.xlu1 %314  ;;  %v297_v39 = vpop.xlane.xlu0 %296 }
 0x1a0   :  { %335 = vst.msk [vmem:[%s861_s6 + $0x58] sm:$0xff] %vm252_vm0, %v315_v38  ;;  %326 = vst.msk [vmem:[%s861_s6 + $0x10] sm:$0xff] %vm252_vm0, %v297_v39 }
 0x1a3   :  { %v313_v40 = vpop.xlane.xlu0 %312  ;;  %v225_v41 = vpop.xlane.xlu1 %224 }
 0x1a4   :  { %334 = vst.msk [vmem:[%s861_s6 + $0x50] sm:$0xff] %vm252_vm0, %v313_v40  ;;  %255 = vst.msk [vmem:[%s860_s5 + $0x10] sm:$0xff] %vm252_vm0, %v225_v41 }
 0x1a7   :  { %v231_v42 = vpop.xlane.xlu1 %230  ;;  %v229_v43 = vpop.xlane.xlu0 %228 }
 0x1a8   :  { %258 = vst.msk [vmem:[%s860_s5 + $0x28] sm:$0xff] %vm252_vm0, %v231_v42  ;;  %257 = vst.msk [vmem:[%s860_s5 + $0x20] sm:$0xff] %vm252_vm0, %v229_v43 }
 0x1ab   :  { %v247_v44 = vpop.xlane.xlu1 %246  ;;  %v245_v45 = vpop.xlane.xlu0 %244 }
 0x1ac   :  { %266 = vst.msk [vmem:[%s860_s5 + $0x68] sm:$0xff] %vm252_vm0, %v247_v44  ;;  %265 = vst.msk [vmem:[%s860_s5 + $0x60] sm:$0xff] %vm252_vm0, %v245_v45 }
 0x1af   :  { %v303_v46 = vpop.xlane.xlu1 %302  ;;  %v301_v47 = vpop.xlane.xlu0 %300 }
 0x1b0   :  { %329 = vst.msk [vmem:[%s861_s6 + $0x28] sm:$0xff] %vm252_vm0, %v303_v46  ;;  %328 = vst.msk [vmem:[%s861_s6 + $0x20] sm:$0xff] %vm252_vm0, %v301_v47 }
 0x1b3   :  { %v319_v48 = vpop.xlane.xlu1 %318  ;;  %v317_v49 = vpop.xlane.xlu0 %316 }
 0x1b4   :  { %337 = vst.msk [vmem:[%s861_s6 + $0x68] sm:$0xff] %vm252_vm0, %v319_v48  ;;  %336 = vst.msk [vmem:[%s861_s6 + $0x60] sm:$0xff] %vm252_vm0, %v317_v49 }
 0x1b7   :  { %v235_v50 = vpop.xlane.xlu1 %234  ;;  %v233_v51 = vpop.xlane.xlu0 %232 }
 0x1b8   :  { %260 = vst.msk [vmem:[%s860_s5 + $0x38] sm:$0xff] %vm252_vm0, %v235_v50  ;;  %259 = vst.msk [vmem:[%s860_s5 + $0x30] sm:$0xff] %vm252_vm0, %v233_v51 }
 0x1bb   :  { %v251_v52 = vpop.xlane.xlu1 %250  ;;  %v249_v53 = vpop.xlane.xlu0 %248 }
 0x1bc   :  { %268 = vst.msk [vmem:[%s860_s5 + $0x78] sm:$0xff] %vm252_vm0, %v251_v52  ;;  %267 = vst.msk [vmem:[%s860_s5 + $0x70] sm:$0xff] %vm252_vm0, %v249_v53 }
 0x1bf   :  { %v307_v54 = vpop.xlane.xlu1 %306  ;;  %v305_v55 = vpop.xlane.xlu0 %304 }
 0x1c0   :  { %331 = vst.msk [vmem:[%s861_s6 + $0x38] sm:$0xff] %vm252_vm0, %v307_v54  ;;  %330 = vst.msk [vmem:[%s861_s6 + $0x30] sm:$0xff] %vm252_vm0, %v305_v55 }
 0x1c3   :  { %v323_v56 = vpop.xlane.xlu1 %322  ;;  %v321_v57 = vpop.xlane.xlu0 %320 }
 0x1c4   :  { %339 = vst.msk [vmem:[%s861_s6 + $0x78] sm:$0xff] %vm252_vm0, %v323_v56  ;;  %338 = vst.msk [vmem:[%s861_s6 + $0x70] sm:$0xff] %vm252_vm0, %v321_v57 }

// kernel: gat_forward.5
= control target key start
LH: loop header
LB: loop body
LE: loop exit
PB: predicated region body
PF: predicated region fallthrough
CT: control target
= control target key end

     0   :  { %vm2416_vm0 = vcmask 7168   ;;  %v1577_v0 = vmov -1e+30   ;;  %v1578_v1 = vmov 0.0   ;;  %s2409_s0 = inlined_call_operand.<no memory space> [shape: s32[1], index: 0, kind: input, shape index: {}]   ;;  %s2410_s1 = inlined_call_operand.vmem [shape: f32[128,1], index: 1, kind: input, shape index: {}]   ;;  %s2411_s2 = inlined_call_operand.vmem [shape: f32[1,128], index: 2, kind: input, shape index: {}]   ;;  %s2412_s3 = inlined_call_operand.vmem [shape: s8[128,128], index: 3, kind: input, shape index: {}]   ;;  %s2413_s4 = inlined_call_operand.vmem [shape: f32[128,128], index: 4, kind: input, shape index: {}]   ;;  %s2414_s5 = inlined_call_operand.vmem [shape: f32[1,128], index: 5, kind: input, shape index: {}]   ;;  %s2415_s6 = inlined_call_operand.vmem [shape: f32[128,128], index: 6, kind: output, shape index: {}]  }
   0x1   :  { %29 = vst.msk [vmem:[#allocation2] sm:$0xff] %vm2416_vm0, %v1577_v0  ;;  %30 = vst.msk [vmem:[#allocation2 + $0x8] sm:$0xff] %vm2416_vm0, %v1577_v0  ;;  %p1318_p0 = scmp.le.s32.totalorder %s2409_s0, 0 }
   0x2   :  { %31 = vst.msk [vmem:[#allocation2 + $0x10] sm:$0xff] %vm2416_vm0, %v1577_v0  ;;  %32 = vst.msk [vmem:[#allocation2 + $0x18] sm:$0xff] %vm2416_vm0, %v1577_v0  ;;  %v84_v2 = vld [vmem:[%s2410_s1 + $0x8] sm:$0xff] (!%p1318_p0)  ;;  %v83_v3 = vld [vmem:[%s2410_s1] sm:$0xff] (!%p1318_p0)  ;;  %v1579_v4 = vmov (!%p1318_p0), 0  }
   0x3   :  { %33 = vst.msk [vmem:[#allocation2 + $0x20] sm:$0xff] %vm2416_vm0, %v1577_v0  ;;  %34 = vst.msk [vmem:[#allocation2 + $0x28] sm:$0xff] %vm2416_vm0, %v1577_v0  ;;  %1478 = vset.pattern.permute.xlu1 (!%p1318_p0), %v1579_v4  ;;  %1477 = vset.pattern.permute.xlu0 (!%p1318_p0), %v1579_v4  ;;  %v92_v5 = vld [vmem:[%s2410_s1 + $0x48] sm:$0xff] (!%p1318_p0)  ;;  %v91_v6 = vld [vmem:[%s2410_s1 + $0x40] sm:$0xff] (!%p1318_p0) }
   0x4   :  { %35 = vst.msk [vmem:[#allocation2 + $0x30] sm:$0xff] %vm2416_vm0, %v1577_v0  ;;  %36 = vst.msk [vmem:[#allocation2 + $0x38] sm:$0xff] %vm2416_vm0, %v1577_v0  ;;  %107 = vperm.xlu1 (!%p1318_p0), %1478, %v84_v2   ;;  %102 = vperm.xlu0 (!%p1318_p0), %1477, %v83_v3   ;;  %v93_v7 = vld [vmem:[%s2410_s1 + $0x50] sm:$0xff] (!%p1318_p0)  ;;  %v94_v9 = vld [vmem:[%s2410_s1 + $0x58] sm:$0xff] (!%p1318_p0) }
   0x5   :  { %37 = vst.msk [vmem:[#allocation2 + $0x40] sm:$0xff] %vm2416_vm0, %v1577_v0  ;;  %38 = vst.msk [vmem:[#allocation2 + $0x48] sm:$0xff] %vm2416_vm0, %v1577_v0  ;;  %v85_v8 = vld [vmem:[%s2410_s1 + $0x10] sm:$0xff] (!%p1318_p0)  ;;  %v86_v10 = vld [vmem:[%s2410_s1 + $0x18] sm:$0xff] (!%p1318_p0) }
   0x6   :  { %39 = vst.msk [vmem:[#allocation2 + $0x50] sm:$0xff] %vm2416_vm0, %v1577_v0  ;;  %40 = vst.msk [vmem:[#allocation2 + $0x58] sm:$0xff] %vm2416_vm0, %v1577_v0  ;;  %v95_v11 = vld [vmem:[%s2410_s1 + $0x60] sm:$0xff] (!%p1318_p0)  ;;  %v96_v13 = vld [vmem:[%s2410_s1 + $0x68] sm:$0xff] (!%p1318_p0) }
   0x7   :  { %41 = vst.msk [vmem:[#allocation2 + $0x60] sm:$0xff] %vm2416_vm0, %v1577_v0  ;;  %42 = vst.msk [vmem:[#allocation2 + $0x68] sm:$0xff] %vm2416_vm0, %v1577_v0  ;;  %v87_v12 = vld [vmem:[%s2410_s1 + $0x20] sm:$0xff] (!%p1318_p0)  ;;  %v88_v14 = vld [vmem:[%s2410_s1 + $0x28] sm:$0xff] (!%p1318_p0) }
   0x8   :  { %43 = vst.msk [vmem:[#allocation2 + $0x70] sm:$0xff] %vm2416_vm0, %v1577_v0  ;;  %44 = vst.msk [vmem:[#allocation2 + $0x78] sm:$0xff] %vm2416_vm0, %v1577_v0  ;;  %147 = vperm.xlu1 (!%p1318_p0), %1478, %v92_v5   ;;  %142 = vperm.xlu0 (!%p1318_p0), %1477, %v91_v6   ;;  %v97_v15 = vld [vmem:[%s2410_s1 + $0x70] sm:$0xff] (!%p1318_p0)  ;;  %v98_v17 = vld [vmem:[%s2410_s1 + $0x78] sm:$0xff] (!%p1318_p0) }
   0x9   :  { %45 = vst.msk [vmem:[#allocation3] sm:$0xff] %vm2416_vm0, %v1578_v1  ;;  %46 = vst.msk [vmem:[#allocation3 + $0x8] sm:$0xff] %vm2416_vm0, %v1578_v1  ;;  %v89_v16 = vld [vmem:[%s2410_s1 + $0x30] sm:$0xff] (!%p1318_p0)  ;;  %v90_v18 = vld [vmem:[%s2410_s1 + $0x38] sm:$0xff] (!%p1318_p0) }
   0xa   :  { %47 = vst.msk [vmem:[#allocation3 + $0x10] sm:$0xff] %vm2416_vm0, %v1578_v1  ;;  %48 = vst.msk [vmem:[#allocation3 + $0x18] sm:$0xff] %vm2416_vm0, %v1578_v1  ;;  %v250_v19 = vld [vmem:[%s2412_s3] sm:$0xff] (!%p1318_p0)  ;;  %v252_v20 = vld [vmem:[%s2412_s3 + $0x10] sm:$0xff] (!%p1318_p0) }
   0xb   :  { %49 = vst.msk [vmem:[#allocation3 + $0x20] sm:$0xff] %vm2416_vm0, %v1578_v1  ;;  %50 = vst.msk [vmem:[#allocation3 + $0x28] sm:$0xff] %vm2416_vm0, %v1578_v1  ;;  %vm254_vm1 = vnez (!%p1318_p0), %v250_v19  ;;  %vm256_vm2 = vnez (!%p1318_p0), %v252_v20  ;;  %v251_v32 = vld [vmem:[%s2412_s3 + $0x8] sm:$0xff] (!%p1318_p0)  ;;  %v253_v43 = vld [vmem:[%s2412_s3 + $0x18] sm:$0xff] (!%p1318_p0) }
   0xc   :  { %51 = vst.msk [vmem:[#allocation3 + $0x30] sm:$0xff] %vm2416_vm0, %v1578_v1  ;;  %52 = vst.msk [vmem:[#allocation3 + $0x38] sm:$0xff] %vm2416_vm0, %v1578_v1  ;;  %152 = vperm.xlu1 (!%p1318_p0), %1478, %v93_v7   ;;  %112 = vperm.xlu0 (!%p1318_p0), %1477, %v85_v8   ;;  %v258_v21 = vsel (!%p1318_p0), %vm254_vm1, 16843009, %v1579_v4  ;;  %v260_v22 = vsel (!%p1318_p0), %vm256_vm2, 16843009, %v1579_v4  ;;  %vm255_vm3 = vnez (!%p1318_p0), %v251_v32  ;;  %vm257_vm7 = vnez (!%p1318_p0), %v253_v43 }
   0xd   :  { %53 = vst.msk [vmem:[#allocation3 + $0x40] sm:$0xff] %vm2416_vm0, %v1578_v1  ;;  %54 = vst.msk [vmem:[#allocation3 + $0x48] sm:$0xff] %vm2416_vm0, %v1578_v1  ;;  %v262_v23 = vunpack.c.0.s8 (!%p1318_p0), %v258_v21  ;;  %v263_v24 = vunpack.c.1.s8 (!%p1318_p0), %v258_v21  ;;  %v270_v25 = vunpack.c.0.s8 (!%p1318_p0), %v260_v22  ;;  %v271_v28 = vunpack.c.1.s8 (!%p1318_p0), %v260_v22  ;;  %v1734_v2 = vld [vmem:[%s2411_s2] ss:$0 sm:$0xff] (!%p1318_p0) }
   0xe   :  { %55 = vst.msk [vmem:[#allocation3 + $0x50] sm:$0xff] %vm2416_vm0, %v1578_v1  ;;  %56 = vst.msk [vmem:[#allocation3 + $0x58] sm:$0xff] %vm2416_vm0, %v1578_v1  ;;  %v264_v30 = vunpack.c.2.s8 (!%p1318_p0), %v258_v21  ;;  %v272_v31 = vunpack.c.2.s8 (!%p1318_p0), %v260_v22  ;;  %v265_v33 = vunpack.c.3.s8 (!%p1318_p0), %v258_v21  ;;  %v273_v34 = vunpack.c.3.s8 (!%p1318_p0), %v260_v22 }
   0xf   :  { %57 = vst.msk [vmem:[#allocation3 + $0x60] sm:$0xff] %vm2416_vm0, %v1578_v1  ;;  %58 = vst.msk [vmem:[#allocation3 + $0x68] sm:$0xff] %vm2416_vm0, %v1578_v1  ;;  %v278_v26 = vpack.c.b16 (!%p1318_p0), %v262_v23, %v262_v23  ;;  %v280_v27 = vpack.c.b16 (!%p1318_p0), %v263_v24, %v263_v24  ;;  %v294_v29 = vpack.c.b16 (!%p1318_p0), %v270_v25, %v270_v25  ;;  %v1716_v45 = vsel (!%p1318_p0), %vm255_vm3, 16843009, %v1579_v4 }
  0x10   :  { %59 = vst.msk [vmem:[#allocation3 + $0x70] sm:$0xff] %vm2416_vm0, %v1578_v1  ;;  %60 = vst.msk [vmem:[#allocation3 + $0x78] sm:$0xff] %vm2416_vm0, %v1578_v1  ;;  %157 = vperm.xlu1 (!%p1318_p0), %1478, %v94_v9   ;;  %117 = vperm.xlu0 (!%p1318_p0), %1477, %v86_v10   ;;  %v296_v37 = vpack.c.b16 (!%p1318_p0), %v271_v28, %v271_v28  ;;  %v282_v39 = vpack.c.b16 (!%p1318_p0), %v264_v30, %v264_v30  ;;  %v266_v51 = vunpack.c.0.s8 (!%p1318_p0), %v1716_v45 }
  0x11   :  { %61 = vst [vmem:[#allocation4] sm:$0xff] %v1578_v1  ;;  %62 = vst [vmem:[#allocation4 + $0x8] sm:$0xff] %v1578_v1  ;;  %v279_v35 = vpack.c.b8 (!%p1318_p0), %v278_v26, %v278_v26  ;;  %v281_v36 = vpack.c.b8 (!%p1318_p0), %v280_v27, %v280_v27  ;;  %v295_v38 = vpack.c.b8 (!%p1318_p0), %v294_v29, %v294_v29  ;;  %v1723_v54 = vsel (!%p1318_p0), %vm257_vm7, 16843009, %v1579_v4 }
  0x12   :  { %63 = vst [vmem:[#allocation4 + $0x10] sm:$0xff] %v1578_v1  ;;  %64 = vst [vmem:[#allocation4 + $0x18] sm:$0xff] %v1578_v1  ;;  %82 = sbr.rel (%p1318_p0) target bundleno = 673 (0x2a1), region = 29  ;;  %v298_v40 = vpack.c.b16 (!%p1318_p0), %v272_v31, %v272_v31  ;;  %v284_v41 = vpack.c.b16 (!%p1318_p0), %v265_v33, %v265_v33  ;;  %v300_v42 = vpack.c.b16 (!%p1318_p0), %v273_v34, %v273_v34  ;;  %v267_v55 = vunpack.c.1.s8 (!%p1318_p0), %v1716_v45 }
  0x13   :  { %65 = vst [vmem:[#allocation4 + $0x20] sm:$0xff] %v1578_v1  ;;  %66 = vst [vmem:[#allocation4 + $0x28] sm:$0xff] %v1578_v1  ;;  %vm310_vm4 = vnez (!%p1318_p0), %v279_v35  ;;  %vm311_vm5 = vnez (!%p1318_p0), %v281_v36  ;;  %v297_v44 = vpack.c.b8 (!%p1318_p0), %v296_v37, %v296_v37  ;;  %vm318_vm6 = vnez (!%p1318_p0), %v295_v38 }
  0x14   :  { %67 = vst [vmem:[#allocation4 + $0x30] sm:$0xff] %v1578_v1  ;;  %68 = vst [vmem:[#allocation4 + $0x38] sm:$0xff] %v1578_v1  ;;  %162 = vperm.xlu1 (!%p1318_p0), %1478, %v95_v11   ;;  %122 = vperm.xlu0 (!%p1318_p0), %1477, %v87_v12   ;;  %v283_v46 = vpack.c.b8 (!%p1318_p0), %v282_v39, %v282_v39  ;;  %v299_v47 = vpack.c.b8 (!%p1318_p0), %v298_v40, %v298_v40  ;;  %v326_v48 = vsel (!%p1318_p0), %vm310_vm4, 16843009, %v1579_v4 }
  0x15   :  { %69 = vst [vmem:[#allocation4 + $0x40] sm:$0xff] %v1578_v1  ;;  %70 = vst [vmem:[#allocation4 + $0x48] sm:$0xff] %v1578_v1  ;;  %v327_v49 = vsel (!%p1318_p0), %vm311_vm5, 16843009, %v1579_v4  ;;  %v285_v50 = vpack.c.b8 (!%p1318_p0), %v284_v41, %v284_v41  ;;  %v334_v52 = vsel (!%p1318_p0), %vm318_vm6, 16843009, %v1579_v4  ;;  %vm319_vm8 = vnez (!%p1318_p0), %v297_v44 }
  0x16   :  { %71 = vst [vmem:[#allocation4 + $0x50] sm:$0xff] %v1578_v1  ;;  %72 = vst [vmem:[#allocation4 + $0x58] sm:$0xff] %v1578_v1  ;;  %v301_v53 = vpack.c.b8 (!%p1318_p0), %v300_v42, %v300_v42  ;;  %vm312_vm9 = vnez (!%p1318_p0), %v283_v46  ;;  %v342_v56 = vunpack.c.0.s8 (!%p1318_p0), %v326_v48  ;;  %v343_v57 = vunpack.c.0.s8 (!%p1318_p0), %v327_v49 }
  0x17   :  { %73 = vst [vmem:[#allocation4 + $0x60] sm:$0xff] %v1578_v1  ;;  %74 = vst [vmem:[#allocation4 + $0x68] sm:$0xff] %v1578_v1  ;;  %vm320_vm10 = vnez (!%p1318_p0), %v299_v47  ;;  %v268_v58 = vunpack.c.2.s8 (!%p1318_p0), %v1716_v45  ;;  %v350_v59 = vunpack.c.0.s8 (!%p1318_p0), %v334_v52  ;;  %v335_v60 = vsel (!%p1318_p0), %vm319_vm8, 16843009, %v1579_v4 }
  0x18   :  { %75 = vst [vmem:[#allocation4 + $0x70] sm:$0xff] %v1578_v1  ;;  %76 = vst [vmem:[#allocation4 + $0x78] sm:$0xff] %v1578_v1  ;;  %167 = vperm.xlu1 (!%p1318_p0), %1478, %v96_v13   ;;  %127 = vperm.xlu0 (!%p1318_p0), %1477, %v88_v14   ;;  %vm313_vm11 = vnez (!%p1318_p0), %v285_v50  ;;  %v286_v61 = vpack.c.b16 (!%p1318_p0), %v266_v51, %v266_v51  ;;  %v328_v62 = vsel (!%p1318_p0), %vm312_vm9, 16843009, %v1579_v4  ;;  %vm321_vm12 = vnez (!%p1318_p0), %v301_v53 }
  0x19   :  { %v274_v63 = vunpack.c.0.s8 %v1723_v54  ;;  %v336_v0 = vsel %vm320_vm10, 16843009, %v1579_v4  ;;  %v288_v1 = vpack.c.b16 %v267_v55, %v267_v55  ;;  %vm1736_vm13 = vcmp.ne.s32.totalorder %v342_v56, 0 }
  0x1a   :  { %v351_v5 = vunpack.c.0.s8 %v335_v60  ;;  %v329_v6 = vsel %vm313_vm11, 16843009, %v1579_v4  ;;  %v290_v7 = vpack.c.b16 %v268_v58, %v268_v58  ;;  %vm1741_vm14 = vcmp.ne.s32.totalorder %v343_v57, 0 }
  0x1b   :  { %vm1745_vm15 = vcmp.ne.s32.totalorder %v350_v59, 0  ;;  %v344_v10 = vunpack.c.0.s8 %v328_v62  ;;  %v1750_v11 = vsel %vm321_vm12, 16843009, %v1579_v4  ;;  %v287_v12 = vpack.c.b8 %v286_v61, %v286_v61 }
  0x1c   :  { %172 = vperm.xlu1 %1478, %v97_v15   ;;  %132 = vperm.xlu0 %1477, %v89_v16   ;;  %v352_v15 = vunpack.c.0.s8 %v336_v0  ;;  %v302_v16 = vpack.c.b16 %v274_v63, %v274_v63  ;;  %v345_v21 = vunpack.c.0.s8 %v329_v6  ;;  %v289_v22 = vpack.c.b8 %v288_v1, %v288_v1 }
  0x1d   :  { %v353_v23 = vunpack.c.0.s8 %v1750_v11  ;;  %v291_v24 = vpack.c.b8 %v290_v7, %v290_v7  ;;  %v269_v25 = vunpack.c.3.s8 %v1716_v45  ;;  %v277_v26 = vunpack.c.3.s8 %v1723_v54 }
  0x1e   :  { %vm1759_vm2 = vcmp.ne.s32.totalorder %v351_v5, 0  ;;  %vm1763_vm3 = vcmp.ne.s32.totalorder %v344_v10, 0  ;;  %vm314_vm4 = vnez %v287_v12  ;;  %v303_v33 = vpack.c.b8 %v302_v16, %v302_v16 }
  0x1f   :  { %vm315_vm6 = vnez %v289_v22  ;;  %v330_v40 = vsel %vm314_vm4, 16843009, %v1579_v4  ;;  %vm1776_vm7 = vnez %v291_v24  ;;  %v292_v42 = vpack.c.b16 %v269_v25, %v269_v25 }
  0x20   :  { %177 = vperm.xlu1 %1478, %v98_v17   ;;  %137 = vperm.xlu0 %1477, %v90_v18   ;;  %v275_v17 = vunpack.c.1.s8 %v1723_v54  ;;  %v276_v18 = vunpack.c.2.s8 %v1723_v54  ;;  %vm1781_vm9 = vcmp.ne.s32.totalorder %v352_v15, 0  ;;  %vm1785_vm10 = vcmp.ne.s32.totalorder %v345_v21, 0 }
  0x21   :  { %v331_v50 = vsel %vm315_vm6, 16843009, %v1579_v4  ;;  %v1790_v52 = vpack.c.b16 %v277_v26, %v277_v26  ;;  %vm322_vm12 = vnez %v303_v33  ;;  %v346_v58 = vunpack.c.0.s8 %v330_v40 }
  0x22   :  { %v304_v34 = vpack.c.b16 %v275_v17, %v275_v17  ;;  %v1767_v35 = vpack.c.b16 %v276_v18, %v276_v18  ;;  %v1805_v59 = vsel %vm1776_vm7, 16843009, %v1579_v4  ;;  %vm1810_vm4 = vcmp.ne.s32.totalorder %v353_v23, 0 }
  0x23   :  { %v338_v5 = vsel %vm322_vm12, 16843009, %v1579_v4  ;;  %v347_v6 = vunpack.c.0.s8 %v331_v50  ;;  %v348_v16 = vunpack.c.0.s8 %v1805_v59  ;;  %v293_v17 = vpack.c.b8 %v292_v42, %v292_v42 }
  0x24   :  { %v305_v51 = vpack.c.b8 %v304_v34, %v304_v34  ;;  %v2443_v23 = vmov 0  ;;  %v354_v24 = vunpack.c.0.s8 %v338_v5 }
  0x25   :  { %vm1869_vm0 = vcmp.ne.s32.totalorder %v347_v6, 0 }
  0x26   :  { %vm1815_vm6 = vnez %v305_v51 }
  0x27   :  { %v339_v25 = vsel %vm1815_vm6, 16843009, %v1579_v4 }
  0x83   :  { %v108_v13 = vpop.permute.xlu1 %107  ;;  %v103_v14 = vpop.permute.xlu0 %102 }
  0x84   :  { %v187_v19 = vadd.f32 %v1734_v2, %v108_v13  ;;  %v186_v20 = vadd.f32 %v1734_v2, %v103_v14  ;;  %v307_v13 = vpack.c.b8 %v1767_v35, %v1767_v35  ;;  %v309_v35 = vpack.c.b8 %v1790_v52, %v1790_v52 }
  0x86   :  { %v219_v27 = vmul.f32 0.2, %v187_v19  ;;  %v218_v28 = vmul.f32 0.2, %v186_v20  ;;  %vm202_vm1 = vcmp.gt.f32.partialorder %v186_v20, 0.0  ;;  %vm203_vm5 = vcmp.gt.f32.partialorder %v187_v19, 0.0 }
  0x87   :  { %v148_v31 = vpop.permute.xlu1 %147  ;;  %v143_v32 = vpop.permute.xlu0 %142  ;;  %vm1844_vm12 = vnez %v307_v13 }
  0x88   :  { %v195_v36 = vadd.f32 %v1734_v2, %v148_v31  ;;  %v194_v37 = vadd.f32 %v1734_v2, %v143_v32  ;;  %v234_v38 = vsel %vm202_vm1, %v186_v20, %v218_v28  ;;  %v235_v45 = vsel %vm203_vm5, %v187_v19, %v219_v27 }
  0x89   :  { %v1773_v39 = vsel %vm1736_vm13, %v234_v38, -1e+30  ;;  %v1796_v56 = vsel %vm1741_vm14, %v235_v45, -1e+30  ;;  %v340_v50 = vsel %vm1844_vm12, 16843009, %v1579_v4 }
  0x8a   :  { %v227_v43 = vmul.f32 0.2, %v195_v36  ;;  %v226_v44 = vmul.f32 0.2, %v194_v37  ;;  %406 = vmax.xlane.f32.xlu0 %v1773_v39  ;;  %vm210_vm8 = vcmp.gt.f32.partialorder %v194_v37, 0.0  ;;  %vm211_vm11 = vcmp.gt.f32.partialorder %v195_v36, 0.0 }
  0x8b   :  { %v153_v48 = vpop.permute.xlu1 %152  ;;  %v113_v49 = vpop.permute.xlu0 %112  ;;  %v356_v7 = vunpack.c.0.s8 %v340_v50  ;;  %v858_v50 = vld [vmem:[%s2413_s4 + $0x18] sm:$0xff] }
  0x8c   :  { %v196_v53 = vadd.f32 %v1734_v2, %v153_v48  ;;  %v188_v54 = vadd.f32 %v1734_v2, %v113_v49  ;;  %v242_v55 = vsel %vm210_vm8, %v194_v37, %v226_v44  ;;  %v243_v62 = vsel %vm211_vm11, %v195_v36, %v227_v43 }
  0x8d   :  { %v1800_v57 = vsel %vm1745_vm15, %v242_v55, -1e+30  ;;  %v1825_v14 = vsel %vm1759_vm2, %v243_v62, -1e+30  ;;  %vm1835_vm11 = vcmp.ne.s32.totalorder %v346_v58, 0  ;;  %v2451_v43 = vmov 0 }
  0x8e   :  { %v228_v60 = vmul.f32 0.2, %v196_v53  ;;  %v220_v61 = vmul.f32 0.2, %v188_v54  ;;  %408 = vmax.xlane.f32.xlu0 %v1796_v56  ;;  %422 = vmax.xlane.f32.xlu1 %v1800_v57  ;;  %vm204_vm1 = vcmp.gt.f32.partialorder %v188_v54, 0.0  ;;  %vm212_vm5 = vcmp.gt.f32.partialorder %v196_v53, 0.0 }
  0x8f   :  { %v158_v0 = vpop.permute.xlu1 %157  ;;  %v118_v1 = vpop.permute.xlu0 %117  ;;  %v2444_v23 = vsel %vm1835_vm11, 4294967295, %v2443_v23  ;;  %v2452_v43 = vsel %vm1869_vm0, 4294967295, %v2451_v43  ;;  %v355_v44 = vunpack.c.0.s8 %v339_v25 }
  0x90   :  { %v197_v10 = vadd.f32 %v1734_v2, %v158_v0  ;;  %v189_v11 = vadd.f32 %v1734_v2, %v118_v1  ;;  %v236_v12 = vsel %vm204_vm1, %v188_v54, %v220_v61  ;;  %v244_v20 = vsel %vm212_vm5, %v196_v53, %v228_v60  ;;  %v859_v54 = vld [vmem:[%s2413_s4 + $0x20] sm:$0xff] }
  0x91   :  { %v1829_v15 = vsel %vm1763_vm3, %v236_v12, -1e+30  ;;  %v1850_v32 = vsel %vm1781_vm9, %v244_v20, -1e+30  ;;  %vm1856_vm1 = vnez %v293_v17  ;;  %v2457_v0 = vmov 0 }
  0x92   :  { %v229_v18 = vmul.f32 0.2, %v197_v10  ;;  %v221_v19 = vmul.f32 0.2, %v189_v11  ;;  %424 = vmax.xlane.f32.xlu0 %v1825_v14  ;;  %410 = vmax.xlane.f32.xlu1 %v1829_v15  ;;  %vm205_vm7 = vcmp.gt.f32.partialorder %v189_v11, 0.0  ;;  %vm213_vm8 = vcmp.gt.f32.partialorder %v197_v10, 0.0 }
  0x93   :  { %v163_v21 = vpop.permute.xlu1 %162  ;;  %v123_v22 = vpop.permute.xlu0 %122  ;;  %v333_v53 = vsel %vm1856_vm1, 16843009, %v1579_v4  ;;  %vm1900_vm1 = vcmp.ne.s32.totalorder %v348_v16, 0 }
  0x94   :  { %v198_v26 = vadd.f32 %v1734_v2, %v163_v21  ;;  %v190_v27 = vadd.f32 %v1734_v2, %v123_v22  ;;  %v237_v28 = vsel %vm205_vm7, %v189_v11, %v221_v19  ;;  %v245_v38 = vsel %vm213_vm8, %v197_v10, %v229_v18 }
  0x95   :  { %v1854_v33 = vsel %vm1785_vm10, %v237_v28, -1e+30  ;;  %vm1865_vm7 = vcmp.ne.s32.totalorder %v354_v24, 0  ;;  %v1880_v51 = vsel %vm1810_vm4, %v245_v38, -1e+30  ;;  %vm1889_vm8 = vnez %v309_v35 }
  0x96   :  { %v230_v36 = vmul.f32 0.2, %v198_v26  ;;  %v222_v37 = vmul.f32 0.2, %v190_v27  ;;  %426 = vmax.xlane.f32.xlu0 %v1850_v32  ;;  %412 = vmax.xlane.f32.xlu1 %v1854_v33  ;;  %vm206_vm5 = vcmp.gt.f32.partialorder %v190_v27, 0.0  ;;  %vm214_vm6 = vcmp.gt.f32.partialorder %v198_v26, 0.0 }
  0x97   :  { %v168_v40 = vpop.permute.xlu1 %167  ;;  %v128_v41 = vpop.permute.xlu0 %127  ;;  %v2458_v0 = vsel %vm1900_vm1, 4294967295, %v2457_v0  ;;  %v349_v12 = vunpack.c.0.s8 %v333_v53  ;;  %v341_v13 = vsel %vm1889_vm8, 16843009, %v1579_v4 }
  0x98   :  { %v199_v45 = vadd.f32 %v1734_v2, %v168_v40  ;;  %v191_v48 = vadd.f32 %v1734_v2, %v128_v41  ;;  %v238_v49 = vsel %vm206_vm5, %v190_v27, %v222_v37  ;;  %v246_v59 = vsel %vm214_vm6, %v198_v26, %v230_v36 }
  0x99   :  { %v1884_v52 = vsel %vm1835_vm11, %v238_v49, -1e+30  ;;  %vm1896_vm11 = vcmp.ne.s32.totalorder %v355_v44, 0  ;;  %v1908_v10 = vsel %vm1865_vm7, %v246_v59, -1e+30  ;;  %vm1933_vm8 = vcmp.ne.s32.totalorder %v349_v12, 0 }
  0x9a   :  { %v231_v55 = vmul.f32 0.2, %v199_v45  ;;  %v223_v58 = vmul.f32 0.2, %v191_v48  ;;  %428 = vmax.xlane.f32.xlu0 %v1880_v51  ;;  %414 = vmax.xlane.f32.xlu1 %v1884_v52  ;;  %vm207_vm12 = vcmp.gt.f32.partialorder %v191_v48, 0.0  ;;  %vm215_vm5 = vcmp.gt.f32.partialorder %v199_v45, 0.0 }
  0x9b   :  { %v173_v60 = vpop.permute.xlu1 %172  ;;  %v133_v61 = vpop.permute.xlu0 %132  ;;  %v357_v28 = vunpack.c.0.s8 %v341_v13  ;;  %v855_v44 = vld [vmem:[%s2413_s4] sm:$0xff]  ;;  %v861_v59 = vld [vmem:[%s2413_s4 + $0x30] sm:$0xff]  ;;  %v1989_v12 = vld [vmem:[#allocation2 + $0x8] sm:$0xff] }
  0x9c   :  { %v200_v1 = vadd.f32 %v1734_v2, %v173_v60  ;;  %v192_v5 = vadd.f32 %v1734_v2, %v133_v61  ;;  %v239_v6 = vsel %vm207_vm12, %v191_v48, %v223_v58  ;;  %v247_v18 = vsel %vm215_vm5, %v199_v45, %v231_v55  ;;  %v856_v45 = vld [vmem:[%s2413_s4 + $0x8] sm:$0xff]  ;;  %v857_v48 = vld [vmem:[%s2413_s4 + $0x10] sm:$0xff]  ;;  %v862_v60 = vld [vmem:[%s2413_s4 + $0x38] sm:$0xff] }
  0x9d   :  { %v1912_v11 = vsel %vm1869_vm0, %v239_v6, -1e+30  ;;  %vm1921_vm0 = vcmp.ne.s32.totalorder %v356_v7, 0  ;;  %v1927_v4 = vsel %vm1896_vm11, %v247_v18, -1e+30  ;;  %v1425_v49 = vpack.c.bf16 %v856_v45, %v855_v44  ;;  %v860_v55 = vld [vmem:[%s2413_s4 + $0x28] sm:$0xff] }
  0x9e   :  { %v232_v16 = vmul.f32 0.2, %v200_v1  ;;  %v224_v17 = vmul.f32 0.2, %v192_v5  ;;  %430 = vmax.xlane.f32.xlu0 %v1908_v10  ;;  %416 = vmax.xlane.f32.xlu1 %v1912_v11  ;;  %vm208_vm6 = vcmp.gt.f32.partialorder %v192_v5, 0.0  ;;  %vm216_vm12 = vcmp.gt.f32.partialorder %v200_v1, 0.0 }
  0x9f   :  { %v178_v19 = vpop.permute.xlu1 %177  ;;  %v138_v20 = vpop.permute.xlu0 %137  ;;  %v1429_v53 = vpack.c.bf16 %v858_v50, %v857_v48  ;;  %1426 = vmatprep.subr.bf16.mxu0 %v1425_v49  ;;  %1457 = vmatprep.subr.bf16.mxu1 %v1425_v49  ;;  %v1433_v58 = vpack.c.bf16 %v860_v55, %v859_v54  ;;  %v1437_v61 = vpack.c.bf16 %v862_v60, %v861_v59  ;;  %v1987_v7 = vld [vmem:[#allocation2 + $0x40] sm:$0xff]  ;;  %v864_v18 = vld [vmem:[%s2413_s4 + $0x48] sm:$0xff]  ;;  %v2024_v44 = vld [vmem:[#allocation2 + $0x18] sm:$0xff] }
  0xa0   :  { %v201_v21 = vadd.f32 %v1734_v2, %v178_v19  ;;  %v193_v22 = vadd.f32 %v1734_v2, %v138_v20  ;;  %v240_v24 = vsel %vm208_vm6, %v192_v5, %v224_v17  ;;  %v248_v34 = vsel %vm216_vm12, %v200_v1, %v232_v16  ;;  %1428 = vmatpush3.bf16.msra.mxu0 %v1425_v49  ;;  %v1982_v1 = vld [vmem:[#allocation2] sm:$0xff]  ;;  %v2026_v45 = vld [vmem:[#allocation2 + $0x50] sm:$0xff]  ;;  %v868_v54 = vld [vmem:[%s2413_s4 + $0x68] sm:$0xff] }
  0xa1   :  { %v1931_v26 = vsel %vm1900_vm1, %v240_v24, -1e+30  ;;  %v1941_v36 = vsel %vm1921_vm0, %v248_v34, -1e+30  ;;  %vm1949_vm1 = vcmp.ne.s32.totalorder %v357_v28, 0  ;;  %1465 = vmatpush3.bf16.msra.mxu1 %v1425_v49  ;;  %1430 = vmatprep.subr.bf16.mxu0 %v1429_v53  ;;  %vm2465_vm12 = vcmask 7168  }
  0xa2   :  { %v233_v31 = vmul.f32 0.2, %v201_v21  ;;  %v225_v2 = vmul.f32 0.2, %v193_v22  ;;  %432 = vmax.xlane.f32.xlu0 %v1927_v4  ;;  %418 = vmax.xlane.f32.xlu1 %v1931_v26  ;;  %vm209_vm5 = vcmp.gt.f32.partialorder %v193_v22, 0.0  ;;  %vm217_vm6 = vcmp.gt.f32.partialorder %v201_v21, 0.0 }
  0xa3   :  { %1458 = vmatprep.subr.bf16.mxu1 %v1429_v53  ;;  %v863_v17 = vld [vmem:[%s2413_s4 + $0x40] sm:$0xff]  ;;  %v2006_v24 = vld [vmem:[#allocation2 + $0x48] sm:$0xff]  ;;  %v866_v34 = vld [vmem:[%s2413_s4 + $0x58] sm:$0xff] }
  0xa4   :  { %v241_v35 = vsel %vm209_vm5, %v193_v22, %v225_v2  ;;  %v249_v38 = vsel %vm217_vm6, %v201_v21, %v233_v31  ;;  %1432 = vmatpush3.bf16.msra.mxu0 %v1429_v53  ;;  %v1441_v21 = vpack.c.bf16 %v864_v18, %v863_v17  ;;  %v2004_v22 = vld [vmem:[#allocation2 + $0x10] sm:$0xff]  ;;  %vm2466_vm5 = vmmov %vm2465_vm12  ;;  %v394_v59 = vld [vmem:[#allocation2 + $0x20] sm:$0xff] }
  0xa5   :  { %v1945_v37 = vsel %vm1933_vm8, %v241_v35, -1e+30  ;;  %v1955_v41 = vsel %vm1949_vm1, %v249_v38, -1e+30  ;;  %1466 = vmatpush3.bf16.msra.mxu1 %v1429_v53  ;;  %1434 = vmatprep.subr.bf16.mxu0 %v1433_v58  ;;  %vm2467_vm6 = vmmov %vm2466_vm5  ;;  %v865_v2 = vld [vmem:[%s2413_s4 + $0x50] sm:$0xff]  ;;  %v867_v53 = vld [vmem:[%s2413_s4 + $0x60] sm:$0xff] }
  0xa6   :  { %434 = vmax.xlane.f32.xlu0 %v1941_v36  ;;  %420 = vmax.xlane.f32.xlu1 %v1945_v37  ;;  %v1445_v48 = vpack.c.bf16 %v866_v34, %v865_v2  ;;  %v2046_v60 = vld [vmem:[#allocation2 + $0x58] sm:$0xff]  ;;  %v869_v17 = vld [vmem:[%s2413_s4 + $0x70] sm:$0xff] }
  0xa7   :  { %1459 = vmatprep.subr.bf16.mxu1 %v1433_v58  ;;  %v870_v18 = vld [vmem:[%s2413_s4 + $0x78] sm:$0xff] }
  0xa8   :  { %1436 = vmatpush3.bf16.msra.mxu0 %v1433_v58 }
  0xa9   :  { %1467 = vmatpush3.bf16.msra.mxu1 %v1433_v58  ;;  %1438 = vmatprep.subr.bf16.mxu0 %v1437_v61 }
  0xaa   :  { %436 = vmax.xlane.f32.xlu0 %v1955_v41  ;;  %1460 = vmatprep.subr.bf16.mxu1 %v1437_v61 }
  0xac   :  { %1440 = vmatpush3.bf16.msra.mxu0 %v1437_v61 }
  0xad   :  { %1468 = vmatpush3.bf16.msra.mxu1 %v1437_v61  ;;  %1442 = vmatprep.subr.bf16.mxu0 %v1441_v21  ;;  %v1449_v61 = vpack.c.bf16 %v868_v54, %v867_v53 }
  0xae   :  { %1461 = vmatprep.subr.bf16.mxu1 %v1441_v21 }
  0xb0   :  { %1444 = vmatpush3.bf16.msra.mxu0 %v1441_v21 }
  0xb1   :  { %1469 = vmatpush3.bf16.msra.mxu1 %v1441_v21  ;;  %1446 = vmatprep.subr.bf16.mxu0 %v1445_v48 }
  0xb2   :  { %1462 = vmatprep.subr.bf16.mxu1 %v1445_v48 }
  0xb4   :  { %1448 = vmatpush3.bf16.msra.mxu0 %v1445_v48 }
  0xb5   :  { %1470 = vmatpush3.bf16.msra.mxu1 %v1445_v48  ;;  %1450 = vmatprep.subr.bf16.mxu0 %v1449_v61 }
  0xb6   :  { %1463 = vmatprep.subr.bf16.mxu1 %v1449_v61 }
  0xb8   :  { %1452 = vmatpush3.bf16.msra.mxu0 %v1449_v61 }
  0xb9   :  { %1471 = vmatpush3.bf16.msra.mxu1 %v1449_v61 }
 0x117   :  { %v407_v5 = vpop.xlane.xlu0 %406 }
 0x118   :  { %v1985_v6 = vmax.f32 %v1982_v1, %v407_v5 }
 0x11a   :  { %1048 = vst.msk [vmem:[#allocation2] sm:$0xff] %vm2465_vm12, %v1985_v6  ;;  %504 = vperm.xlu1 %1478, %v1985_v6   ;;  %vm2468_vm12 = vmmov %vm2466_vm5  ;;  %v454_v2 = vsub.f32 %v1982_v1, %v1985_v6  ;;  %v396_v1 = vld [vmem:[#allocation2 + $0x30] sm:$0xff]  ;;  %v2076_v6 = vld [vmem:[#allocation2 + $0x68] sm:$0xff] }
 0x11b   :  { %v423_v13 = vpop.xlane.xlu1 %422  ;;  %v409_v16 = vpop.xlane.xlu0 %408 }
 0x11c   :  { %v2001_v19 = vmax.f32 %v1987_v7, %v423_v13  ;;  %v439_v20 = vmax.f32 %v1989_v12, %v409_v16  ;;  %v470_v61 = vmul.f32 1.442695, %v454_v2 }
 0x11e   :  { %1056 = vst.msk [vmem:[#allocation2 + $0x40] sm:$0xff] %vm2466_vm5, %v2001_v19  ;;  %544 = vperm.xlu0 %1477, %v2001_v19   ;;  %509 = vperm.xlu1 %1478, %v439_v20   ;;  %v455_v5 = vsub.f32 %v1989_v12, %v439_v20  ;;  %v2066_v12 = vld [vmem:[#allocation2 + $0x60] sm:$0xff]  ;;  %v462_v2 = vsub.f32 %v1987_v7, %v2001_v19  ;;  %v2098_v19 = vld [vmem:[#allocation2 + $0x78] sm:$0xff] }
 0x11f   :  { %1049 = vst.msk [vmem:[#allocation2 + $0x8] sm:$0xff] %vm2467_vm6, %v439_v20  ;;  %v411_v28 = vpop.xlane.xlu1 %410  ;;  %v425_v31 = vpop.xlane.xlu0 %424  ;;  %vm2469_vm6 = vmmov %vm2466_vm5  ;;  %v1453_v20 = vpack.c.bf16 %v870_v18, %v869_v17 }
 0x120   :  { %v2019_v35 = vmax.f32 %v2004_v22, %v411_v28  ;;  %v2022_v38 = vmax.f32 %v2006_v24, %v425_v31  ;;  %v2064_v31 = vld [vmem:[#allocation2 + $0x28] sm:$0xff]  ;;  %v472_v34 = vmul.f32 1.442695, %v455_v5 }
 0x121   :  { %1454 = vmatprep.subr.bf16.mxu0 %v1453_v20  ;;  %1464 = vmatprep.subr.bf16.mxu1 %v1453_v20 }
 0x122   :  { %1050 = vst.msk [vmem:[#allocation2 + $0x10] sm:$0xff] %vm2468_vm12, %v2019_v35  ;;  %514 = vperm.xlu0 %1477, %v2019_v35   ;;  %549 = vperm.xlu1 %1478, %v2022_v38   ;;  %vm2470_vm12 = vmmov %vm2466_vm5  ;;  %1479 = vpow2.f32 %v472_v34 }
 0x123   :  { %1057 = vst.msk [vmem:[#allocation2 + $0x48] sm:$0xff] %vm2466_vm5, %v2022_v38  ;;  %v413_v49 = vpop.xlane.xlu1 %412  ;;  %v427_v50 = vpop.xlane.xlu0 %426  ;;  %1456 = vmatpush3.bf16.msra.mxu0 %v1453_v20  ;;  %1472 = vmatpush3.bf16.msra.mxu1 %v1453_v20  ;;  %v2085_v20 = vld [vmem:[#allocation2 + $0x70] sm:$0xff]  ;;  %1481 = vpow2.f32 %v470_v61 }
 0x124   :  { %v2041_v55 = vmax.f32 %v2024_v44, %v413_v49  ;;  %v2044_v58 = vmax.f32 %v2026_v45, %v427_v50 }
 0x126   :  { %1051 = vst.msk [vmem:[#allocation2 + $0x18] sm:$0xff] %vm2469_vm6, %v2041_v55  ;;  %519 = vperm.xlu0 %1477, %v2041_v55   ;;  %554 = vperm.xlu1 %1478, %v2044_v58   ;;  %vm2471_vm6 = vmmov %vm2466_vm5 }
 0x127   :  { %1058 = vst.msk [vmem:[#allocation2 + $0x50] sm:$0xff] %vm2470_vm12, %v2044_v58  ;;  %v415_v13 = vpop.xlane.xlu1 %414  ;;  %v429_v16 = vpop.xlane.xlu0 %428  ;;  %vm2472_vm12 = vmmov %vm2466_vm5 }
 0x128   :  { %v442_v21 = vmax.f32 %v394_v59, %v415_v13  ;;  %v2062_v28 = vmax.f32 %v2046_v60, %v429_v16 }
 0x12a   :  { %1052 = vst.msk [vmem:[#allocation2 + $0x20] sm:$0xff] %vm2466_vm5, %v442_v21  ;;  %524 = vperm.xlu0 %1477, %v442_v21   ;;  %559 = vperm.xlu1 %1478, %v2062_v28   ;;  %v458_v48 = vsub.f32 %v394_v59, %v442_v21  ;;  %v456_v59 = vsub.f32 %v2004_v22, %v2019_v35  ;;  %v397_v21 = vld [vmem:[#allocation2 + $0x38] sm:$0xff] }
 0x12b   :  { %1059 = vst.msk [vmem:[#allocation2 + $0x58] sm:$0xff] %vm2471_vm6, %v2062_v28  ;;  %v417_v49 = vpop.xlane.xlu1 %416  ;;  %v431_v50 = vpop.xlane.xlu0 %430  ;;  %vm2473_vm6 = vmmov %vm2466_vm5  ;;  %v457_v35 = vsub.f32 %v2024_v44, %v2041_v55 }
 0x12c   :  { %v443_v53 = vmax.f32 %v2064_v31, %v417_v49  ;;  %v450_v54 = vmax.f32 %v2066_v12, %v431_v50  ;;  %v478_v5 = vmul.f32 1.442695, %v458_v48  ;;  %v474_v22 = vmul.f32 1.442695, %v456_v59 }
 0x12d   :  { %v476_v55 = vmul.f32 1.442695, %v457_v35 }
 0x12e   :  { %1053 = vst.msk [vmem:[#allocation2 + $0x28] sm:$0xff] %vm2472_vm12, %v443_v53  ;;  %529 = vperm.xlu0 %1477, %v443_v53   ;;  %564 = vperm.xlu1 %1478, %v450_v54   ;;  %vm2474_vm12 = vmmov %vm2466_vm5  ;;  %1483 = vpow2.f32 %v478_v5  ;;  %v459_v59 = vsub.f32 %v2064_v31, %v443_v53 }
 0x12f   :  { %1060 = vst.msk [vmem:[#allocation2 + $0x60] sm:$0xff] %vm2466_vm5, %v450_v54  ;;  %v419_v13 = vpop.xlane.xlu1 %418  ;;  %v433_v16 = vpop.xlane.xlu0 %432 }
 0x130   :  { %v444_v17 = vmax.f32 %v396_v1, %v419_v13  ;;  %v2083_v18 = vmax.f32 %v2076_v6, %v433_v16  ;;  %v464_v13 = vsub.f32 %v2026_v45, %v2044_v58  ;;  %v2112_v45 = vpop.eup %1479  ;;  %v480_v31 = vmul.f32 1.442695, %v459_v59 }
 0x132   :  { %v460_v49 = vsub.f32 %v396_v1, %v444_v17  ;;  %1054 = vst.msk [vmem:[#allocation2 + $0x30] sm:$0xff] %vm2473_vm6, %v444_v17  ;;  %534 = vperm.xlu0 %1477, %v444_v17   ;;  %569 = vperm.xlu1 %1478, %v2083_v18   ;;  %v486_v1 = vmul.f32 1.442695, %v462_v2  ;;  %vm2475_vm6 = vmmov %vm2466_vm5  ;;  %v490_v58 = vmul.f32 1.442695, %v464_v13  ;;  %v466_v17 = vsub.f32 %v2066_v12, %v450_v54 }
 0x133   :  { %1061 = vst.msk [vmem:[#allocation2 + $0x68] sm:$0xff] %vm2474_vm12, %v2083_v18  ;;  %v421_v34 = vpop.xlane.xlu1 %420  ;;  %v435_v48 = vpop.xlane.xlu0 %434  ;;  %vm2476_vm12 = vmmov %vm2466_vm5  ;;  %v463_v12 = vsub.f32 %v2006_v24, %v2022_v38  ;;  %v467_v38 = vsub.f32 %v2076_v6, %v2083_v18 }
 0x134   :  { %v482_v50 = vmul.f32 1.442695, %v460_v49  ;;  %v445_v61 = vmax.f32 %v397_v21, %v421_v34  ;;  %v2096_v7 = vmax.f32 %v2085_v20, %v435_v48  ;;  %v2121_v49 = vpop.eup %1481  ;;  %v494_v35 = vmul.f32 1.442695, %v466_v17 }
 0x136   :  { %1485 = vpow2.f32 %v482_v50  ;;  %1055 = vst.msk [vmem:[#allocation2 + $0x38] sm:$0xff] %vm2466_vm5, %v445_v61  ;;  %539 = vperm.xlu0 %1477, %v445_v61   ;;  %574 = vperm.xlu1 %1478, %v2096_v7   ;;  %v461_v53 = vsub.f32 %v397_v21, %v445_v61  ;;  %v488_v21 = vmul.f32 1.442695, %v463_v12  ;;  %v465_v50 = vsub.f32 %v2046_v60, %v2062_v28 }
 0x137   :  { %1062 = vst.msk [vmem:[#allocation2 + $0x70] sm:$0xff] %vm2475_vm6, %v2096_v7  ;;  %1487 = vpow2.f32 %v474_v22  ;;  %v437_v5 = vpop.xlane.xlu0 %436  ;;  %v496_v60 = vmul.f32 1.442695, %v467_v38  ;;  %v2481_v63 = vsub.f32 %v2085_v20, %v2096_v7 }
 0x138   :  { %v2110_v16 = vmax.f32 %v2098_v19, %v437_v5  ;;  %1489 = vpow2.f32 %v486_v1  ;;  %v2123_v22 = vpop.eup %1483  ;;  %v484_v54 = vmul.f32 1.442695, %v461_v53  ;;  %v492_v24 = vmul.f32 1.442695, %v465_v50 }
 0x139   :  { %1491 = vpow2.f32 %v476_v55 }
 0x13a   :  { %1063 = vst.msk [vmem:[#allocation2 + $0x78] sm:$0xff] %vm2476_vm12, %v2110_v16  ;;  %766 = vperm.xlu0 %1477, %v2112_v45   ;;  %579 = vperm.xlu1 %1478, %v2110_v16   ;;  %1493 = vpow2.f32 %v490_v58  ;;  %v2480_v29 = vsub.f32 %v2098_v19, %v2110_v16 }
 0x13b   :  { %1495 = vpow2.f32 %v480_v31 }
 0x13c   :  { %1497 = vpow2.f32 %v494_v35 }
 0x13d   :  { %1499 = vpow2.f32 %v484_v54 }
 0x13e   :  { %781 = vperm.xlu0 %1477, %v2123_v22   ;;  %761 = vperm.xlu1 %1478, %v2121_v49   ;;  %1501 = vpow2.f32 %v488_v21 }
 0x13f   :  { %1503 = vpow2.f32 %v492_v24 }
 0x140   :  { %v2129_v34 = vpop.eup %1485  ;;  %1505 = vpow2.f32 %v496_v60 }
 0x141   :  { %v2131_v48 = vpop.eup %1487 }
 0x142   :  { %791 = vperm.xlu0 %1477, %v2129_v34   ;;  %771 = vperm.xlu1 %1478, %v2131_v48   ;;  %v2137_v61 = vpop.eup %1489 }
 0x143   :  { %v2139_v1 = vpop.eup %1491 }
 0x144   :  { %v2145_v13 = vpop.eup %1493 }
 0x145   :  { %v2147_v55 = vpop.eup %1495 }
 0x146   :  { %801 = vperm.xlu0 %1477, %v2137_v61   ;;  %776 = vperm.xlu1 %1478, %v2139_v1   ;;  %v2151_v28 = vpop.eup %1497 }
 0x147   :  { %v2153_v59 = vpop.eup %1499 }
 0x148   :  { %v2157_v6 = vpop.eup %1501 }
 0x149   :  { %v2160_v18 = vpop.eup %1503 }
 0x14a   :  { %811 = vperm.xlu0 %1477, %v2145_v13   ;;  %786 = vperm.xlu1 %1478, %v2147_v55   ;;  %v2163_v5 = vpop.eup %1505 }
 0x14e   :  { %821 = vperm.xlu0 %1477, %v2151_v28   ;;  %796 = vperm.xlu1 %1478, %v2153_v59  }
 0x152   :  { %806 = vperm.xlu1 %1478, %v2157_v6  }
 0x156   :  { %816 = vperm.xlu1 %1478, %v2160_v18  }
 0x15a   :  { %826 = vperm.xlu1 %1478, %v2163_v5  }
 0x199   :  { %v505_v58 = vpop.permute.xlu1 %504 }
 0x19a   :  { %v582_v17 = vsub.f32 %v1773_v39, %v505_v58 }
 0x19c   :  { %v598_v31 = vmul.f32 1.442695, %v582_v17 }
 0x19d   :  { %v510_v53 = vpop.permute.xlu1 %509  ;;  %v545_v35 = vpop.permute.xlu0 %544 }
 0x19e   :  { %1507 = vpow2.f32 %v598_v31  ;;  %v583_v12 = vsub.f32 %v1796_v56, %v510_v53  ;;  %v590_v54 = vsub.f32 %v1800_v57, %v545_v35 }
 0x1a0   :  { %v600_v21 = vmul.f32 1.442695, %v583_v12  ;;  %v614_v50 = vmul.f32 1.442695, %v590_v54 }
 0x1a1   :  { %v550_v24 = vpop.permute.xlu1 %549  ;;  %v515_v38 = vpop.permute.xlu0 %514 }
 0x1a2   :  { %1509 = vpow2.f32 %v600_v21  ;;  %v591_v60 = vsub.f32 %v1825_v14, %v550_v24  ;;  %v584_v44 = vsub.f32 %v1829_v15, %v515_v38 }
 0x1a3   :  { %1511 = vpow2.f32 %v614_v50 }
 0x1a4   :  { %v616_v2 = vmul.f32 1.442695, %v591_v60  ;;  %v602_v39 = vmul.f32 1.442695, %v584_v44 }
 0x1a5   :  { %v555_v58 = vpop.permute.xlu1 %554  ;;  %v520_v17 = vpop.permute.xlu0 %519 }
 0x1a6   :  { %1513 = vpow2.f32 %v616_v2  ;;  %v592_v31 = vsub.f32 %v1850_v32, %v555_v58  ;;  %v585_v56 = vsub.f32 %v1854_v33, %v520_v17 }
 0x1a7   :  { %1515 = vpow2.f32 %v602_v39 }
 0x1a8   :  { %v1508_v57 = vpop.eup %1507  ;;  %v618_v53 = vmul.f32 1.442695, %v592_v31  ;;  %v604_v35 = vmul.f32 1.442695, %v585_v56 }
 0x1a9   :  { %1401 = vmatprep.mubr.msk.f32.mxu0 %vm1736_vm13, %v1508_v57  ;;  %v560_v14 = vpop.permute.xlu1 %559  ;;  %v525_v12 = vpop.permute.xlu0 %524  ;;  %v630_v15 = vsel %vm1736_vm13, %v1508_v57, 0.0  ;;  %vm2477_vm13 = vnez %v2444_v23 }
 0x1aa   :  { %1517 = vpow2.f32 %v618_v53  ;;  %v593_v44 = vsub.f32 %v1880_v51, %v560_v14  ;;  %v586_v2 = vsub.f32 %v1884_v52, %v525_v12  ;;  %678 = vadd.xlane.f32.xlu0 %v630_v15 }
 0x1ab   :  { %1519 = vpow2.f32 %v604_v35 }
 0x1ac   :  { %v1510_v32 = vpop.eup %1509  ;;  %v620_v33 = vmul.f32 1.442695, %v593_v44  ;;  %v606_v54 = vmul.f32 1.442695, %v586_v2 }
 0x1ad   :  { %v2179_v21 = vpop.eup %1511  ;;  %1402 = vmatmul.mubr.msk.f32.vlgmr.msra.gmra.mrb[0].mxu0 %vm1741_vm14, %v1510_v32  ;;  %v565_v50 = vpop.permute.xlu1 %564  ;;  %v631_v3 = vsel %vm1741_vm14, %v1510_v32, 0.0  ;;  %vm2478_vm14 = vnez %v2452_v43 }
 0x1ae   :  { %v530_v24 = vpop.permute.xlu0 %529  ;;  %1521 = vpow2.f32 %v620_v33  ;;  %v594_v51 = vsub.f32 %v1908_v10, %v565_v50  ;;  %1413 = vmatprep.mubr.msk.f32.mxu1 %vm1745_vm15, %v2179_v21  ;;  %680 = vadd.xlane.f32.xlu1 %v631_v3  ;;  %v638_v43 = vsel %vm1745_vm15, %v2179_v21, 0.0 }
 0x1af   :  { %v587_v52 = vsub.f32 %v1912_v11, %v530_v24  ;;  %1523 = vpow2.f32 %v606_v54 }
 0x1b0   :  { %v2190_v38 = vpop.eup %1513  ;;  %v622_v60 = vmul.f32 1.442695, %v594_v51 }
 0x1b1   :  { %v608_v39 = vmul.f32 1.442695, %v587_v52  ;;  %v1516_v58 = vpop.eup %1515  ;;  %v570_v17 = vpop.permute.xlu1 %569  ;;  %1414 = vmatmul.mubr.msk.f32.vlgmr.msra.gmra.mrb[0].mxu1 %vm1759_vm2, %v2190_v38 }
 0x1b2   :  { %v535_v8 = vpop.permute.xlu0 %534  ;;  %1525 = vpow2.f32 %v622_v60  ;;  %v595_v10 = vsub.f32 %v1927_v4, %v570_v17  ;;  %1404 = vmatprep.mubr.msk.f32.mxu0 %vm1763_vm3, %v1516_v58  ;;  %v632_v31 = vsel %vm1763_vm3, %v1516_v58, 0.0  ;;  %vm2479_vm3 = vnez %v2458_v0 }
 0x1b3   :  { %v588_v11 = vsub.f32 %v1931_v26, %v535_v8  ;;  %1527 = vpow2.f32 %v608_v39  ;;  %682 = vadd.xlane.f32.xlu0 %v632_v31  ;;  %v639_v58 = vsel %vm1759_vm2, %v2190_v38, 0.0  ;;  %v500_v38 = vmul.f32 1.442695, %v2480_v29  ;;  %v655_v29 = vld [vmem:[#allocation3 + $0x48] sm:$0xff] }
 0x1b4   :  { %v1518_v56 = vpop.eup %1517  ;;  %v624_v57 = vmul.f32 1.442695, %v595_v10  ;;  %v498_v17 = vmul.f32 1.442695, %v2481_v63  ;;  %v671_v63 = vmul.f32 %v2157_v6, %v655_v29 }
 0x1b5   :  { %v610_v53 = vmul.f32 1.442695, %v588_v11  ;;  %v1520_v35 = vpop.eup %1519  ;;  %v575_v14 = vpop.permute.xlu1 %574  ;;  %1416 = vmatprep.mubr.msk.f32.mxu1 %vm1781_vm9, %v1518_v56  ;;  %v640_v39 = vsel %vm1781_vm9, %v1518_v56, 0.0 }
 0x1b6   :  { %v540_v12 = vpop.permute.xlu0 %539  ;;  %1529 = vpow2.f32 %v624_v57  ;;  %v596_v4 = vsub.f32 %v1941_v36, %v575_v14  ;;  %1405 = vmatmul.mubr.msk.f32.gmra.mrb[2].mxu0 %vm1785_vm10, %v1520_v35  ;;  %v633_v26 = vsel %vm1785_vm10, %v1520_v35, 0.0  ;;  %v646_v14 = vld [vmem:[#allocation3] sm:$0xff] }
 0x1b7   :  { %v589_v30 = vsub.f32 %v1945_v37, %v540_v12  ;;  %1531 = vpow2.f32 %v610_v53  ;;  %684 = vadd.xlane.f32.xlu0 %v633_v26  ;;  %v662_v12 = vmul.f32 %v2121_v49, %v646_v14  ;;  %v647_v26 = vld [vmem:[#allocation3 + $0x8] sm:$0xff] }
 0x1b8   :  { %v1522_v15 = vpop.eup %1521  ;;  %v626_v44 = vmul.f32 1.442695, %v596_v4 }
 0x1b9   :  { %v612_v2 = vmul.f32 1.442695, %v589_v30  ;;  %v1524_v32 = vpop.eup %1523  ;;  %v580_v33 = vpop.permute.xlu1 %579  ;;  %1417 = vmatmul.mubr.msk.f32.gmra.mrb[2].mxu1 %vm1810_vm4, %v1522_v15  ;;  %v641_v27 = vsel %vm1810_vm4, %v1522_v15, 0.0 }
 0x1ba   :  { %1533 = vpow2.f32 %v626_v44  ;;  %v597_v36 = vsub.f32 %v1955_v41, %v580_v33  ;;  %1407 = vmatprep.mubr.msk.f32.mxu0 %vm2477_vm13, %v1524_v32  ;;  %v634_v47 = vsel %vm2477_vm13, %v1524_v32, 0.0  ;;  %v2270_v40 = vpop.permute.xlu0 %766  ;;  %v663_v44 = vmul.f32 %v2112_v45, %v647_v26  ;;  %v648_v33 = vld [vmem:[#allocation3 + $0x10] sm:$0xff] }
 0x1bb   :  { %1535 = vpow2.f32 %v612_v2  ;;  %686 = vadd.xlane.f32.xlu1 %v634_v47 }
 0x1bc   :  { %v1526_v37 = vpop.eup %1525  ;;  %v628_v54 = vmul.f32 1.442695, %v597_v36  ;;  %v664_v36 = vmul.f32 %v2131_v48, %v648_v33 }
 0x1bd   :  { %v1528_v50 = vpop.eup %1527  ;;  %1419 = vmatprep.mubr.msk.f32.mxu1 %vm1865_vm7, %v1526_v37  ;;  %v642_v9 = vsel %vm1865_vm7, %v1526_v37, 0.0  ;;  %v2266_v19 = vpop.permute.xlu1 %761  ;;  %v649_v37 = vld [vmem:[#allocation3 + $0x18] sm:$0xff] }
 0x1be   :  { %1537 = vpow2.f32 %v628_v54  ;;  %1408 = vmatmul.mubr.msk.f32.gmra.mrb[4].mxu0 %vm2478_vm14, %v1528_v50  ;;  %v635_v41 = vsel %vm2478_vm14, %v1528_v50, 0.0  ;;  %v2274_v10 = vpop.permute.xlu0 %781  ;;  %v665_v49 = vmul.f32 %v2139_v1, %v649_v37 }
 0x1bf   :  { %688 = vadd.xlane.f32.xlu0 %v635_v41  ;;  %1539 = vpow2.f32 %v500_v38  ;;  %v650_v41 = vld [vmem:[#allocation3 + $0x20] sm:$0xff] }
 0x1c0   :  { %v1530_v24 = vpop.eup %1529  ;;  %1541 = vpow2.f32 %v498_v17  ;;  %v666_v45 = vmul.f32 %v2123_v22, %v650_v41 }
 0x1c1   :  { %v1532_v3 = vpop.eup %1531  ;;  %1420 = vmatmul.mubr.msk.f32.gmra.mrb[4].mxu1 %vm1896_vm11, %v1530_v24  ;;  %v643_v46 = vsel %vm1896_vm11, %v1530_v24, 0.0  ;;  %v2268_v16 = vpop.permute.xlu1 %771 }
 0x1c2   :  { %1410 = vmatprep.mubr.msk.f32.mxu0 %vm2479_vm3, %v1532_v3  ;;  %v636_v23 = vsel %vm2479_vm3, %v1532_v3, 0.0  ;;  %v2278_v7 = vpop.permute.xlu0 %791 }
 0x1c3   :  { %690 = vadd.xlane.f32.xlu1 %v636_v23  ;;  %v651_v23 = vld [vmem:[#allocation3 + $0x28] sm:$0xff] }
 0x1c4   :  { %v1534_v51 = vpop.eup %1533  ;;  %v667_v48 = vmul.f32 %v2147_v55, %v651_v23  ;;  %v656_v55 = vld [vmem:[#allocation3 + $0x50] sm:$0xff]  ;;  %v752_v23 = vld [vmem:[#allocation4 + $0x48] sm:$0xff] }
 0x1c5   :  { %v1536_v52 = vpop.eup %1535  ;;  %1422 = vmatprep.mubr.msk.f32.mxu1 %vm1921_vm0, %v1534_v51  ;;  %v644_v21 = vsel %vm1921_vm0, %v1534_v51, 0.0  ;;  %v2272_v8 = vpop.permute.xlu1 %776  ;;  %vm2482_vm0 = vmmov %vm2466_vm5 }
 0x1c6   :  { %1411 = vmatmul.mubr.msk.f32.gmra.mrb[6].mxu0 %vm1933_vm8, %v1536_v52  ;;  %v637_v60 = vsel %vm1933_vm8, %v1536_v52, 0.0  ;;  %v2282_v31 = vpop.permute.xlu0 %801  ;;  %vm2483_vm15 = vmmov %vm2482_vm0 }
 0x1c7   :  { %694 = vadd.xlane.f32.xlu1 %v638_v43  ;;  %692 = vadd.xlane.f32.xlu0 %v637_v60  ;;  %vm2484_vm2 = vmmov %vm2482_vm0  ;;  %v652_v43 = vld [vmem:[#allocation3 + $0x30] sm:$0xff] }
 0x1c8   :  { %v1538_v0 = vpop.eup %1537  ;;  %vm2485_vm9 = vmmov %vm2482_vm0  ;;  %v668_v1 = vmul.f32 %v2129_v34, %v652_v43  ;;  %v672_v34 = vmul.f32 %v2145_v13, %v656_v55  ;;  %v659_v13 = vld [vmem:[#allocation3 + $0x68] sm:$0xff] }
 0x1c9   :  { %1423 = vmatmul.mubr.msk.f32.gmra.mrb[6].mxu1 %vm1949_vm1, %v1538_v0  ;;  %v645_v42 = vsel %vm1949_vm1, %v1538_v0, 0.0  ;;  %v2260_v25 = vpop.eup %1539  ;;  %v2276_v20 = vpop.permute.xlu1 %786  ;;  %vm2486_vm10 = vmmov %vm2482_vm0 }
 0x1ca   :  { %v2263_v62 = vpop.eup %1541  ;;  %v2286_v57 = vpop.permute.xlu0 %811  ;;  %vm2487_vm4 = vmmov %vm2482_vm0 }
 0x1cb   :  { %698 = vadd.xlane.f32.xlu1 %v640_v39  ;;  %696 = vadd.xlane.f32.xlu0 %v639_v58  ;;  %v654_v39 = vld [vmem:[#allocation3 + $0x40] sm:$0xff]  ;;  %v653_v58 = vld [vmem:[#allocation3 + $0x38] sm:$0xff]  ;;  %vm2488_vm11 = vmmov %vm2482_vm0 }
 0x1cc   :  { %v670_v22 = vmul.f32 %v2137_v61, %v654_v39  ;;  %vm2489_vm7 = vmmov %vm2482_vm0  ;;  %v657_v61 = vld [vmem:[#allocation3 + $0x58] sm:$0xff] }
 0x1cd   :  { %v2280_v11 = vpop.permute.xlu1 %796  ;;  %vm2490_vm1 = vmmov %vm2482_vm0  ;;  %v746_v39 = vld [vmem:[#allocation4 + $0x18] sm:$0xff] }
 0x1ce   :  { %v2290_v35 = vpop.permute.xlu0 %821  ;;  %vm2491_vm8 = vmmov %vm2482_vm0 }
 0x1cf   :  { %702 = vadd.xlane.f32.xlu1 %v642_v9  ;;  %700 = vadd.xlane.f32.xlu0 %v641_v27  ;;  %v669_v27 = vmul.f32 %v2153_v59, %v653_v58  ;;  %vm2492_vm5 = vmmov %vm2482_vm0 }
 0x1d0   :  { %vm2493_vm6 = vmmov %vm2482_vm0 }
 0x1d1   :  { %v2284_v56 = vpop.permute.xlu1 %806  ;;  %vm2494_vm12 = vmmov %vm2482_vm0 }
 0x1d2   :  { %vm2495_vm13 = vmmov %vm2482_vm0 }
 0x1d3   :  { %706 = vadd.xlane.f32.xlu1 %v644_v21  ;;  %704 = vadd.xlane.f32.xlu0 %v643_v46  ;;  %vm2496_vm14 = vmmov %vm2482_vm0 }
 0x1d4   :  { %vm2497_vm3 = vmmov %vm2482_vm0 }
 0x1d5   :  { %v2288_v53 = vpop.permute.xlu1 %816 }
 0x1d7   :  { %708 = vadd.xlane.f32.xlu0 %v645_v42 }
 0x1d9   :  { %v2293_v4 = vpop.permute.xlu1 %826 }
 0x1e4   :  { %836 = vperm.xlu1 %1478, %v2260_v25  }
 0x1ed   :  { %831 = vperm.xlu0 %1477, %v2263_v62  }
 0x237   :  { %v679_v30 = vpop.xlane.xlu0 %678 }
 0x238   :  { %v710_v15 = vadd.f32 %v679_v30, %v662_v12  ;;  %v658_v12 = vld [vmem:[#allocation3 + $0x60] sm:$0xff] }
 0x239   :  { %v674_v26 = vmul.f32 %v2151_v28, %v658_v12 }
 0x23a   :  { %727 = vst.msk [vmem:[#allocation3] sm:$0xff] %vm2482_vm0, %v710_v15  ;;  %v673_v15 = vmul.f32 %v2160_v18, %v657_v61  ;;  %v756_v61 = vld [vmem:[#allocation4 + $0x68] sm:$0xff] }
 0x23b   :  { %v681_v2 = vpop.xlane.xlu1 %680 }
 0x23c   :  { %v711_v32 = vadd.f32 %v681_v2, %v663_v44 }
 0x23e   :  { %728 = vst.msk [vmem:[#allocation3 + $0x8] sm:$0xff] %vm2483_vm15, %v711_v32  ;;  %v660_v32 = vld [vmem:[#allocation3 + $0x70] sm:$0xff] }
 0x240   :  { %v683_v47 = vpop.xlane.xlu0 %682 }
 0x241   :  { %v712_v54 = vadd.f32 %v683_v47, %v664_v36  ;;  %v676_v36 = vmul.f32 %v2263_v62, %v660_v32  ;;  %v675_v47 = vmul.f32 %v2163_v5, %v659_v13  ;;  %v750_v13 = vld [vmem:[#allocation4 + $0x38] sm:$0xff] }
 0x243   :  { %729 = vst.msk [vmem:[#allocation3 + $0x10] sm:$0xff] %vm2484_vm2, %v712_v54 }
 0x244   :  { %v685_v50 = vpop.xlane.xlu0 %684 }
 0x245   :  { %v713_v24 = vadd.f32 %v685_v50, %v665_v49  ;;  %v661_v49 = vld [vmem:[#allocation3 + $0x78] sm:$0xff] }
 0x246   :  { %v677_v18 = vmul.f32 %v2260_v25, %v661_v49 }
 0x247   :  { %730 = vst.msk [vmem:[#allocation3 + $0x18] sm:$0xff] %vm2485_vm9, %v713_v24 }
 0x248   :  { %v687_v3 = vpop.xlane.xlu1 %686 }
 0x249   :  { %v714_v51 = vadd.f32 %v687_v3, %v666_v45  ;;  %v744_v45 = vld [vmem:[#allocation4 + $0x8] sm:$0xff]  ;;  %v743_v3 = vld [vmem:[#allocation4] sm:$0xff] }
 0x24a   :  { %v840_v62 = vmul.f32 %v2270_v40, %v744_v45  ;;  %v839_v5 = vmul.f32 %v2266_v19, %v743_v3  ;;  %v842_v19 = vmul.f32 %v2272_v8, %v746_v39  ;;  %v747_v8 = vld [vmem:[#allocation4 + $0x20] sm:$0xff] }
 0x24b   :  { %731 = vst.msk [vmem:[#allocation3 + $0x20] sm:$0xff] %vm2486_vm10, %v714_v51 }
 0x24c   :  { %v689_v52 = vpop.xlane.xlu0 %688 }
 0x24d   :  { %v715_v60 = vadd.f32 %v689_v52, %v667_v48  ;;  %v751_v48 = vld [vmem:[#allocation4 + $0x40] sm:$0xff] }
 0x24e   :  { %v847_v25 = vmul.f32 %v2282_v31, %v751_v48 }
 0x24f   :  { %732 = vst.msk [vmem:[#allocation3 + $0x28] sm:$0xff] %vm2487_vm4, %v715_v60 }
 0x250   :  { %v691_v0 = vpop.xlane.xlu1 %690 }
 0x251   :  { %v716_v9 = vadd.f32 %v691_v0, %v668_v1  ;;  %v848_v1 = vmul.f32 %v2284_v56, %v752_v23 }
 0x253   :  { %733 = vst.msk [vmem:[#allocation3 + $0x30] sm:$0xff] %vm2488_vm11, %v716_v9 }
 0x254   :  { %v695_v21 = vpop.xlane.xlu1 %694  ;;  %v693_v46 = vpop.xlane.xlu0 %692 }
 0x255   :  { %v718_v38 = vadd.f32 %v695_v21, %v670_v22  ;;  %v717_v42 = vadd.f32 %v693_v46, %v669_v27  ;;  %v745_v22 = vld [vmem:[#allocation4 + $0x10] sm:$0xff]  ;;  %v754_v27 = vld [vmem:[#allocation4 + $0x58] sm:$0xff] }
 0x256   :  { %v841_v21 = vmul.f32 %v2268_v16, %v745_v22  ;;  %v753_v46 = vld [vmem:[#allocation4 + $0x50] sm:$0xff]  ;;  %v850_v31 = vmul.f32 %v2288_v53, %v754_v27 }
 0x257   :  { %735 = vst.msk [vmem:[#allocation3 + $0x40] sm:$0xff] %vm2489_vm7, %v718_v38 }
 0x258   :  { %734 = vst.msk [vmem:[#allocation3 + $0x38] sm:$0xff] %vm2490_vm1, %v717_v42  ;;  %v699_v17 = vpop.xlane.xlu1 %698  ;;  %v697_v14 = vpop.xlane.xlu0 %696  ;;  %v849_v42 = vmul.f32 %v2286_v57, %v753_v46  ;;  %v852_v57 = vmul.f32 %v2293_v4, %v756_v61  ;;  %v757_v4 = vld [vmem:[#allocation4 + $0x70] sm:$0xff] }
 0x259   :  { %v720_v30 = vadd.f32 %v699_v17, %v672_v34  ;;  %v719_v59 = vadd.f32 %v697_v14, %v671_v63  ;;  %v748_v63 = vld [vmem:[#allocation4 + $0x28] sm:$0xff] }
 0x25a   :  { %v844_v16 = vmul.f32 %v2276_v20, %v748_v63  ;;  %v749_v20 = vld [vmem:[#allocation4 + $0x30] sm:$0xff] }
 0x25b   :  { %737 = vst.msk [vmem:[#allocation3 + $0x50] sm:$0xff] %vm2491_vm8, %v720_v30  ;;  %v843_v30 = vmul.f32 %v2274_v10, %v747_v8  ;;  %v846_v10 = vmul.f32 %v2280_v11, %v750_v13 }
 0x25c   :  { %736 = vst.msk [vmem:[#allocation3 + $0x48] sm:$0xff] %vm2492_vm5, %v719_v59  ;;  %v703_v44 = vpop.xlane.xlu1 %702  ;;  %v701_v2 = vpop.xlane.xlu0 %700  ;;  %v755_v59 = vld [vmem:[#allocation4 + $0x60] sm:$0xff] }
 0x25d   :  { %v722_v33 = vadd.f32 %v703_v44, %v674_v26  ;;  %v721_v6 = vadd.f32 %v701_v2, %v673_v15  ;;  %v851_v2 = vmul.f32 %v2290_v35, %v755_v59 }
 0x25f   :  { %739 = vst.msk [vmem:[#allocation3 + $0x60] sm:$0xff] %vm2493_vm6, %v722_v33 }
 0x260   :  { %738 = vst.msk [vmem:[#allocation3 + $0x58] sm:$0xff] %vm2494_vm12, %v721_v6  ;;  %v707_v37 = vpop.xlane.xlu1 %706  ;;  %v705_v54 = vpop.xlane.xlu0 %704 }
 0x261   :  { %v724_v28 = vadd.f32 %v707_v37, %v676_v36  ;;  %v723_v50 = vadd.f32 %v705_v54, %v675_v47  ;;  %v758_v47 = vld [vmem:[#allocation4 + $0x78] sm:$0xff]  ;;  %v845_v54 = vmul.f32 %v2278_v7, %v749_v20 }
 0x263   :  { %741 = vst.msk [vmem:[#allocation3 + $0x70] sm:$0xff] %vm2495_vm13, %v724_v28 }
 0x264   :  { %740 = vst.msk [vmem:[#allocation3 + $0x68] sm:$0xff] %vm2496_vm14, %v723_v50  ;;  %v709_v41 = vpop.xlane.xlu0 %708  ;;  %v837_v37 = vpop.permute.xlu1 %836 }
 0x265   :  { %v725_v24 = vadd.f32 %v709_v41, %v677_v18  ;;  %v854_v18 = vmul.f32 %v837_v37, %v758_v47 }
 0x267   :  { %742 = vst.msk [vmem:[#allocation3 + $0x78] sm:$0xff] %vm2497_vm3, %v725_v24 }
 0x26c   :  { %v832_v49 = vpop.permute.xlu0 %831 }
 0x26d   :  { %v853_v24 = vmul.f32 %v832_v49, %v757_v4 }
 0x280   :  { %v1403_v51 = vpop.f32.mrb[0].mxu0 }
 0x281   :  { %v1017_v52 = vadd.f32 %v1403_v51, %v840_v62  ;;  %v937_v43 = vpop.f32.mrb[1].mxu0 }
 0x282   :  { %v1016_v60 = vadd.f32 %v937_v43, %v839_v5 }
 0x283   :  { %1033 = vst [vmem:[#allocation4 + $0x8] sm:$0xff] %v1017_v52 }
 0x284   :  { %1032 = vst [vmem:[#allocation4] sm:$0xff] %v1016_v60  ;;  %v1415_v0 = vpop.f32.mrb[0].mxu1 }
 0x285   :  { %v1025_v58 = vadd.f32 %v1415_v0, %v848_v1  ;;  %v977_v9 = vpop.f32.mrb[1].mxu1 }
 0x286   :  { %v1024_v40 = vadd.f32 %v977_v9, %v847_v25 }
 0x287   :  { %1041 = vst [vmem:[#allocation4 + $0x48] sm:$0xff] %v1025_v58 }
 0x288   :  { %1040 = vst [vmem:[#allocation4 + $0x40] sm:$0xff] %v1024_v40 }
 0x289   :  { %v1406_v55 = vpop.f32.mrb[2].mxu0 }
 0x28a   :  { %v1019_v56 = vadd.f32 %v1406_v55, %v842_v19  ;;  %v947_v29 = vpop.f32.mrb[3].mxu0 }
 0x28b   :  { %v1018_v38 = vadd.f32 %v947_v29, %v841_v21 }
 0x28c   :  { %1035 = vst [vmem:[#allocation4 + $0x18] sm:$0xff] %v1019_v56  ;;  %v1418_v34 = vpop.f32.mrb[2].mxu1 }
 0x28d   :  { %1034 = vst [vmem:[#allocation4 + $0x10] sm:$0xff] %v1018_v38  ;;  %v1027_v17 = vadd.f32 %v1418_v34, %v850_v31  ;;  %v987_v14 = vpop.f32.mrb[3].mxu1 }
 0x28e   :  { %v1026_v12 = vadd.f32 %v987_v14, %v849_v42 }
 0x28f   :  { %1043 = vst [vmem:[#allocation4 + $0x58] sm:$0xff] %v1027_v17 }
 0x290   :  { %1042 = vst [vmem:[#allocation4 + $0x50] sm:$0xff] %v1026_v12 }
 0x291   :  { %v1409_v53 = vpop.f32.mrb[4].mxu0 }
 0x292   :  { %v1021_v26 = vadd.f32 %v1409_v53, %v844_v16  ;;  %v957_v15 = vpop.f32.mrb[5].mxu0 }
 0x293   :  { %v1020_v44 = vadd.f32 %v957_v15, %v843_v30 }
 0x294   :  { %1037 = vst [vmem:[#allocation4 + $0x28] sm:$0xff] %v1021_v26  ;;  %v1421_v32 = vpop.f32.mrb[4].mxu1 }
 0x295   :  { %1036 = vst [vmem:[#allocation4 + $0x20] sm:$0xff] %v1020_v44  ;;  %v1029_v33 = vadd.f32 %v1421_v32, %v852_v57  ;;  %v997_v6 = vpop.f32.mrb[5].mxu1 }
 0x296   :  { %v1028_v36 = vadd.f32 %v997_v6, %v851_v2 }
 0x297   :  { %1045 = vst [vmem:[#allocation4 + $0x68] sm:$0xff] %v1029_v33 }
 0x298   :  { %1044 = vst [vmem:[#allocation4 + $0x60] sm:$0xff] %v1028_v36 }
 0x299   :  { %v1412_v28 = vpop.f32.mrb[6].mxu0 }
 0x29a   :  { %v1023_v35 = vadd.f32 %v1412_v28, %v846_v10  ;;  %v967_v50 = vpop.f32.mrb[7].mxu0 }
 0x29b   :  { %v1022_v41 = vadd.f32 %v967_v50, %v845_v54 }
 0x29c   :  { %1039 = vst [vmem:[#allocation4 + $0x38] sm:$0xff] %v1023_v35  ;;  %v1424_v45 = vpop.f32.mrb[6].mxu1 }
 0x29d   :  { %1038 = vst [vmem:[#allocation4 + $0x30] sm:$0xff] %v1022_v41  ;;  %v1031_v3 = vadd.f32 %v1424_v45, %v854_v18  ;;  %v1007_v62 = vpop.f32.mrb[7].mxu1 }
 0x29e   :  { %v1030_v5 = vadd.f32 %v1007_v62, %v853_v24 }
 0x29f   :  { %1047 = vst [vmem:[#allocation4 + $0x78] sm:$0xff] %v1031_v3 }
 0x2a0   :  { %1046 = vst [vmem:[#allocation4 + $0x70] sm:$0xff] %v1030_v5 }
 0x2a1 PF:  { %v1069_v11 = vld [vmem:[#allocation3 + $0x10] sm:$0xff]  ;;  %v1067_v23 = vld [vmem:[#allocation3] sm:$0xff]  ;;  %v1070_v7 = vld [vmem:[#allocation3 + $0x18] sm:$0xff]  ;;  %v1580_v51 = vmov 0  }
 0x2a2   :  { %1544 = vset.pattern.permute.xlu1 %v1580_v51  ;;  %1543 = vset.pattern.permute.xlu0 %v1580_v51  ;;  %vm1085_vm0 = vcmp.gt.f32.partialorder %v1069_v11, 0.0  ;;  %vm1083_vm15 = vcmp.gt.f32.partialorder %v1067_v23, 0.0  ;;  %vm1086_vm2 = vcmp.gt.f32.partialorder %v1070_v7, 0.0  ;;  %v1068_v48 = vld [vmem:[#allocation3 + $0x8] sm:$0xff]  ;;  %v1071_v43 = vld [vmem:[#allocation3 + $0x20] sm:$0xff]  ;;  %v1074_v39 = vld [vmem:[#allocation3 + $0x38] sm:$0xff] }
 0x2a3   :  { %v1072_v52 = vld [vmem:[#allocation3 + $0x28] sm:$0xff]  ;;  %v1101_v60 = vsel %vm1085_vm0, %v1069_v11, 1.0  ;;  %v1099_v1 = vsel %vm1083_vm15, %v1067_v23, 1.0  ;;  %v1102_v25 = vsel %vm1086_vm2, %v1070_v7, 1.0  ;;  %vm1084_vm9 = vcmp.gt.f32.partialorder %v1068_v48, 0.0  ;;  %v1073_v58 = vld [vmem:[#allocation3 + $0x30] sm:$0xff] }
 0x2a4   :  { %1545 = vrcp.f32 %v1101_v60  ;;  %v1100_v0 = vsel %vm1084_vm9, %v1068_v48, 1.0  ;;  %vm1088_vm10 = vcmp.gt.f32.partialorder %v1072_v52, 0.0  ;;  %vm1087_vm4 = vcmp.gt.f32.partialorder %v1071_v43, 0.0  ;;  %v1076_v40 = vld [vmem:[#allocation3 + $0x48] sm:$0xff]  ;;  %v1075_v19 = vld [vmem:[#allocation3 + $0x40] sm:$0xff]  ;;  %v1078_v46 = vld [vmem:[#allocation3 + $0x58] sm:$0xff] }
 0x2a5   :  { %1547 = vrcp.f32 %v1099_v1  ;;  %v1104_v9 = vsel %vm1088_vm10, %v1072_v52, 1.0  ;;  %v1103_v22 = vsel %vm1087_vm4, %v1071_v43, 1.0  ;;  %vm1090_vm11 = vcmp.gt.f32.partialorder %v1074_v39, 0.0  ;;  %v1077_v56 = vld [vmem:[#allocation3 + $0x50] sm:$0xff]  ;;  %v1080_v63 = vld [vmem:[#allocation3 + $0x68] sm:$0xff]  ;;  %v1079_v17 = vld [vmem:[#allocation3 + $0x60] sm:$0xff] }
 0x2a6   :  { %1549 = vrcp.f32 %v1102_v25  ;;  %vm1089_vm7 = vcmp.gt.f32.partialorder %v1073_v58, 0.0  ;;  %v1106_v27 = vsel %vm1090_vm11, %v1074_v39, 1.0  ;;  %vm1092_vm1 = vcmp.gt.f32.partialorder %v1076_v40, 0.0  ;;  %v1082_v61 = vld [vmem:[#allocation3 + $0x78] sm:$0xff]  ;;  %v1081_v30 = vld [vmem:[#allocation3 + $0x70] sm:$0xff]  ;;  %v1147_v37 = vld [vmem:[#allocation4] sm:$0xff] }
 0x2a7   :  { %1551 = vrcp.f32 %v1100_v0  ;;  %v1105_v21 = vsel %vm1089_vm7, %v1073_v58, 1.0  ;;  %vm1091_vm8 = vcmp.gt.f32.partialorder %v1075_v19, 0.0  ;;  %v1108_v31 = vsel %vm1092_vm1, %v1076_v40, 1.0  ;;  %v1149_v47 = vld [vmem:[#allocation4 + $0x10] sm:$0xff]  ;;  %v2343_v54 = vld [vmem:[%s2414_s5] ss:$0 sm:$0xff] }
 0x2a8   :  { %1553 = vrcp.f32 %v1104_v9  ;;  %v1107_v42 = vsel %vm1091_vm8, %v1075_v19, 1.0  ;;  %vm1094_vm5 = vcmp.gt.f32.partialorder %v1078_v46, 0.0  ;;  %vm1093_vm6 = vcmp.gt.f32.partialorder %v1077_v56, 0.0  ;;  %v1150_v50 = vld [vmem:[#allocation4 + $0x18] sm:$0xff]  ;;  %v1148_v41 = vld [vmem:[#allocation4 + $0x8] sm:$0xff]  ;;  %v1151_v48 = vld [vmem:[#allocation4 + $0x20] sm:$0xff] }
 0x2a9   :  { %1555 = vrcp.f32 %v1103_v22  ;;  %v1110_v14 = vsel %vm1094_vm5, %v1078_v46, 1.0  ;;  %v1109_v12 = vsel %vm1093_vm6, %v1077_v56, 1.0  ;;  %vm1096_vm12 = vcmp.gt.f32.partialorder %v1080_v63, 0.0  ;;  %v1152_v7 = vld [vmem:[#allocation4 + $0x28] sm:$0xff]  ;;  %v1154_v58 = vld [vmem:[#allocation4 + $0x38] sm:$0xff]  ;;  %v1153_v22 = vld [vmem:[#allocation4 + $0x30] sm:$0xff] }
 0x2aa   :  { %1557 = vrcp.f32 %v1106_v27  ;;  %vm1095_vm13 = vcmp.gt.f32.partialorder %v1079_v17, 0.0  ;;  %v1112_v59 = vsel %vm1096_vm12, %v1080_v63, 1.0  ;;  %vm1098_vm14 = vcmp.gt.f32.partialorder %v1082_v61, 0.0 }
 0x2ab   :  { %1559 = vrcp.f32 %v1105_v21  ;;  %v1111_v26 = vsel %vm1095_vm13, %v1079_v17, 1.0  ;;  %vm1097_vm3 = vcmp.gt.f32.partialorder %v1081_v30, 0.0  ;;  %v1114_v57 = vsel %vm1098_vm14, %v1082_v61, 1.0 }
 0x2ac   :  { %1561 = vrcp.f32 %v1108_v31  ;;  %v1113_v2 = vsel %vm1097_vm3, %v1081_v30, 1.0  ;;  %v1157_v30 = vld [vmem:[#allocation4 + $0x50] sm:$0xff] }
 0x2ad   :  { %1563 = vrcp.f32 %v1107_v42 }
 0x2ae   :  { %v1546_v55 = vpop.eup %1545  ;;  %1565 = vrcp.f32 %v1110_v14 }
 0x2af   :  { %v1548_v29 = vpop.eup %1547  ;;  %1175 = vperm.xlu1 %1544, %v1546_v55   ;;  %1567 = vrcp.f32 %v1109_v12 }
 0x2b0   :  { %v1550_v38 = vpop.eup %1549  ;;  %1165 = vperm.xlu0 %1543, %v1548_v29   ;;  %1569 = vrcp.f32 %v1112_v59  ;;  %v1156_v29 = vld [vmem:[#allocation4 + $0x48] sm:$0xff] }
 0x2b1   :  { %v1552_v34 = vpop.eup %1551  ;;  %1571 = vrcp.f32 %v1111_v26 }
 0x2b2   :  { %v1554_v8 = vpop.eup %1553  ;;  %1573 = vrcp.f32 %v1114_v57 }
 0x2b3   :  { %1180 = vperm.xlu1 %1544, %v1550_v38   ;;  %v1556_v16 = vpop.eup %1555  ;;  %1575 = vrcp.f32 %v1113_v2  ;;  %v1155_v38 = vld [vmem:[#allocation4 + $0x40] sm:$0xff] }
 0x2b4   :  { %1170 = vperm.xlu0 %1543, %v1552_v34   ;;  %v1558_v53 = vpop.eup %1557 }
 0x2b5   :  { %v1560_v15 = vpop.eup %1559 }
 0x2b6   :  { %v1562_v44 = vpop.eup %1561 }
 0x2b7   :  { %1190 = vperm.xlu1 %1544, %v1554_v8   ;;  %v1564_v32 = vpop.eup %1563 }
 0x2b8   :  { %1185 = vperm.xlu0 %1543, %v1556_v16   ;;  %v1566_v13 = vpop.eup %1565  ;;  %v1158_v16 = vld [vmem:[#allocation4 + $0x58] sm:$0xff] }
 0x2b9   :  { %v1568_v33 = vpop.eup %1567 }
 0x2ba   :  { %v1570_v6 = vpop.eup %1569 }
 0x2bb   :  { %1200 = vperm.xlu1 %1544, %v1558_v53   ;;  %v1572_v20 = vpop.eup %1571 }
 0x2bc   :  { %1195 = vperm.xlu0 %1543, %v1560_v15   ;;  %v1574_v36 = vpop.eup %1573 }
 0x2bd   :  { %v1576_v10 = vpop.eup %1575 }
 0x2bf   :  { %1210 = vperm.xlu1 %1544, %v1562_v44  }
 0x2c0   :  { %1205 = vperm.xlu0 %1543, %v1564_v32   ;;  %v1160_v32 = vld [vmem:[#allocation4 + $0x68] sm:$0xff] }
 0x2c3   :  { %1220 = vperm.xlu1 %1544, %v1566_v13  }
 0x2c4   :  { %1215 = vperm.xlu0 %1543, %v1568_v33   ;;  %v1159_v33 = vld [vmem:[#allocation4 + $0x60] sm:$0xff] }
 0x2c7   :  { %1230 = vperm.xlu1 %1544, %v1570_v6  }
 0x2c8   :  { %1225 = vperm.xlu0 %1543, %v1572_v20  }
 0x2cb   :  { %1240 = vperm.xlu1 %1544, %v1574_v36  }
 0x2cc   :  { %1235 = vperm.xlu0 %1543, %v1576_v10  }
 0x32e   :  { %v1176_v4 = vpop.permute.xlu1 %1175 }
 0x32f   :  { %v1245_v49 = vmul.f32 %v1176_v4, %v1149_v47  ;;  %v1166_v28 = vpop.permute.xlu0 %1165 }
 0x330   :  { %v1243_v35 = vmul.f32 %v1166_v28, %v1147_v37 }
 0x331   :  { %v1268_v18 = vadd.f32 %v2343_v54, %v1245_v49  ;;  %v1162_v49 = vld [vmem:[#allocation4 + $0x78] sm:$0xff] }
 0x332   :  { %v1266_v24 = vadd.f32 %v2343_v54, %v1243_v35  ;;  %v1181_v45 = vpop.permute.xlu1 %1180  ;;  %v1161_v35 = vld [vmem:[#allocation4 + $0x70] sm:$0xff] }
 0x333   :  { %v1284_v3 = vmax.f32 %v1268_v18, 0.0  ;;  %v1246_v62 = vmul.f32 %v1181_v45, %v1150_v50  ;;  %v1171_v5 = vpop.permute.xlu0 %1170 }
 0x334   :  { %v1282_v11 = vmax.f32 %v1266_v24, 0.0  ;;  %v1244_v23 = vmul.f32 %v1171_v5, %v1148_v41 }
 0x335   :  { %1300 = vst [vmem:[%s2415_s6 + $0x10] sm:$0xff] %v1284_v3  ;;  %v1269_v51 = vadd.f32 %v2343_v54, %v1246_v62 }
 0x336   :  { %1298 = vst [vmem:[%s2415_s6] sm:$0xff] %v1282_v11  ;;  %v1267_v52 = vadd.f32 %v2343_v54, %v1244_v23  ;;  %v1191_v43 = vpop.permute.xlu1 %1190 }
 0x337   :  { %v1285_v60 = vmax.f32 %v1269_v51, 0.0  ;;  %v1248_v1 = vmul.f32 %v1191_v43, %v1152_v7  ;;  %v1186_v25 = vpop.permute.xlu0 %1185 }
 0x338   :  { %v1283_v0 = vmax.f32 %v1267_v52, 0.0  ;;  %v1247_v39 = vmul.f32 %v1186_v25, %v1151_v48 }
 0x339   :  { %1301 = vst [vmem:[%s2415_s6 + $0x18] sm:$0xff] %v1285_v60  ;;  %v1271_v9 = vadd.f32 %v2343_v54, %v1248_v1 }
 0x33a   :  { %1299 = vst [vmem:[%s2415_s6 + $0x8] sm:$0xff] %v1283_v0  ;;  %v1270_v40 = vadd.f32 %v2343_v54, %v1247_v39  ;;  %v1201_v19 = vpop.permute.xlu1 %1200 }
 0x33b   :  { %v1287_v27 = vmax.f32 %v1271_v9, 0.0  ;;  %v1250_v21 = vmul.f32 %v1201_v19, %v1154_v58  ;;  %v1196_v46 = vpop.permute.xlu0 %1195 }
 0x33c   :  { %v1286_v55 = vmax.f32 %v1270_v40, 0.0  ;;  %v1249_v56 = vmul.f32 %v1196_v46, %v1153_v22 }
 0x33d   :  { %1303 = vst [vmem:[%s2415_s6 + $0x28] sm:$0xff] %v1287_v27  ;;  %v1273_v31 = vadd.f32 %v2343_v54, %v1250_v21 }
 0x33e   :  { %1302 = vst [vmem:[%s2415_s6 + $0x20] sm:$0xff] %v1286_v55  ;;  %v1272_v42 = vadd.f32 %v2343_v54, %v1249_v56  ;;  %v1211_v34 = vpop.permute.xlu1 %1210 }
 0x33f   :  { %v1289_v63 = vmax.f32 %v1273_v31, 0.0  ;;  %v1252_v17 = vmul.f32 %v1211_v34, %v1156_v29  ;;  %v1206_v14 = vpop.permute.xlu0 %1205 }
 0x340   :  { %v1288_v8 = vmax.f32 %v1272_v42, 0.0  ;;  %v1251_v12 = vmul.f32 %v1206_v14, %v1155_v38 }
 0x341   :  { %1305 = vst [vmem:[%s2415_s6 + $0x38] sm:$0xff] %v1289_v63  ;;  %v1275_v61 = vadd.f32 %v2343_v54, %v1252_v17 }
 0x342   :  { %1304 = vst [vmem:[%s2415_s6 + $0x30] sm:$0xff] %v1288_v8  ;;  %v1274_v59 = vadd.f32 %v2343_v54, %v1251_v12  ;;  %v1221_v53 = vpop.permute.xlu1 %1220 }
 0x343   :  { %v1291_v26 = vmax.f32 %v1275_v61, 0.0  ;;  %v1254_v15 = vmul.f32 %v1221_v53, %v1158_v16  ;;  %v1216_v57 = vpop.permute.xlu0 %1215 }
 0x344   :  { %v1290_v44 = vmax.f32 %v1274_v59, 0.0  ;;  %v1253_v2 = vmul.f32 %v1216_v57, %v1157_v30 }
 0x345   :  { %1307 = vst [vmem:[%s2415_s6 + $0x48] sm:$0xff] %v1291_v26  ;;  %v1277_v13 = vadd.f32 %v2343_v54, %v1254_v15 }
 0x346   :  { %1306 = vst [vmem:[%s2415_s6 + $0x40] sm:$0xff] %v1290_v44  ;;  %v1276_v6 = vadd.f32 %v2343_v54, %v1253_v2  ;;  %v1231_v20 = vpop.permute.xlu1 %1230 }
 0x347   :  { %v1293_v36 = vmax.f32 %v1277_v13, 0.0  ;;  %v1256_v10 = vmul.f32 %v1231_v20, %v1160_v32  ;;  %v1226_v47 = vpop.permute.xlu0 %1225 }
 0x348   :  { %v1292_v37 = vmax.f32 %v1276_v6, 0.0  ;;  %v1255_v4 = vmul.f32 %v1226_v47, %v1159_v33 }
 0x349   :  { %1309 = vst [vmem:[%s2415_s6 + $0x58] sm:$0xff] %v1293_v36  ;;  %v1279_v28 = vadd.f32 %v2343_v54, %v1256_v10 }
 0x34a   :  { %1308 = vst [vmem:[%s2415_s6 + $0x50] sm:$0xff] %v1292_v37  ;;  %v1278_v50 = vadd.f32 %v2343_v54, %v1255_v4  ;;  %v1241_v18 = vpop.permute.xlu1 %1240 }
 0x34b   :  { %v1295_v41 = vmax.f32 %v1279_v28, 0.0  ;;  %v1258_v24 = vmul.f32 %v1241_v18, %v1162_v49  ;;  %v1236_v45 = vpop.permute.xlu0 %1235 }
 0x34c   :  { %v1294_v3 = vmax.f32 %v1278_v50, 0.0  ;;  %v1257_v62 = vmul.f32 %v1236_v45, %v1161_v35 }
 0x34d   :  { %1311 = vst [vmem:[%s2415_s6 + $0x68] sm:$0xff] %v1295_v41  ;;  %v1281_v5 = vadd.f32 %v2343_v54, %v1258_v24 }
 0x34e   :  { %1310 = vst [vmem:[%s2415_s6 + $0x60] sm:$0xff] %v1294_v3  ;;  %v1280_v11 = vadd.f32 %v2343_v54, %v1257_v62 }
 0x34f   :  { %v1297_v23 = vmax.f32 %v1281_v5, 0.0 }
 0x350   :  { %v1296_v7 = vmax.f32 %v1280_v11, 0.0 }
 0x351   :  { %1313 = vst [vmem:[%s2415_s6 + $0x78] sm:$0xff] %v1297_v23 }
 0x352   :  { %1312 = vst [vmem:[%s2415_s6 + $0x70] sm:$0xff] %v1296_v7 }

// kernel: gat_forward.7
= control target key start
LH: loop header
LB: loop body
LE: loop exit
PB: predicated region body
PF: predicated region fallthrough
CT: control target
= control target key end

     0   :  { %vm2934_vm0 = vcmask 7168   ;;  %v1836_v0 = vmov -1e+30   ;;  %v1837_v1 = vmov 0.0   ;;  %s2927_s0 = inlined_call_operand.<no memory space> [shape: s32[1], index: 0, kind: input, shape index: {}]   ;;  %s2928_s1 = inlined_call_operand.vmem [shape: f32[128,1], index: 1, kind: input, shape index: {}]   ;;  %s2929_s2 = inlined_call_operand.vmem [shape: f32[1,128], index: 2, kind: input, shape index: {}]   ;;  %s2930_s3 = inlined_call_operand.vmem [shape: s8[128,128], index: 3, kind: input, shape index: {}]   ;;  %s2931_s4 = inlined_call_operand.vmem [shape: f32[128,128], index: 4, kind: input, shape index: {}]   ;;  %s2932_s5 = inlined_call_operand.vmem [shape: f32[1,128], index: 5, kind: input, shape index: {}]   ;;  %s2933_s6 = inlined_call_operand.vmem [shape: f32[128,128], index: 6, kind: output, shape index: {}]  }
   0x1   :  { %29 = vst.msk [vmem:[#allocation2] sm:$0xff] %vm2934_vm0, %v1836_v0  ;;  %30 = vst.msk [vmem:[#allocation2 + $0x8] sm:$0xff] %vm2934_vm0, %v1836_v0  ;;  %p1513_p0 = scmp.le.s32.totalorder %s2927_s0, 0 }
   0x2   :  { %31 = vst.msk [vmem:[#allocation2 + $0x10] sm:$0xff] %vm2934_vm0, %v1836_v0  ;;  %32 = vst.msk [vmem:[#allocation2 + $0x18] sm:$0xff] %vm2934_vm0, %v1836_v0  ;;  %v84_v2 = vld [vmem:[%s2928_s1 + $0x8] sm:$0xff] (!%p1513_p0)  ;;  %v83_v3 = vld [vmem:[%s2928_s1] sm:$0xff] (!%p1513_p0)  ;;  %v1838_v4 = vmov (!%p1513_p0), 0  }
   0x3   :  { %33 = vst.msk [vmem:[#allocation2 + $0x20] sm:$0xff] %vm2934_vm0, %v1836_v0  ;;  %34 = vst.msk [vmem:[#allocation2 + $0x28] sm:$0xff] %vm2934_vm0, %v1836_v0  ;;  %1673 = vset.pattern.permute.xlu1 (!%p1513_p0), %v1838_v4  ;;  %1672 = vset.pattern.permute.xlu0 (!%p1513_p0), %v1838_v4  ;;  %v92_v5 = vld [vmem:[%s2928_s1 + $0x48] sm:$0xff] (!%p1513_p0)  ;;  %v91_v6 = vld [vmem:[%s2928_s1 + $0x40] sm:$0xff] (!%p1513_p0) }
   0x4   :  { %35 = vst.msk [vmem:[#allocation2 + $0x30] sm:$0xff] %vm2934_vm0, %v1836_v0  ;;  %36 = vst.msk [vmem:[#allocation2 + $0x38] sm:$0xff] %vm2934_vm0, %v1836_v0  ;;  %107 = vperm.xlu1 (!%p1513_p0), %1673, %v84_v2   ;;  %102 = vperm.xlu0 (!%p1513_p0), %1672, %v83_v3   ;;  %v93_v7 = vld [vmem:[%s2928_s1 + $0x50] sm:$0xff] (!%p1513_p0)  ;;  %v94_v9 = vld [vmem:[%s2928_s1 + $0x58] sm:$0xff] (!%p1513_p0) }
   0x5   :  { %37 = vst.msk [vmem:[#allocation2 + $0x40] sm:$0xff] %vm2934_vm0, %v1836_v0  ;;  %38 = vst.msk [vmem:[#allocation2 + $0x48] sm:$0xff] %vm2934_vm0, %v1836_v0  ;;  %v85_v8 = vld [vmem:[%s2928_s1 + $0x10] sm:$0xff] (!%p1513_p0)  ;;  %v86_v10 = vld [vmem:[%s2928_s1 + $0x18] sm:$0xff] (!%p1513_p0) }
   0x6   :  { %39 = vst.msk [vmem:[#allocation2 + $0x50] sm:$0xff] %vm2934_vm0, %v1836_v0  ;;  %40 = vst.msk [vmem:[#allocation2 + $0x58] sm:$0xff] %vm2934_vm0, %v1836_v0  ;;  %v95_v11 = vld [vmem:[%s2928_s1 + $0x60] sm:$0xff] (!%p1513_p0)  ;;  %v96_v13 = vld [vmem:[%s2928_s1 + $0x68] sm:$0xff] (!%p1513_p0) }
   0x7   :  { %41 = vst.msk [vmem:[#allocation2 + $0x60] sm:$0xff] %vm2934_vm0, %v1836_v0  ;;  %42 = vst.msk [vmem:[#allocation2 + $0x68] sm:$0xff] %vm2934_vm0, %v1836_v0  ;;  %v87_v12 = vld [vmem:[%s2928_s1 + $0x20] sm:$0xff] (!%p1513_p0)  ;;  %v88_v14 = vld [vmem:[%s2928_s1 + $0x28] sm:$0xff] (!%p1513_p0) }
   0x8   :  { %43 = vst.msk [vmem:[#allocation2 + $0x70] sm:$0xff] %vm2934_vm0, %v1836_v0  ;;  %44 = vst.msk [vmem:[#allocation2 + $0x78] sm:$0xff] %vm2934_vm0, %v1836_v0  ;;  %147 = vperm.xlu1 (!%p1513_p0), %1673, %v92_v5   ;;  %142 = vperm.xlu0 (!%p1513_p0), %1672, %v91_v6   ;;  %v97_v15 = vld [vmem:[%s2928_s1 + $0x70] sm:$0xff] (!%p1513_p0)  ;;  %v98_v17 = vld [vmem:[%s2928_s1 + $0x78] sm:$0xff] (!%p1513_p0) }
   0x9   :  { %45 = vst.msk [vmem:[#allocation3] sm:$0xff] %vm2934_vm0, %v1837_v1  ;;  %46 = vst.msk [vmem:[#allocation3 + $0x8] sm:$0xff] %vm2934_vm0, %v1837_v1  ;;  %v89_v16 = vld [vmem:[%s2928_s1 + $0x30] sm:$0xff] (!%p1513_p0)  ;;  %v90_v18 = vld [vmem:[%s2928_s1 + $0x38] sm:$0xff] (!%p1513_p0) }
   0xa   :  { %47 = vst.msk [vmem:[#allocation3 + $0x10] sm:$0xff] %vm2934_vm0, %v1837_v1  ;;  %48 = vst.msk [vmem:[#allocation3 + $0x18] sm:$0xff] %vm2934_vm0, %v1837_v1  ;;  %v250_v19 = vld [vmem:[%s2930_s3] sm:$0xff] (!%p1513_p0)  ;;  %v252_v20 = vld [vmem:[%s2930_s3 + $0x10] sm:$0xff] (!%p1513_p0) }
   0xb   :  { %49 = vst.msk [vmem:[#allocation3 + $0x20] sm:$0xff] %vm2934_vm0, %v1837_v1  ;;  %50 = vst.msk [vmem:[#allocation3 + $0x28] sm:$0xff] %vm2934_vm0, %v1837_v1  ;;  %vm254_vm1 = vnez (!%p1513_p0), %v250_v19  ;;  %vm256_vm2 = vnez (!%p1513_p0), %v252_v20  ;;  %v251_v32 = vld [vmem:[%s2930_s3 + $0x8] sm:$0xff] (!%p1513_p0)  ;;  %v253_v43 = vld [vmem:[%s2930_s3 + $0x18] sm:$0xff] (!%p1513_p0) }
   0xc   :  { %51 = vst.msk [vmem:[#allocation3 + $0x30] sm:$0xff] %vm2934_vm0, %v1837_v1  ;;  %52 = vst.msk [vmem:[#allocation3 + $0x38] sm:$0xff] %vm2934_vm0, %v1837_v1  ;;  %152 = vperm.xlu1 (!%p1513_p0), %1673, %v93_v7   ;;  %112 = vperm.xlu0 (!%p1513_p0), %1672, %v85_v8   ;;  %v258_v21 = vsel (!%p1513_p0), %vm254_vm1, 16843009, %v1838_v4  ;;  %v260_v22 = vsel (!%p1513_p0), %vm256_vm2, 16843009, %v1838_v4  ;;  %vm255_vm3 = vnez (!%p1513_p0), %v251_v32  ;;  %vm257_vm7 = vnez (!%p1513_p0), %v253_v43 }
   0xd   :  { %53 = vst.msk [vmem:[#allocation3 + $0x40] sm:$0xff] %vm2934_vm0, %v1837_v1  ;;  %54 = vst.msk [vmem:[#allocation3 + $0x48] sm:$0xff] %vm2934_vm0, %v1837_v1  ;;  %v262_v23 = vunpack.c.0.s8 (!%p1513_p0), %v258_v21  ;;  %v263_v24 = vunpack.c.1.s8 (!%p1513_p0), %v258_v21  ;;  %v270_v25 = vunpack.c.0.s8 (!%p1513_p0), %v260_v22  ;;  %v271_v28 = vunpack.c.1.s8 (!%p1513_p0), %v260_v22  ;;  %v1993_v2 = vld [vmem:[%s2929_s2] ss:$0 sm:$0xff] (!%p1513_p0) }
   0xe   :  { %55 = vst.msk [vmem:[#allocation3 + $0x50] sm:$0xff] %vm2934_vm0, %v1837_v1  ;;  %56 = vst.msk [vmem:[#allocation3 + $0x58] sm:$0xff] %vm2934_vm0, %v1837_v1  ;;  %v264_v30 = vunpack.c.2.s8 (!%p1513_p0), %v258_v21  ;;  %v272_v31 = vunpack.c.2.s8 (!%p1513_p0), %v260_v22  ;;  %v265_v33 = vunpack.c.3.s8 (!%p1513_p0), %v258_v21  ;;  %v273_v34 = vunpack.c.3.s8 (!%p1513_p0), %v260_v22 }
   0xf   :  { %57 = vst.msk [vmem:[#allocation3 + $0x60] sm:$0xff] %vm2934_vm0, %v1837_v1  ;;  %58 = vst.msk [vmem:[#allocation3 + $0x68] sm:$0xff] %vm2934_vm0, %v1837_v1  ;;  %v278_v26 = vpack.c.b16 (!%p1513_p0), %v262_v23, %v262_v23  ;;  %v280_v27 = vpack.c.b16 (!%p1513_p0), %v263_v24, %v263_v24  ;;  %v294_v29 = vpack.c.b16 (!%p1513_p0), %v270_v25, %v270_v25  ;;  %v1975_v45 = vsel (!%p1513_p0), %vm255_vm3, 16843009, %v1838_v4 }
  0x10   :  { %59 = vst.msk [vmem:[#allocation3 + $0x70] sm:$0xff] %vm2934_vm0, %v1837_v1  ;;  %60 = vst.msk [vmem:[#allocation3 + $0x78] sm:$0xff] %vm2934_vm0, %v1837_v1  ;;  %157 = vperm.xlu1 (!%p1513_p0), %1673, %v94_v9   ;;  %117 = vperm.xlu0 (!%p1513_p0), %1672, %v86_v10   ;;  %v296_v37 = vpack.c.b16 (!%p1513_p0), %v271_v28, %v271_v28  ;;  %v282_v39 = vpack.c.b16 (!%p1513_p0), %v264_v30, %v264_v30  ;;  %v266_v51 = vunpack.c.0.s8 (!%p1513_p0), %v1975_v45 }
  0x11   :  { %61 = vst [vmem:[#allocation4] sm:$0xff] %v1837_v1  ;;  %62 = vst [vmem:[#allocation4 + $0x8] sm:$0xff] %v1837_v1  ;;  %v279_v35 = vpack.c.b8 (!%p1513_p0), %v278_v26, %v278_v26  ;;  %v281_v36 = vpack.c.b8 (!%p1513_p0), %v280_v27, %v280_v27  ;;  %v295_v38 = vpack.c.b8 (!%p1513_p0), %v294_v29, %v294_v29  ;;  %v1982_v54 = vsel (!%p1513_p0), %vm257_vm7, 16843009, %v1838_v4 }
  0x12   :  { %63 = vst [vmem:[#allocation4 + $0x10] sm:$0xff] %v1837_v1  ;;  %64 = vst [vmem:[#allocation4 + $0x18] sm:$0xff] %v1837_v1  ;;  %82 = sbr.rel (%p1513_p0) target bundleno = 673 (0x2a1), region = 29  ;;  %v298_v40 = vpack.c.b16 (!%p1513_p0), %v272_v31, %v272_v31  ;;  %v284_v41 = vpack.c.b16 (!%p1513_p0), %v265_v33, %v265_v33  ;;  %v300_v42 = vpack.c.b16 (!%p1513_p0), %v273_v34, %v273_v34  ;;  %v267_v55 = vunpack.c.1.s8 (!%p1513_p0), %v1975_v45 }
  0x13   :  { %65 = vst [vmem:[#allocation4 + $0x20] sm:$0xff] %v1837_v1  ;;  %66 = vst [vmem:[#allocation4 + $0x28] sm:$0xff] %v1837_v1  ;;  %vm310_vm4 = vnez (!%p1513_p0), %v279_v35  ;;  %vm311_vm5 = vnez (!%p1513_p0), %v281_v36  ;;  %v297_v44 = vpack.c.b8 (!%p1513_p0), %v296_v37, %v296_v37  ;;  %vm318_vm6 = vnez (!%p1513_p0), %v295_v38 }
  0x14   :  { %67 = vst [vmem:[#allocation4 + $0x30] sm:$0xff] %v1837_v1  ;;  %68 = vst [vmem:[#allocation4 + $0x38] sm:$0xff] %v1837_v1  ;;  %162 = vperm.xlu1 (!%p1513_p0), %1673, %v95_v11   ;;  %122 = vperm.xlu0 (!%p1513_p0), %1672, %v87_v12   ;;  %v283_v46 = vpack.c.b8 (!%p1513_p0), %v282_v39, %v282_v39  ;;  %v299_v47 = vpack.c.b8 (!%p1513_p0), %v298_v40, %v298_v40  ;;  %v326_v48 = vsel (!%p1513_p0), %vm310_vm4, 16843009, %v1838_v4 }
  0x15   :  { %69 = vst [vmem:[#allocation4 + $0x40] sm:$0xff] %v1837_v1  ;;  %70 = vst [vmem:[#allocation4 + $0x48] sm:$0xff] %v1837_v1  ;;  %v327_v49 = vsel (!%p1513_p0), %vm311_vm5, 16843009, %v1838_v4  ;;  %v285_v50 = vpack.c.b8 (!%p1513_p0), %v284_v41, %v284_v41  ;;  %v334_v52 = vsel (!%p1513_p0), %vm318_vm6, 16843009, %v1838_v4  ;;  %vm319_vm8 = vnez (!%p1513_p0), %v297_v44 }
  0x16   :  { %71 = vst [vmem:[#allocation4 + $0x50] sm:$0xff] %v1837_v1  ;;  %72 = vst [vmem:[#allocation4 + $0x58] sm:$0xff] %v1837_v1  ;;  %v301_v53 = vpack.c.b8 (!%p1513_p0), %v300_v42, %v300_v42  ;;  %vm312_vm9 = vnez (!%p1513_p0), %v283_v46  ;;  %v342_v56 = vunpack.c.0.s8 (!%p1513_p0), %v326_v48  ;;  %v343_v57 = vunpack.c.0.s8 (!%p1513_p0), %v327_v49 }
  0x17   :  { %73 = vst [vmem:[#allocation4 + $0x60] sm:$0xff] %v1837_v1  ;;  %74 = vst [vmem:[#allocation4 + $0x68] sm:$0xff] %v1837_v1  ;;  %vm320_vm10 = vnez (!%p1513_p0), %v299_v47  ;;  %v268_v58 = vunpack.c.2.s8 (!%p1513_p0), %v1975_v45  ;;  %v350_v59 = vunpack.c.0.s8 (!%p1513_p0), %v334_v52  ;;  %v335_v60 = vsel (!%p1513_p0), %vm319_vm8, 16843009, %v1838_v4 }
  0x18   :  { %75 = vst [vmem:[#allocation4 + $0x70] sm:$0xff] %v1837_v1  ;;  %76 = vst [vmem:[#allocation4 + $0x78] sm:$0xff] %v1837_v1  ;;  %167 = vperm.xlu1 (!%p1513_p0), %1673, %v96_v13   ;;  %127 = vperm.xlu0 (!%p1513_p0), %1672, %v88_v14   ;;  %vm313_vm11 = vnez (!%p1513_p0), %v285_v50  ;;  %v286_v61 = vpack.c.b16 (!%p1513_p0), %v266_v51, %v266_v51  ;;  %v328_v62 = vsel (!%p1513_p0), %vm312_vm9, 16843009, %v1838_v4  ;;  %vm321_vm12 = vnez (!%p1513_p0), %v301_v53 }
  0x19   :  { %v274_v63 = vunpack.c.0.s8 %v1982_v54  ;;  %v336_v0 = vsel %vm320_vm10, 16843009, %v1838_v4  ;;  %v288_v1 = vpack.c.b16 %v267_v55, %v267_v55  ;;  %vm1995_vm13 = vcmp.ne.s32.totalorder %v342_v56, 0 }
  0x1a   :  { %v351_v5 = vunpack.c.0.s8 %v335_v60  ;;  %v329_v6 = vsel %vm313_vm11, 16843009, %v1838_v4  ;;  %v290_v7 = vpack.c.b16 %v268_v58, %v268_v58  ;;  %vm2000_vm14 = vcmp.ne.s32.totalorder %v343_v57, 0 }
  0x1b   :  { %vm2004_vm15 = vcmp.ne.s32.totalorder %v350_v59, 0  ;;  %v344_v10 = vunpack.c.0.s8 %v328_v62  ;;  %v2009_v11 = vsel %vm321_vm12, 16843009, %v1838_v4  ;;  %v287_v12 = vpack.c.b8 %v286_v61, %v286_v61 }
  0x1c   :  { %172 = vperm.xlu1 %1673, %v97_v15   ;;  %132 = vperm.xlu0 %1672, %v89_v16   ;;  %v352_v15 = vunpack.c.0.s8 %v336_v0  ;;  %v302_v16 = vpack.c.b16 %v274_v63, %v274_v63  ;;  %v345_v21 = vunpack.c.0.s8 %v329_v6  ;;  %v289_v22 = vpack.c.b8 %v288_v1, %v288_v1 }
  0x1d   :  { %v353_v23 = vunpack.c.0.s8 %v2009_v11  ;;  %v291_v24 = vpack.c.b8 %v290_v7, %v290_v7  ;;  %v269_v25 = vunpack.c.3.s8 %v1975_v45  ;;  %v277_v26 = vunpack.c.3.s8 %v1982_v54 }
  0x1e   :  { %vm2018_vm2 = vcmp.ne.s32.totalorder %v351_v5, 0  ;;  %vm2022_vm3 = vcmp.ne.s32.totalorder %v344_v10, 0  ;;  %vm314_vm4 = vnez %v287_v12  ;;  %v303_v33 = vpack.c.b8 %v302_v16, %v302_v16 }
  0x1f   :  { %vm315_vm6 = vnez %v289_v22  ;;  %v330_v40 = vsel %vm314_vm4, 16843009, %v1838_v4  ;;  %vm2035_vm7 = vnez %v291_v24  ;;  %v292_v42 = vpack.c.b16 %v269_v25, %v269_v25 }
  0x20   :  { %177 = vperm.xlu1 %1673, %v98_v17   ;;  %137 = vperm.xlu0 %1672, %v90_v18   ;;  %v275_v17 = vunpack.c.1.s8 %v1982_v54  ;;  %v276_v18 = vunpack.c.2.s8 %v1982_v54  ;;  %vm2040_vm9 = vcmp.ne.s32.totalorder %v352_v15, 0  ;;  %vm2044_vm10 = vcmp.ne.s32.totalorder %v345_v21, 0 }
  0x21   :  { %v331_v50 = vsel %vm315_vm6, 16843009, %v1838_v4  ;;  %v2049_v52 = vpack.c.b16 %v277_v26, %v277_v26  ;;  %vm322_vm12 = vnez %v303_v33  ;;  %v346_v58 = vunpack.c.0.s8 %v330_v40 }
  0x22   :  { %v304_v34 = vpack.c.b16 %v275_v17, %v275_v17  ;;  %v2026_v35 = vpack.c.b16 %v276_v18, %v276_v18  ;;  %v2064_v59 = vsel %vm2035_vm7, 16843009, %v1838_v4  ;;  %vm2069_vm4 = vcmp.ne.s32.totalorder %v353_v23, 0 }
  0x23   :  { %v338_v5 = vsel %vm322_vm12, 16843009, %v1838_v4  ;;  %v347_v6 = vunpack.c.0.s8 %v331_v50  ;;  %v348_v16 = vunpack.c.0.s8 %v2064_v59  ;;  %v293_v17 = vpack.c.b8 %v292_v42, %v292_v42 }
  0x24   :  { %v305_v51 = vpack.c.b8 %v304_v34, %v304_v34  ;;  %v2961_v23 = vmov 0  ;;  %v354_v24 = vunpack.c.0.s8 %v338_v5 }
  0x25   :  { %vm2128_vm0 = vcmp.ne.s32.totalorder %v347_v6, 0 }
  0x26   :  { %vm2074_vm6 = vnez %v305_v51 }
  0x27   :  { %v339_v25 = vsel %vm2074_vm6, 16843009, %v1838_v4 }
  0x83   :  { %v108_v13 = vpop.permute.xlu1 %107  ;;  %v103_v14 = vpop.permute.xlu0 %102 }
  0x84   :  { %v187_v19 = vadd.f32 %v1993_v2, %v108_v13  ;;  %v186_v20 = vadd.f32 %v1993_v2, %v103_v14  ;;  %v307_v13 = vpack.c.b8 %v2026_v35, %v2026_v35  ;;  %v309_v35 = vpack.c.b8 %v2049_v52, %v2049_v52 }
  0x86   :  { %v219_v27 = vmul.f32 0.2, %v187_v19  ;;  %v218_v28 = vmul.f32 0.2, %v186_v20  ;;  %vm202_vm1 = vcmp.gt.f32.partialorder %v186_v20, 0.0  ;;  %vm203_vm5 = vcmp.gt.f32.partialorder %v187_v19, 0.0 }
  0x87   :  { %v148_v31 = vpop.permute.xlu1 %147  ;;  %v143_v32 = vpop.permute.xlu0 %142  ;;  %vm2103_vm12 = vnez %v307_v13 }
  0x88   :  { %v195_v36 = vadd.f32 %v1993_v2, %v148_v31  ;;  %v194_v37 = vadd.f32 %v1993_v2, %v143_v32  ;;  %v234_v38 = vsel %vm202_vm1, %v186_v20, %v218_v28  ;;  %v235_v45 = vsel %vm203_vm5, %v187_v19, %v219_v27 }
  0x89   :  { %v2032_v39 = vsel %vm1995_vm13, %v234_v38, -1e+30  ;;  %v2055_v56 = vsel %vm2000_vm14, %v235_v45, -1e+30  ;;  %v340_v50 = vsel %vm2103_vm12, 16843009, %v1838_v4 }
  0x8a   :  { %v227_v43 = vmul.f32 0.2, %v195_v36  ;;  %v226_v44 = vmul.f32 0.2, %v194_v37  ;;  %406 = vmax.xlane.f32.xlu0 %v2032_v39  ;;  %vm210_vm8 = vcmp.gt.f32.partialorder %v194_v37, 0.0  ;;  %vm211_vm11 = vcmp.gt.f32.partialorder %v195_v36, 0.0 }
  0x8b   :  { %v153_v48 = vpop.permute.xlu1 %152  ;;  %v113_v49 = vpop.permute.xlu0 %112  ;;  %v356_v7 = vunpack.c.0.s8 %v340_v50  ;;  %v858_v50 = vld [vmem:[%s2931_s4 + $0x18] sm:$0xff] }
  0x8c   :  { %v196_v53 = vadd.f32 %v1993_v2, %v153_v48  ;;  %v188_v54 = vadd.f32 %v1993_v2, %v113_v49  ;;  %v242_v55 = vsel %vm210_vm8, %v194_v37, %v226_v44  ;;  %v243_v62 = vsel %vm211_vm11, %v195_v36, %v227_v43 }
  0x8d   :  { %v2059_v57 = vsel %vm2004_vm15, %v242_v55, -1e+30  ;;  %v2084_v14 = vsel %vm2018_vm2, %v243_v62, -1e+30  ;;  %vm2094_vm11 = vcmp.ne.s32.totalorder %v346_v58, 0  ;;  %v2969_v43 = vmov 0 }
  0x8e   :  { %v228_v60 = vmul.f32 0.2, %v196_v53  ;;  %v220_v61 = vmul.f32 0.2, %v188_v54  ;;  %408 = vmax.xlane.f32.xlu0 %v2055_v56  ;;  %422 = vmax.xlane.f32.xlu1 %v2059_v57  ;;  %vm204_vm1 = vcmp.gt.f32.partialorder %v188_v54, 0.0  ;;  %vm212_vm5 = vcmp.gt.f32.partialorder %v196_v53, 0.0 }
  0x8f   :  { %v158_v0 = vpop.permute.xlu1 %157  ;;  %v118_v1 = vpop.permute.xlu0 %117  ;;  %v2962_v23 = vsel %vm2094_vm11, 4294967295, %v2961_v23  ;;  %v2970_v43 = vsel %vm2128_vm0, 4294967295, %v2969_v43  ;;  %v355_v44 = vunpack.c.0.s8 %v339_v25 }
  0x90   :  { %v197_v10 = vadd.f32 %v1993_v2, %v158_v0  ;;  %v189_v11 = vadd.f32 %v1993_v2, %v118_v1  ;;  %v236_v12 = vsel %vm204_vm1, %v188_v54, %v220_v61  ;;  %v244_v20 = vsel %vm212_vm5, %v196_v53, %v228_v60  ;;  %v859_v54 = vld [vmem:[%s2931_s4 + $0x20] sm:$0xff] }
  0x91   :  { %v2088_v15 = vsel %vm2022_vm3, %v236_v12, -1e+30  ;;  %v2109_v32 = vsel %vm2040_vm9, %v244_v20, -1e+30  ;;  %vm2115_vm1 = vnez %v293_v17  ;;  %v2975_v0 = vmov 0 }
  0x92   :  { %v229_v18 = vmul.f32 0.2, %v197_v10  ;;  %v221_v19 = vmul.f32 0.2, %v189_v11  ;;  %424 = vmax.xlane.f32.xlu0 %v2084_v14  ;;  %410 = vmax.xlane.f32.xlu1 %v2088_v15  ;;  %vm205_vm7 = vcmp.gt.f32.partialorder %v189_v11, 0.0  ;;  %vm213_vm8 = vcmp.gt.f32.partialorder %v197_v10, 0.0 }
  0x93   :  { %v163_v21 = vpop.permute.xlu1 %162  ;;  %v123_v22 = vpop.permute.xlu0 %122  ;;  %v333_v53 = vsel %vm2115_vm1, 16843009, %v1838_v4  ;;  %vm2159_vm1 = vcmp.ne.s32.totalorder %v348_v16, 0 }
  0x94   :  { %v198_v26 = vadd.f32 %v1993_v2, %v163_v21  ;;  %v190_v27 = vadd.f32 %v1993_v2, %v123_v22  ;;  %v237_v28 = vsel %vm205_vm7, %v189_v11, %v221_v19  ;;  %v245_v38 = vsel %vm213_vm8, %v197_v10, %v229_v18 }
  0x95   :  { %v2113_v33 = vsel %vm2044_vm10, %v237_v28, -1e+30  ;;  %vm2124_vm7 = vcmp.ne.s32.totalorder %v354_v24, 0  ;;  %v2139_v51 = vsel %vm2069_vm4, %v245_v38, -1e+30  ;;  %vm2148_vm8 = vnez %v309_v35 }
  0x96   :  { %v230_v36 = vmul.f32 0.2, %v198_v26  ;;  %v222_v37 = vmul.f32 0.2, %v190_v27  ;;  %426 = vmax.xlane.f32.xlu0 %v2109_v32  ;;  %412 = vmax.xlane.f32.xlu1 %v2113_v33  ;;  %vm206_vm5 = vcmp.gt.f32.partialorder %v190_v27, 0.0  ;;  %vm214_vm6 = vcmp.gt.f32.partialorder %v198_v26, 0.0 }
  0x97   :  { %v168_v40 = vpop.permute.xlu1 %167  ;;  %v128_v41 = vpop.permute.xlu0 %127  ;;  %v2976_v0 = vsel %vm2159_vm1, 4294967295, %v2975_v0  ;;  %v349_v12 = vunpack.c.0.s8 %v333_v53  ;;  %v341_v13 = vsel %vm2148_vm8, 16843009, %v1838_v4 }
  0x98   :  { %v199_v45 = vadd.f32 %v1993_v2, %v168_v40  ;;  %v191_v48 = vadd.f32 %v1993_v2, %v128_v41  ;;  %v238_v49 = vsel %vm206_vm5, %v190_v27, %v222_v37  ;;  %v246_v59 = vsel %vm214_vm6, %v198_v26, %v230_v36 }
  0x99   :  { %v2143_v52 = vsel %vm2094_vm11, %v238_v49, -1e+30  ;;  %vm2155_vm11 = vcmp.ne.s32.totalorder %v355_v44, 0  ;;  %v2167_v10 = vsel %vm2124_vm7, %v246_v59, -1e+30  ;;  %vm2192_vm8 = vcmp.ne.s32.totalorder %v349_v12, 0 }
  0x9a   :  { %v231_v55 = vmul.f32 0.2, %v199_v45  ;;  %v223_v58 = vmul.f32 0.2, %v191_v48  ;;  %428 = vmax.xlane.f32.xlu0 %v2139_v51  ;;  %414 = vmax.xlane.f32.xlu1 %v2143_v52  ;;  %vm207_vm12 = vcmp.gt.f32.partialorder %v191_v48, 0.0  ;;  %vm215_vm5 = vcmp.gt.f32.partialorder %v199_v45, 0.0 }
  0x9b   :  { %v173_v60 = vpop.permute.xlu1 %172  ;;  %v133_v61 = vpop.permute.xlu0 %132  ;;  %v357_v28 = vunpack.c.0.s8 %v341_v13  ;;  %v855_v44 = vld [vmem:[%s2931_s4] sm:$0xff]  ;;  %v861_v59 = vld [vmem:[%s2931_s4 + $0x30] sm:$0xff]  ;;  %v2248_v12 = vld [vmem:[#allocation2 + $0x8] sm:$0xff] }
  0x9c   :  { %v200_v1 = vadd.f32 %v1993_v2, %v173_v60  ;;  %v192_v5 = vadd.f32 %v1993_v2, %v133_v61  ;;  %v239_v6 = vsel %vm207_vm12, %v191_v48, %v223_v58  ;;  %v247_v18 = vsel %vm215_vm5, %v199_v45, %v231_v55  ;;  %v856_v45 = vld [vmem:[%s2931_s4 + $0x8] sm:$0xff]  ;;  %v857_v48 = vld [vmem:[%s2931_s4 + $0x10] sm:$0xff]  ;;  %v862_v60 = vld [vmem:[%s2931_s4 + $0x38] sm:$0xff] }
  0x9d   :  { %v2171_v11 = vsel %vm2128_vm0, %v239_v6, -1e+30  ;;  %vm2180_vm0 = vcmp.ne.s32.totalorder %v356_v7, 0  ;;  %v2186_v4 = vsel %vm2155_vm11, %v247_v18, -1e+30  ;;  %v1620_v49 = vpack.c.bf16 %v856_v45, %v855_v44  ;;  %v860_v55 = vld [vmem:[%s2931_s4 + $0x28] sm:$0xff] }
  0x9e   :  { %v232_v16 = vmul.f32 0.2, %v200_v1  ;;  %v224_v17 = vmul.f32 0.2, %v192_v5  ;;  %430 = vmax.xlane.f32.xlu0 %v2167_v10  ;;  %416 = vmax.xlane.f32.xlu1 %v2171_v11  ;;  %vm208_vm6 = vcmp.gt.f32.partialorder %v192_v5, 0.0  ;;  %vm216_vm12 = vcmp.gt.f32.partialorder %v200_v1, 0.0 }
  0x9f   :  { %v178_v19 = vpop.permute.xlu1 %177  ;;  %v138_v20 = vpop.permute.xlu0 %137  ;;  %v1624_v53 = vpack.c.bf16 %v858_v50, %v857_v48  ;;  %1621 = vmatprep.subr.bf16.mxu0 %v1620_v49  ;;  %1652 = vmatprep.subr.bf16.mxu1 %v1620_v49  ;;  %v1628_v58 = vpack.c.bf16 %v860_v55, %v859_v54  ;;  %v1632_v61 = vpack.c.bf16 %v862_v60, %v861_v59  ;;  %v2246_v7 = vld [vmem:[#allocation2 + $0x40] sm:$0xff]  ;;  %v864_v18 = vld [vmem:[%s2931_s4 + $0x48] sm:$0xff]  ;;  %v2283_v44 = vld [vmem:[#allocation2 + $0x18] sm:$0xff] }
  0xa0   :  { %v201_v21 = vadd.f32 %v1993_v2, %v178_v19  ;;  %v193_v22 = vadd.f32 %v1993_v2, %v138_v20  ;;  %v240_v24 = vsel %vm208_vm6, %v192_v5, %v224_v17  ;;  %v248_v34 = vsel %vm216_vm12, %v200_v1, %v232_v16  ;;  %1623 = vmatpush3.bf16.msra.mxu0 %v1620_v49  ;;  %v2241_v1 = vld [vmem:[#allocation2] sm:$0xff]  ;;  %v2285_v45 = vld [vmem:[#allocation2 + $0x50] sm:$0xff]  ;;  %v868_v54 = vld [vmem:[%s2931_s4 + $0x68] sm:$0xff] }
  0xa1   :  { %v2190_v26 = vsel %vm2159_vm1, %v240_v24, -1e+30  ;;  %v2200_v36 = vsel %vm2180_vm0, %v248_v34, -1e+30  ;;  %vm2208_vm1 = vcmp.ne.s32.totalorder %v357_v28, 0  ;;  %1660 = vmatpush3.bf16.msra.mxu1 %v1620_v49  ;;  %1625 = vmatprep.subr.bf16.mxu0 %v1624_v53  ;;  %vm2983_vm12 = vcmask 7168  }
  0xa2   :  { %v233_v31 = vmul.f32 0.2, %v201_v21  ;;  %v225_v2 = vmul.f32 0.2, %v193_v22  ;;  %432 = vmax.xlane.f32.xlu0 %v2186_v4  ;;  %418 = vmax.xlane.f32.xlu1 %v2190_v26  ;;  %vm209_vm5 = vcmp.gt.f32.partialorder %v193_v22, 0.0  ;;  %vm217_vm6 = vcmp.gt.f32.partialorder %v201_v21, 0.0 }
  0xa3   :  { %1653 = vmatprep.subr.bf16.mxu1 %v1624_v53  ;;  %v863_v17 = vld [vmem:[%s2931_s4 + $0x40] sm:$0xff]  ;;  %v2265_v24 = vld [vmem:[#allocation2 + $0x48] sm:$0xff]  ;;  %v866_v34 = vld [vmem:[%s2931_s4 + $0x58] sm:$0xff] }
  0xa4   :  { %v241_v35 = vsel %vm209_vm5, %v193_v22, %v225_v2  ;;  %v249_v38 = vsel %vm217_vm6, %v201_v21, %v233_v31  ;;  %1627 = vmatpush3.bf16.msra.mxu0 %v1624_v53  ;;  %v1636_v21 = vpack.c.bf16 %v864_v18, %v863_v17  ;;  %v2263_v22 = vld [vmem:[#allocation2 + $0x10] sm:$0xff]  ;;  %vm2984_vm5 = vmmov %vm2983_vm12  ;;  %v394_v59 = vld [vmem:[#allocation2 + $0x20] sm:$0xff] }
  0xa5   :  { %v2204_v37 = vsel %vm2192_vm8, %v241_v35, -1e+30  ;;  %v2214_v41 = vsel %vm2208_vm1, %v249_v38, -1e+30  ;;  %1661 = vmatpush3.bf16.msra.mxu1 %v1624_v53  ;;  %1629 = vmatprep.subr.bf16.mxu0 %v1628_v58  ;;  %vm2985_vm6 = vmmov %vm2984_vm5  ;;  %v865_v2 = vld [vmem:[%s2931_s4 + $0x50] sm:$0xff]  ;;  %v867_v53 = vld [vmem:[%s2931_s4 + $0x60] sm:$0xff] }
  0xa6   :  { %434 = vmax.xlane.f32.xlu0 %v2200_v36  ;;  %420 = vmax.xlane.f32.xlu1 %v2204_v37  ;;  %v1640_v48 = vpack.c.bf16 %v866_v34, %v865_v2  ;;  %v2305_v60 = vld [vmem:[#allocation2 + $0x58] sm:$0xff]  ;;  %v869_v17 = vld [vmem:[%s2931_s4 + $0x70] sm:$0xff] }
  0xa7   :  { %1654 = vmatprep.subr.bf16.mxu1 %v1628_v58  ;;  %v870_v18 = vld [vmem:[%s2931_s4 + $0x78] sm:$0xff] }
  0xa8   :  { %1631 = vmatpush3.bf16.msra.mxu0 %v1628_v58 }
  0xa9   :  { %1662 = vmatpush3.bf16.msra.mxu1 %v1628_v58  ;;  %1633 = vmatprep.subr.bf16.mxu0 %v1632_v61 }
  0xaa   :  { %436 = vmax.xlane.f32.xlu0 %v2214_v41  ;;  %1655 = vmatprep.subr.bf16.mxu1 %v1632_v61 }
  0xac   :  { %1635 = vmatpush3.bf16.msra.mxu0 %v1632_v61 }
  0xad   :  { %1663 = vmatpush3.bf16.msra.mxu1 %v1632_v61  ;;  %1637 = vmatprep.subr.bf16.mxu0 %v1636_v21  ;;  %v1644_v61 = vpack.c.bf16 %v868_v54, %v867_v53 }
  0xae   :  { %1656 = vmatprep.subr.bf16.mxu1 %v1636_v21 }
  0xb0   :  { %1639 = vmatpush3.bf16.msra.mxu0 %v1636_v21 }
  0xb1   :  { %1664 = vmatpush3.bf16.msra.mxu1 %v1636_v21  ;;  %1641 = vmatprep.subr.bf16.mxu0 %v1640_v48 }
  0xb2   :  { %1657 = vmatprep.subr.bf16.mxu1 %v1640_v48 }
  0xb4   :  { %1643 = vmatpush3.bf16.msra.mxu0 %v1640_v48 }
  0xb5   :  { %1665 = vmatpush3.bf16.msra.mxu1 %v1640_v48  ;;  %1645 = vmatprep.subr.bf16.mxu0 %v1644_v61 }
  0xb6   :  { %1658 = vmatprep.subr.bf16.mxu1 %v1644_v61 }
  0xb8   :  { %1647 = vmatpush3.bf16.msra.mxu0 %v1644_v61 }
  0xb9   :  { %1666 = vmatpush3.bf16.msra.mxu1 %v1644_v61 }
 0x117   :  { %v407_v5 = vpop.xlane.xlu0 %406 }
 0x118   :  { %v2244_v6 = vmax.f32 %v2241_v1, %v407_v5 }
 0x11a   :  { %1048 = vst.msk [vmem:[#allocation2] sm:$0xff] %vm2983_vm12, %v2244_v6  ;;  %504 = vperm.xlu1 %1673, %v2244_v6   ;;  %vm2986_vm12 = vmmov %vm2984_vm5  ;;  %v454_v2 = vsub.f32 %v2241_v1, %v2244_v6  ;;  %v396_v1 = vld [vmem:[#allocation2 + $0x30] sm:$0xff]  ;;  %v2335_v6 = vld [vmem:[#allocation2 + $0x68] sm:$0xff] }
 0x11b   :  { %v423_v13 = vpop.xlane.xlu1 %422  ;;  %v409_v16 = vpop.xlane.xlu0 %408 }
 0x11c   :  { %v2260_v19 = vmax.f32 %v2246_v7, %v423_v13  ;;  %v439_v20 = vmax.f32 %v2248_v12, %v409_v16  ;;  %v470_v61 = vmul.f32 1.442695, %v454_v2 }
 0x11e   :  { %1056 = vst.msk [vmem:[#allocation2 + $0x40] sm:$0xff] %vm2984_vm5, %v2260_v19  ;;  %544 = vperm.xlu0 %1672, %v2260_v19   ;;  %509 = vperm.xlu1 %1673, %v439_v20   ;;  %v455_v5 = vsub.f32 %v2248_v12, %v439_v20  ;;  %v2325_v12 = vld [vmem:[#allocation2 + $0x60] sm:$0xff]  ;;  %v462_v2 = vsub.f32 %v2246_v7, %v2260_v19  ;;  %v2357_v19 = vld [vmem:[#allocation2 + $0x78] sm:$0xff] }
 0x11f   :  { %1049 = vst.msk [vmem:[#allocation2 + $0x8] sm:$0xff] %vm2985_vm6, %v439_v20  ;;  %v411_v28 = vpop.xlane.xlu1 %410  ;;  %v425_v31 = vpop.xlane.xlu0 %424  ;;  %vm2987_vm6 = vmmov %vm2984_vm5  ;;  %v1648_v20 = vpack.c.bf16 %v870_v18, %v869_v17 }
 0x120   :  { %v2278_v35 = vmax.f32 %v2263_v22, %v411_v28  ;;  %v2281_v38 = vmax.f32 %v2265_v24, %v425_v31  ;;  %v2323_v31 = vld [vmem:[#allocation2 + $0x28] sm:$0xff]  ;;  %v472_v34 = vmul.f32 1.442695, %v455_v5 }
 0x121   :  { %1649 = vmatprep.subr.bf16.mxu0 %v1648_v20  ;;  %1659 = vmatprep.subr.bf16.mxu1 %v1648_v20 }
 0x122   :  { %1050 = vst.msk [vmem:[#allocation2 + $0x10] sm:$0xff] %vm2986_vm12, %v2278_v35  ;;  %514 = vperm.xlu0 %1672, %v2278_v35   ;;  %549 = vperm.xlu1 %1673, %v2281_v38   ;;  %vm2988_vm12 = vmmov %vm2984_vm5  ;;  %1674 = vpow2.f32 %v472_v34 }
 0x123   :  { %1057 = vst.msk [vmem:[#allocation2 + $0x48] sm:$0xff] %vm2984_vm5, %v2281_v38  ;;  %v413_v49 = vpop.xlane.xlu1 %412  ;;  %v427_v50 = vpop.xlane.xlu0 %426  ;;  %1651 = vmatpush3.bf16.msra.mxu0 %v1648_v20  ;;  %1667 = vmatpush3.bf16.msra.mxu1 %v1648_v20  ;;  %v2344_v20 = vld [vmem:[#allocation2 + $0x70] sm:$0xff]  ;;  %1676 = vpow2.f32 %v470_v61 }
 0x124   :  { %v2300_v55 = vmax.f32 %v2283_v44, %v413_v49  ;;  %v2303_v58 = vmax.f32 %v2285_v45, %v427_v50 }
 0x126   :  { %1051 = vst.msk [vmem:[#allocation2 + $0x18] sm:$0xff] %vm2987_vm6, %v2300_v55  ;;  %519 = vperm.xlu0 %1672, %v2300_v55   ;;  %554 = vperm.xlu1 %1673, %v2303_v58   ;;  %vm2989_vm6 = vmmov %vm2984_vm5 }
 0x127   :  { %1058 = vst.msk [vmem:[#allocation2 + $0x50] sm:$0xff] %vm2988_vm12, %v2303_v58  ;;  %v415_v13 = vpop.xlane.xlu1 %414  ;;  %v429_v16 = vpop.xlane.xlu0 %428  ;;  %vm2990_vm12 = vmmov %vm2984_vm5 }
 0x128   :  { %v442_v21 = vmax.f32 %v394_v59, %v415_v13  ;;  %v2321_v28 = vmax.f32 %v2305_v60, %v429_v16 }
 0x12a   :  { %1052 = vst.msk [vmem:[#allocation2 + $0x20] sm:$0xff] %vm2984_vm5, %v442_v21  ;;  %524 = vperm.xlu0 %1672, %v442_v21   ;;  %559 = vperm.xlu1 %1673, %v2321_v28   ;;  %v458_v48 = vsub.f32 %v394_v59, %v442_v21  ;;  %v456_v59 = vsub.f32 %v2263_v22, %v2278_v35  ;;  %v397_v21 = vld [vmem:[#allocation2 + $0x38] sm:$0xff] }
 0x12b   :  { %1059 = vst.msk [vmem:[#allocation2 + $0x58] sm:$0xff] %vm2989_vm6, %v2321_v28  ;;  %v417_v49 = vpop.xlane.xlu1 %416  ;;  %v431_v50 = vpop.xlane.xlu0 %430  ;;  %vm2991_vm6 = vmmov %vm2984_vm5  ;;  %v457_v35 = vsub.f32 %v2283_v44, %v2300_v55 }
 0x12c   :  { %v443_v53 = vmax.f32 %v2323_v31, %v417_v49  ;;  %v450_v54 = vmax.f32 %v2325_v12, %v431_v50  ;;  %v478_v5 = vmul.f32 1.442695, %v458_v48  ;;  %v474_v22 = vmul.f32 1.442695, %v456_v59 }
 0x12d   :  { %v476_v55 = vmul.f32 1.442695, %v457_v35 }
 0x12e   :  { %1053 = vst.msk [vmem:[#allocation2 + $0x28] sm:$0xff] %vm2990_vm12, %v443_v53  ;;  %529 = vperm.xlu0 %1672, %v443_v53   ;;  %564 = vperm.xlu1 %1673, %v450_v54   ;;  %vm2992_vm12 = vmmov %vm2984_vm5  ;;  %1678 = vpow2.f32 %v478_v5  ;;  %v459_v59 = vsub.f32 %v2323_v31, %v443_v53 }
 0x12f   :  { %1060 = vst.msk [vmem:[#allocation2 + $0x60] sm:$0xff] %vm2984_vm5, %v450_v54  ;;  %v419_v13 = vpop.xlane.xlu1 %418  ;;  %v433_v16 = vpop.xlane.xlu0 %432 }
 0x130   :  { %v444_v17 = vmax.f32 %v396_v1, %v419_v13  ;;  %v2342_v18 = vmax.f32 %v2335_v6, %v433_v16  ;;  %v464_v13 = vsub.f32 %v2285_v45, %v2303_v58  ;;  %v2371_v45 = vpop.eup %1674  ;;  %v480_v31 = vmul.f32 1.442695, %v459_v59 }
 0x132   :  { %v460_v49 = vsub.f32 %v396_v1, %v444_v17  ;;  %1054 = vst.msk [vmem:[#allocation2 + $0x30] sm:$0xff] %vm2991_vm6, %v444_v17  ;;  %534 = vperm.xlu0 %1672, %v444_v17   ;;  %569 = vperm.xlu1 %1673, %v2342_v18   ;;  %v486_v1 = vmul.f32 1.442695, %v462_v2  ;;  %vm2993_vm6 = vmmov %vm2984_vm5  ;;  %v490_v58 = vmul.f32 1.442695, %v464_v13  ;;  %v466_v17 = vsub.f32 %v2325_v12, %v450_v54 }
 0x133   :  { %1061 = vst.msk [vmem:[#allocation2 + $0x68] sm:$0xff] %vm2992_vm12, %v2342_v18  ;;  %v421_v34 = vpop.xlane.xlu1 %420  ;;  %v435_v48 = vpop.xlane.xlu0 %434  ;;  %vm2994_vm12 = vmmov %vm2984_vm5  ;;  %v463_v12 = vsub.f32 %v2265_v24, %v2281_v38  ;;  %v467_v38 = vsub.f32 %v2335_v6, %v2342_v18 }
 0x134   :  { %v482_v50 = vmul.f32 1.442695, %v460_v49  ;;  %v445_v61 = vmax.f32 %v397_v21, %v421_v34  ;;  %v2355_v7 = vmax.f32 %v2344_v20, %v435_v48  ;;  %v2380_v49 = vpop.eup %1676  ;;  %v494_v35 = vmul.f32 1.442695, %v466_v17 }
 0x136   :  { %1680 = vpow2.f32 %v482_v50  ;;  %1055 = vst.msk [vmem:[#allocation2 + $0x38] sm:$0xff] %vm2984_vm5, %v445_v61  ;;  %539 = vperm.xlu0 %1672, %v445_v61   ;;  %574 = vperm.xlu1 %1673, %v2355_v7   ;;  %v461_v53 = vsub.f32 %v397_v21, %v445_v61  ;;  %v488_v21 = vmul.f32 1.442695, %v463_v12  ;;  %v465_v50 = vsub.f32 %v2305_v60, %v2321_v28 }
 0x137   :  { %1062 = vst.msk [vmem:[#allocation2 + $0x70] sm:$0xff] %vm2993_vm6, %v2355_v7  ;;  %1682 = vpow2.f32 %v474_v22  ;;  %v437_v5 = vpop.xlane.xlu0 %436  ;;  %v496_v60 = vmul.f32 1.442695, %v467_v38  ;;  %v2999_v63 = vsub.f32 %v2344_v20, %v2355_v7 }
 0x138   :  { %v2369_v16 = vmax.f32 %v2357_v19, %v437_v5  ;;  %1684 = vpow2.f32 %v486_v1  ;;  %v2382_v22 = vpop.eup %1678  ;;  %v484_v54 = vmul.f32 1.442695, %v461_v53  ;;  %v492_v24 = vmul.f32 1.442695, %v465_v50 }
 0x139   :  { %1686 = vpow2.f32 %v476_v55 }
 0x13a   :  { %1063 = vst.msk [vmem:[#allocation2 + $0x78] sm:$0xff] %vm2994_vm12, %v2369_v16  ;;  %766 = vperm.xlu0 %1672, %v2371_v45   ;;  %579 = vperm.xlu1 %1673, %v2369_v16   ;;  %1688 = vpow2.f32 %v490_v58  ;;  %v2998_v29 = vsub.f32 %v2357_v19, %v2369_v16 }
 0x13b   :  { %1690 = vpow2.f32 %v480_v31 }
 0x13c   :  { %1692 = vpow2.f32 %v494_v35 }
 0x13d   :  { %1694 = vpow2.f32 %v484_v54 }
 0x13e   :  { %781 = vperm.xlu0 %1672, %v2382_v22   ;;  %761 = vperm.xlu1 %1673, %v2380_v49   ;;  %1696 = vpow2.f32 %v488_v21 }
 0x13f   :  { %1698 = vpow2.f32 %v492_v24 }
 0x140   :  { %v2388_v34 = vpop.eup %1680  ;;  %1700 = vpow2.f32 %v496_v60 }
 0x141   :  { %v2390_v48 = vpop.eup %1682 }
 0x142   :  { %791 = vperm.xlu0 %1672, %v2388_v34   ;;  %771 = vperm.xlu1 %1673, %v2390_v48   ;;  %v2396_v61 = vpop.eup %1684 }
 0x143   :  { %v2398_v1 = vpop.eup %1686 }
 0x144   :  { %v2404_v13 = vpop.eup %1688 }
 0x145   :  { %v2406_v55 = vpop.eup %1690 }
 0x146   :  { %801 = vperm.xlu0 %1672, %v2396_v61   ;;  %776 = vperm.xlu1 %1673, %v2398_v1   ;;  %v2410_v28 = vpop.eup %1692 }
 0x147   :  { %v2412_v59 = vpop.eup %1694 }
 0x148   :  { %v2416_v6 = vpop.eup %1696 }
 0x149   :  { %v2419_v18 = vpop.eup %1698 }
 0x14a   :  { %811 = vperm.xlu0 %1672, %v2404_v13   ;;  %786 = vperm.xlu1 %1673, %v2406_v55   ;;  %v2422_v5 = vpop.eup %1700 }
 0x14e   :  { %821 = vperm.xlu0 %1672, %v2410_v28   ;;  %796 = vperm.xlu1 %1673, %v2412_v59  }
 0x152   :  { %806 = vperm.xlu1 %1673, %v2416_v6  }
 0x156   :  { %816 = vperm.xlu1 %1673, %v2419_v18  }
 0x15a   :  { %826 = vperm.xlu1 %1673, %v2422_v5  }
 0x199   :  { %v505_v58 = vpop.permute.xlu1 %504 }
 0x19a   :  { %v582_v17 = vsub.f32 %v2032_v39, %v505_v58 }
 0x19c   :  { %v598_v31 = vmul.f32 1.442695, %v582_v17 }
 0x19d   :  { %v510_v53 = vpop.permute.xlu1 %509  ;;  %v545_v35 = vpop.permute.xlu0 %544 }
 0x19e   :  { %1702 = vpow2.f32 %v598_v31  ;;  %v583_v12 = vsub.f32 %v2055_v56, %v510_v53  ;;  %v590_v54 = vsub.f32 %v2059_v57, %v545_v35 }
 0x1a0   :  { %v600_v21 = vmul.f32 1.442695, %v583_v12  ;;  %v614_v50 = vmul.f32 1.442695, %v590_v54 }
 0x1a1   :  { %v550_v24 = vpop.permute.xlu1 %549  ;;  %v515_v38 = vpop.permute.xlu0 %514 }
 0x1a2   :  { %1704 = vpow2.f32 %v600_v21  ;;  %v591_v60 = vsub.f32 %v2084_v14, %v550_v24  ;;  %v584_v44 = vsub.f32 %v2088_v15, %v515_v38 }
 0x1a3   :  { %1706 = vpow2.f32 %v614_v50 }
 0x1a4   :  { %v616_v2 = vmul.f32 1.442695, %v591_v60  ;;  %v602_v39 = vmul.f32 1.442695, %v584_v44 }
 0x1a5   :  { %v555_v58 = vpop.permute.xlu1 %554  ;;  %v520_v17 = vpop.permute.xlu0 %519 }
 0x1a6   :  { %1708 = vpow2.f32 %v616_v2  ;;  %v592_v31 = vsub.f32 %v2109_v32, %v555_v58  ;;  %v585_v56 = vsub.f32 %v2113_v33, %v520_v17 }
 0x1a7   :  { %1710 = vpow2.f32 %v602_v39 }
 0x1a8   :  { %v1703_v57 = vpop.eup %1702  ;;  %v618_v53 = vmul.f32 1.442695, %v592_v31  ;;  %v604_v35 = vmul.f32 1.442695, %v585_v56 }
 0x1a9   :  { %1596 = vmatprep.mubr.msk.f32.mxu0 %vm1995_vm13, %v1703_v57  ;;  %v560_v14 = vpop.permute.xlu1 %559  ;;  %v525_v12 = vpop.permute.xlu0 %524  ;;  %v630_v15 = vsel %vm1995_vm13, %v1703_v57, 0.0  ;;  %vm2995_vm13 = vnez %v2962_v23 }
 0x1aa   :  { %1712 = vpow2.f32 %v618_v53  ;;  %v593_v44 = vsub.f32 %v2139_v51, %v560_v14  ;;  %v586_v2 = vsub.f32 %v2143_v52, %v525_v12  ;;  %678 = vadd.xlane.f32.xlu0 %v630_v15 }
 0x1ab   :  { %1714 = vpow2.f32 %v604_v35 }
 0x1ac   :  { %v1705_v32 = vpop.eup %1704  ;;  %v620_v33 = vmul.f32 1.442695, %v593_v44  ;;  %v606_v54 = vmul.f32 1.442695, %v586_v2 }
 0x1ad   :  { %v2438_v21 = vpop.eup %1706  ;;  %1597 = vmatmul.mubr.msk.f32.vlgmr.msra.gmra.mrb[0].mxu0 %vm2000_vm14, %v1705_v32  ;;  %v565_v50 = vpop.permute.xlu1 %564  ;;  %v631_v3 = vsel %vm2000_vm14, %v1705_v32, 0.0  ;;  %vm2996_vm14 = vnez %v2970_v43 }
 0x1ae   :  { %v530_v24 = vpop.permute.xlu0 %529  ;;  %1716 = vpow2.f32 %v620_v33  ;;  %v594_v51 = vsub.f32 %v2167_v10, %v565_v50  ;;  %1608 = vmatprep.mubr.msk.f32.mxu1 %vm2004_vm15, %v2438_v21  ;;  %680 = vadd.xlane.f32.xlu1 %v631_v3  ;;  %v638_v43 = vsel %vm2004_vm15, %v2438_v21, 0.0 }
 0x1af   :  { %v587_v52 = vsub.f32 %v2171_v11, %v530_v24  ;;  %1718 = vpow2.f32 %v606_v54 }
 0x1b0   :  { %v2449_v38 = vpop.eup %1708  ;;  %v622_v60 = vmul.f32 1.442695, %v594_v51 }
 0x1b1   :  { %v608_v39 = vmul.f32 1.442695, %v587_v52  ;;  %v1711_v58 = vpop.eup %1710  ;;  %v570_v17 = vpop.permute.xlu1 %569  ;;  %1609 = vmatmul.mubr.msk.f32.vlgmr.msra.gmra.mrb[0].mxu1 %vm2018_vm2, %v2449_v38 }
 0x1b2   :  { %v535_v8 = vpop.permute.xlu0 %534  ;;  %1720 = vpow2.f32 %v622_v60  ;;  %v595_v10 = vsub.f32 %v2186_v4, %v570_v17  ;;  %1599 = vmatprep.mubr.msk.f32.mxu0 %vm2022_vm3, %v1711_v58  ;;  %v632_v31 = vsel %vm2022_vm3, %v1711_v58, 0.0  ;;  %vm2997_vm3 = vnez %v2976_v0 }
 0x1b3   :  { %v588_v11 = vsub.f32 %v2190_v26, %v535_v8  ;;  %1722 = vpow2.f32 %v608_v39  ;;  %682 = vadd.xlane.f32.xlu0 %v632_v31  ;;  %v639_v58 = vsel %vm2018_vm2, %v2449_v38, 0.0  ;;  %v500_v38 = vmul.f32 1.442695, %v2998_v29  ;;  %v655_v29 = vld [vmem:[#allocation3 + $0x48] sm:$0xff] }
 0x1b4   :  { %v1713_v56 = vpop.eup %1712  ;;  %v624_v57 = vmul.f32 1.442695, %v595_v10  ;;  %v498_v17 = vmul.f32 1.442695, %v2999_v63  ;;  %v671_v63 = vmul.f32 %v2416_v6, %v655_v29 }
 0x1b5   :  { %v610_v53 = vmul.f32 1.442695, %v588_v11  ;;  %v1715_v35 = vpop.eup %1714  ;;  %v575_v14 = vpop.permute.xlu1 %574  ;;  %1611 = vmatprep.mubr.msk.f32.mxu1 %vm2040_vm9, %v1713_v56  ;;  %v640_v39 = vsel %vm2040_vm9, %v1713_v56, 0.0 }
 0x1b6   :  { %v540_v12 = vpop.permute.xlu0 %539  ;;  %1724 = vpow2.f32 %v624_v57  ;;  %v596_v4 = vsub.f32 %v2200_v36, %v575_v14  ;;  %1600 = vmatmul.mubr.msk.f32.gmra.mrb[2].mxu0 %vm2044_vm10, %v1715_v35  ;;  %v633_v26 = vsel %vm2044_vm10, %v1715_v35, 0.0  ;;  %v646_v14 = vld [vmem:[#allocation3] sm:$0xff] }
 0x1b7   :  { %v589_v30 = vsub.f32 %v2204_v37, %v540_v12  ;;  %1726 = vpow2.f32 %v610_v53  ;;  %684 = vadd.xlane.f32.xlu0 %v633_v26  ;;  %v662_v12 = vmul.f32 %v2380_v49, %v646_v14  ;;  %v647_v26 = vld [vmem:[#allocation3 + $0x8] sm:$0xff] }
 0x1b8   :  { %v1717_v15 = vpop.eup %1716  ;;  %v626_v44 = vmul.f32 1.442695, %v596_v4 }
 0x1b9   :  { %v612_v2 = vmul.f32 1.442695, %v589_v30  ;;  %v1719_v32 = vpop.eup %1718  ;;  %v580_v33 = vpop.permute.xlu1 %579  ;;  %1612 = vmatmul.mubr.msk.f32.gmra.mrb[2].mxu1 %vm2069_vm4, %v1717_v15  ;;  %v641_v27 = vsel %vm2069_vm4, %v1717_v15, 0.0 }
 0x1ba   :  { %1728 = vpow2.f32 %v626_v44  ;;  %v597_v36 = vsub.f32 %v2214_v41, %v580_v33  ;;  %1602 = vmatprep.mubr.msk.f32.mxu0 %vm2995_vm13, %v1719_v32  ;;  %v634_v47 = vsel %vm2995_vm13, %v1719_v32, 0.0  ;;  %v2529_v40 = vpop.permute.xlu0 %766  ;;  %v663_v44 = vmul.f32 %v2371_v45, %v647_v26  ;;  %v648_v33 = vld [vmem:[#allocation3 + $0x10] sm:$0xff] }
 0x1bb   :  { %1730 = vpow2.f32 %v612_v2  ;;  %686 = vadd.xlane.f32.xlu1 %v634_v47 }
 0x1bc   :  { %v1721_v37 = vpop.eup %1720  ;;  %v628_v54 = vmul.f32 1.442695, %v597_v36  ;;  %v664_v36 = vmul.f32 %v2390_v48, %v648_v33 }
 0x1bd   :  { %v1723_v50 = vpop.eup %1722  ;;  %1614 = vmatprep.mubr.msk.f32.mxu1 %vm2124_vm7, %v1721_v37  ;;  %v642_v9 = vsel %vm2124_vm7, %v1721_v37, 0.0  ;;  %v2525_v19 = vpop.permute.xlu1 %761  ;;  %v649_v37 = vld [vmem:[#allocation3 + $0x18] sm:$0xff] }
 0x1be   :  { %1732 = vpow2.f32 %v628_v54  ;;  %1603 = vmatmul.mubr.msk.f32.gmra.mrb[4].mxu0 %vm2996_vm14, %v1723_v50  ;;  %v635_v41 = vsel %vm2996_vm14, %v1723_v50, 0.0  ;;  %v2533_v10 = vpop.permute.xlu0 %781  ;;  %v665_v49 = vmul.f32 %v2398_v1, %v649_v37 }
 0x1bf   :  { %688 = vadd.xlane.f32.xlu0 %v635_v41  ;;  %1734 = vpow2.f32 %v500_v38  ;;  %v650_v41 = vld [vmem:[#allocation3 + $0x20] sm:$0xff] }
 0x1c0   :  { %v1725_v24 = vpop.eup %1724  ;;  %1736 = vpow2.f32 %v498_v17  ;;  %v666_v45 = vmul.f32 %v2382_v22, %v650_v41 }
 0x1c1   :  { %v1727_v3 = vpop.eup %1726  ;;  %1615 = vmatmul.mubr.msk.f32.gmra.mrb[4].mxu1 %vm2155_vm11, %v1725_v24  ;;  %v643_v46 = vsel %vm2155_vm11, %v1725_v24, 0.0  ;;  %v2527_v16 = vpop.permute.xlu1 %771 }
 0x1c2   :  { %1605 = vmatprep.mubr.msk.f32.mxu0 %vm2997_vm3, %v1727_v3  ;;  %v636_v23 = vsel %vm2997_vm3, %v1727_v3, 0.0  ;;  %v2537_v7 = vpop.permute.xlu0 %791 }
 0x1c3   :  { %690 = vadd.xlane.f32.xlu1 %v636_v23  ;;  %v651_v23 = vld [vmem:[#allocation3 + $0x28] sm:$0xff] }
 0x1c4   :  { %v1729_v51 = vpop.eup %1728  ;;  %v667_v48 = vmul.f32 %v2406_v55, %v651_v23  ;;  %v656_v55 = vld [vmem:[#allocation3 + $0x50] sm:$0xff]  ;;  %v752_v23 = vld [vmem:[#allocation4 + $0x48] sm:$0xff] }
 0x1c5   :  { %v1731_v52 = vpop.eup %1730  ;;  %1617 = vmatprep.mubr.msk.f32.mxu1 %vm2180_vm0, %v1729_v51  ;;  %v644_v21 = vsel %vm2180_vm0, %v1729_v51, 0.0  ;;  %v2531_v8 = vpop.permute.xlu1 %776  ;;  %vm3000_vm0 = vmmov %vm2984_vm5 }
 0x1c6   :  { %1606 = vmatmul.mubr.msk.f32.gmra.mrb[6].mxu0 %vm2192_vm8, %v1731_v52  ;;  %v637_v60 = vsel %vm2192_vm8, %v1731_v52, 0.0  ;;  %v2541_v31 = vpop.permute.xlu0 %801  ;;  %vm3001_vm15 = vmmov %vm3000_vm0 }
 0x1c7   :  { %694 = vadd.xlane.f32.xlu1 %v638_v43  ;;  %692 = vadd.xlane.f32.xlu0 %v637_v60  ;;  %vm3002_vm2 = vmmov %vm3000_vm0  ;;  %v652_v43 = vld [vmem:[#allocation3 + $0x30] sm:$0xff] }
 0x1c8   :  { %v1733_v0 = vpop.eup %1732  ;;  %vm3003_vm9 = vmmov %vm3000_vm0  ;;  %v668_v1 = vmul.f32 %v2388_v34, %v652_v43  ;;  %v672_v34 = vmul.f32 %v2404_v13, %v656_v55  ;;  %v659_v13 = vld [vmem:[#allocation3 + $0x68] sm:$0xff] }
 0x1c9   :  { %1618 = vmatmul.mubr.msk.f32.gmra.mrb[6].mxu1 %vm2208_vm1, %v1733_v0  ;;  %v645_v42 = vsel %vm2208_vm1, %v1733_v0, 0.0  ;;  %v2519_v25 = vpop.eup %1734  ;;  %v2535_v20 = vpop.permute.xlu1 %786  ;;  %vm3004_vm10 = vmmov %vm3000_vm0 }
 0x1ca   :  { %v2522_v62 = vpop.eup %1736  ;;  %v2545_v57 = vpop.permute.xlu0 %811  ;;  %vm3005_vm4 = vmmov %vm3000_vm0 }
 0x1cb   :  { %698 = vadd.xlane.f32.xlu1 %v640_v39  ;;  %696 = vadd.xlane.f32.xlu0 %v639_v58  ;;  %v654_v39 = vld [vmem:[#allocation3 + $0x40] sm:$0xff]  ;;  %v653_v58 = vld [vmem:[#allocation3 + $0x38] sm:$0xff]  ;;  %vm3006_vm11 = vmmov %vm3000_vm0 }
 0x1cc   :  { %v670_v22 = vmul.f32 %v2396_v61, %v654_v39  ;;  %vm3007_vm7 = vmmov %vm3000_vm0  ;;  %v657_v61 = vld [vmem:[#allocation3 + $0x58] sm:$0xff] }
 0x1cd   :  { %v2539_v11 = vpop.permute.xlu1 %796  ;;  %vm3008_vm1 = vmmov %vm3000_vm0  ;;  %v746_v39 = vld [vmem:[#allocation4 + $0x18] sm:$0xff] }
 0x1ce   :  { %v2549_v35 = vpop.permute.xlu0 %821  ;;  %vm3009_vm8 = vmmov %vm3000_vm0 }
 0x1cf   :  { %702 = vadd.xlane.f32.xlu1 %v642_v9  ;;  %700 = vadd.xlane.f32.xlu0 %v641_v27  ;;  %v669_v27 = vmul.f32 %v2412_v59, %v653_v58  ;;  %vm3010_vm5 = vmmov %vm3000_vm0 }
 0x1d0   :  { %vm3011_vm6 = vmmov %vm3000_vm0 }
 0x1d1   :  { %v2543_v56 = vpop.permute.xlu1 %806  ;;  %vm3012_vm12 = vmmov %vm3000_vm0 }
 0x1d2   :  { %vm3013_vm13 = vmmov %vm3000_vm0 }
 0x1d3   :  { %706 = vadd.xlane.f32.xlu1 %v644_v21  ;;  %704 = vadd.xlane.f32.xlu0 %v643_v46  ;;  %vm3014_vm14 = vmmov %vm3000_vm0 }
 0x1d4   :  { %vm3015_vm3 = vmmov %vm3000_vm0 }
 0x1d5   :  { %v2547_v53 = vpop.permute.xlu1 %816 }
 0x1d7   :  { %708 = vadd.xlane.f32.xlu0 %v645_v42 }
 0x1d9   :  { %v2552_v4 = vpop.permute.xlu1 %826 }
 0x1e4   :  { %836 = vperm.xlu1 %1673, %v2519_v25  }
 0x1ed   :  { %831 = vperm.xlu0 %1672, %v2522_v62  }
 0x237   :  { %v679_v30 = vpop.xlane.xlu0 %678 }
 0x238   :  { %v710_v15 = vadd.f32 %v679_v30, %v662_v12  ;;  %v658_v12 = vld [vmem:[#allocation3 + $0x60] sm:$0xff] }
 0x239   :  { %v674_v26 = vmul.f32 %v2410_v28, %v658_v12 }
 0x23a   :  { %727 = vst.msk [vmem:[#allocation3] sm:$0xff] %vm3000_vm0, %v710_v15  ;;  %v673_v15 = vmul.f32 %v2419_v18, %v657_v61  ;;  %v756_v61 = vld [vmem:[#allocation4 + $0x68] sm:$0xff] }
 0x23b   :  { %v681_v2 = vpop.xlane.xlu1 %680 }
 0x23c   :  { %v711_v32 = vadd.f32 %v681_v2, %v663_v44 }
 0x23e   :  { %728 = vst.msk [vmem:[#allocation3 + $0x8] sm:$0xff] %vm3001_vm15, %v711_v32  ;;  %v660_v32 = vld [vmem:[#allocation3 + $0x70] sm:$0xff] }
 0x240   :  { %v683_v47 = vpop.xlane.xlu0 %682 }
 0x241   :  { %v712_v54 = vadd.f32 %v683_v47, %v664_v36  ;;  %v676_v36 = vmul.f32 %v2522_v62, %v660_v32  ;;  %v675_v47 = vmul.f32 %v2422_v5, %v659_v13  ;;  %v750_v13 = vld [vmem:[#allocation4 + $0x38] sm:$0xff] }
 0x243   :  { %729 = vst.msk [vmem:[#allocation3 + $0x10] sm:$0xff] %vm3002_vm2, %v712_v54 }
 0x244   :  { %v685_v50 = vpop.xlane.xlu0 %684 }
 0x245   :  { %v713_v24 = vadd.f32 %v685_v50, %v665_v49  ;;  %v661_v49 = vld [vmem:[#allocation3 + $0x78] sm:$0xff] }
 0x246   :  { %v677_v18 = vmul.f32 %v2519_v25, %v661_v49 }
 0x247   :  { %730 = vst.msk [vmem:[#allocation3 + $0x18] sm:$0xff] %vm3003_vm9, %v713_v24 }
 0x248   :  { %v687_v3 = vpop.xlane.xlu1 %686 }
 0x249   :  { %v714_v51 = vadd.f32 %v687_v3, %v666_v45  ;;  %v744_v45 = vld [vmem:[#allocation4 + $0x8] sm:$0xff]  ;;  %v743_v3 = vld [vmem:[#allocation4] sm:$0xff] }
 0x24a   :  { %v840_v62 = vmul.f32 %v2529_v40, %v744_v45  ;;  %v839_v5 = vmul.f32 %v2525_v19, %v743_v3  ;;  %v842_v19 = vmul.f32 %v2531_v8, %v746_v39  ;;  %v747_v8 = vld [vmem:[#allocation4 + $0x20] sm:$0xff] }
 0x24b   :  { %731 = vst.msk [vmem:[#allocation3 + $0x20] sm:$0xff] %vm3004_vm10, %v714_v51 }
 0x24c   :  { %v689_v52 = vpop.xlane.xlu0 %688 }
 0x24d   :  { %v715_v60 = vadd.f32 %v689_v52, %v667_v48  ;;  %v751_v48 = vld [vmem:[#allocation4 + $0x40] sm:$0xff] }
 0x24e   :  { %v847_v25 = vmul.f32 %v2541_v31, %v751_v48 }
 0x24f   :  { %732 = vst.msk [vmem:[#allocation3 + $0x28] sm:$0xff] %vm3005_vm4, %v715_v60 }
 0x250   :  { %v691_v0 = vpop.xlane.xlu1 %690 }
 0x251   :  { %v716_v9 = vadd.f32 %v691_v0, %v668_v1  ;;  %v848_v1 = vmul.f32 %v2543_v56, %v752_v23 }
 0x253   :  { %733 = vst.msk [vmem:[#allocation3 + $0x30] sm:$0xff] %vm3006_vm11, %v716_v9 }
 0x254   :  { %v695_v21 = vpop.xlane.xlu1 %694  ;;  %v693_v46 = vpop.xlane.xlu0 %692 }
 0x255   :  { %v718_v38 = vadd.f32 %v695_v21, %v670_v22  ;;  %v717_v42 = vadd.f32 %v693_v46, %v669_v27  ;;  %v745_v22 = vld [vmem:[#allocation4 + $0x10] sm:$0xff]  ;;  %v754_v27 = vld [vmem:[#allocation4 + $0x58] sm:$0xff] }
 0x256   :  { %v841_v21 = vmul.f32 %v2527_v16, %v745_v22  ;;  %v753_v46 = vld [vmem:[#allocation4 + $0x50] sm:$0xff]  ;;  %v850_v31 = vmul.f32 %v2547_v53, %v754_v27 }
 0x257   :  { %735 = vst.msk [vmem:[#allocation3 + $0x40] sm:$0xff] %vm3007_vm7, %v718_v38 }
 0x258   :  { %734 = vst.msk [vmem:[#allocation3 + $0x38] sm:$0xff] %vm3008_vm1, %v717_v42  ;;  %v699_v17 = vpop.xlane.xlu1 %698  ;;  %v697_v14 = vpop.xlane.xlu0 %696  ;;  %v849_v42 = vmul.f32 %v2545_v57, %v753_v46  ;;  %v852_v57 = vmul.f32 %v2552_v4, %v756_v61  ;;  %v757_v4 = vld [vmem:[#allocation4 + $0x70] sm:$0xff] }
 0x259   :  { %v720_v30 = vadd.f32 %v699_v17, %v672_v34  ;;  %v719_v59 = vadd.f32 %v697_v14, %v671_v63  ;;  %v748_v63 = vld [vmem:[#allocation4 + $0x28] sm:$0xff] }
 0x25a   :  { %v844_v16 = vmul.f32 %v2535_v20, %v748_v63  ;;  %v749_v20 = vld [vmem:[#allocation4 + $0x30] sm:$0xff] }
 0x25b   :  { %737 = vst.msk [vmem:[#allocation3 + $0x50] sm:$0xff] %vm3009_vm8, %v720_v30  ;;  %v843_v30 = vmul.f32 %v2533_v10, %v747_v8  ;;  %v846_v10 = vmul.f32 %v2539_v11, %v750_v13 }
 0x25c   :  { %736 = vst.msk [vmem:[#allocation3 + $0x48] sm:$0xff] %vm3010_vm5, %v719_v59  ;;  %v703_v44 = vpop.xlane.xlu1 %702  ;;  %v701_v2 = vpop.xlane.xlu0 %700  ;;  %v755_v59 = vld [vmem:[#allocation4 + $0x60] sm:$0xff] }
 0x25d   :  { %v722_v33 = vadd.f32 %v703_v44, %v674_v26  ;;  %v721_v6 = vadd.f32 %v701_v2, %v673_v15  ;;  %v851_v2 = vmul.f32 %v2549_v35, %v755_v59 }
 0x25f   :  { %739 = vst.msk [vmem:[#allocation3 + $0x60] sm:$0xff] %vm3011_vm6, %v722_v33 }
 0x260   :  { %738 = vst.msk [vmem:[#allocation3 + $0x58] sm:$0xff] %vm3012_vm12, %v721_v6  ;;  %v707_v37 = vpop.xlane.xlu1 %706  ;;  %v705_v54 = vpop.xlane.xlu0 %704 }
 0x261   :  { %v724_v28 = vadd.f32 %v707_v37, %v676_v36  ;;  %v723_v50 = vadd.f32 %v705_v54, %v675_v47  ;;  %v758_v47 = vld [vmem:[#allocation4 + $0x78] sm:$0xff]  ;;  %v845_v54 = vmul.f32 %v2537_v7, %v749_v20 }
 0x263   :  { %741 = vst.msk [vmem:[#allocation3 + $0x70] sm:$0xff] %vm3013_vm13, %v724_v28 }
 0x264   :  { %740 = vst.msk [vmem:[#allocation3 + $0x68] sm:$0xff] %vm3014_vm14, %v723_v50  ;;  %v709_v41 = vpop.xlane.xlu0 %708  ;;  %v837_v37 = vpop.permute.xlu1 %836 }
 0x265   :  { %v725_v24 = vadd.f32 %v709_v41, %v677_v18  ;;  %v854_v18 = vmul.f32 %v837_v37, %v758_v47 }
 0x267   :  { %742 = vst.msk [vmem:[#allocation3 + $0x78] sm:$0xff] %vm3015_vm3, %v725_v24 }
 0x26c   :  { %v832_v49 = vpop.permute.xlu0 %831 }
 0x26d   :  { %v853_v24 = vmul.f32 %v832_v49, %v757_v4 }
 0x280   :  { %v1598_v51 = vpop.f32.mrb[0].mxu0 }
 0x281   :  { %v1017_v52 = vadd.f32 %v1598_v51, %v840_v62  ;;  %v937_v43 = vpop.f32.mrb[1].mxu0 }
 0x282   :  { %v1016_v60 = vadd.f32 %v937_v43, %v839_v5 }
 0x283   :  { %1033 = vst [vmem:[#allocation4 + $0x8] sm:$0xff] %v1017_v52 }
 0x284   :  { %1032 = vst [vmem:[#allocation4] sm:$0xff] %v1016_v60  ;;  %v1610_v0 = vpop.f32.mrb[0].mxu1 }
 0x285   :  { %v1025_v58 = vadd.f32 %v1610_v0, %v848_v1  ;;  %v977_v9 = vpop.f32.mrb[1].mxu1 }
 0x286   :  { %v1024_v40 = vadd.f32 %v977_v9, %v847_v25 }
 0x287   :  { %1041 = vst [vmem:[#allocation4 + $0x48] sm:$0xff] %v1025_v58 }
 0x288   :  { %1040 = vst [vmem:[#allocation4 + $0x40] sm:$0xff] %v1024_v40 }
 0x289   :  { %v1601_v55 = vpop.f32.mrb[2].mxu0 }
 0x28a   :  { %v1019_v56 = vadd.f32 %v1601_v55, %v842_v19  ;;  %v947_v29 = vpop.f32.mrb[3].mxu0 }
 0x28b   :  { %v1018_v38 = vadd.f32 %v947_v29, %v841_v21 }
 0x28c   :  { %1035 = vst [vmem:[#allocation4 + $0x18] sm:$0xff] %v1019_v56  ;;  %v1613_v34 = vpop.f32.mrb[2].mxu1 }
 0x28d   :  { %1034 = vst [vmem:[#allocation4 + $0x10] sm:$0xff] %v1018_v38  ;;  %v1027_v17 = vadd.f32 %v1613_v34, %v850_v31  ;;  %v987_v14 = vpop.f32.mrb[3].mxu1 }
 0x28e   :  { %v1026_v12 = vadd.f32 %v987_v14, %v849_v42 }
 0x28f   :  { %1043 = vst [vmem:[#allocation4 + $0x58] sm:$0xff] %v1027_v17 }
 0x290   :  { %1042 = vst [vmem:[#allocation4 + $0x50] sm:$0xff] %v1026_v12 }
 0x291   :  { %v1604_v53 = vpop.f32.mrb[4].mxu0 }
 0x292   :  { %v1021_v26 = vadd.f32 %v1604_v53, %v844_v16  ;;  %v957_v15 = vpop.f32.mrb[5].mxu0 }
 0x293   :  { %v1020_v44 = vadd.f32 %v957_v15, %v843_v30 }
 0x294   :  { %1037 = vst [vmem:[#allocation4 + $0x28] sm:$0xff] %v1021_v26  ;;  %v1616_v32 = vpop.f32.mrb[4].mxu1 }
 0x295   :  { %1036 = vst [vmem:[#allocation4 + $0x20] sm:$0xff] %v1020_v44  ;;  %v1029_v33 = vadd.f32 %v1616_v32, %v852_v57  ;;  %v997_v6 = vpop.f32.mrb[5].mxu1 }
 0x296   :  { %v1028_v36 = vadd.f32 %v997_v6, %v851_v2 }
 0x297   :  { %1045 = vst [vmem:[#allocation4 + $0x68] sm:$0xff] %v1029_v33 }
 0x298   :  { %1044 = vst [vmem:[#allocation4 + $0x60] sm:$0xff] %v1028_v36 }
 0x299   :  { %v1607_v28 = vpop.f32.mrb[6].mxu0 }
 0x29a   :  { %v1023_v35 = vadd.f32 %v1607_v28, %v846_v10  ;;  %v967_v50 = vpop.f32.mrb[7].mxu0 }
 0x29b   :  { %v1022_v41 = vadd.f32 %v967_v50, %v845_v54 }
 0x29c   :  { %1039 = vst [vmem:[#allocation4 + $0x38] sm:$0xff] %v1023_v35  ;;  %v1619_v45 = vpop.f32.mrb[6].mxu1 }
 0x29d   :  { %1038 = vst [vmem:[#allocation4 + $0x30] sm:$0xff] %v1022_v41  ;;  %v1031_v3 = vadd.f32 %v1619_v45, %v854_v18  ;;  %v1007_v62 = vpop.f32.mrb[7].mxu1 }
 0x29e   :  { %v1030_v5 = vadd.f32 %v1007_v62, %v853_v24 }
 0x29f   :  { %1047 = vst [vmem:[#allocation4 + $0x78] sm:$0xff] %v1031_v3 }
 0x2a0   :  { %1046 = vst [vmem:[#allocation4 + $0x70] sm:$0xff] %v1030_v5 }
 0x2a1 PF:  { %v1069_v11 = vld [vmem:[#allocation3 + $0x10] sm:$0xff]  ;;  %v1067_v23 = vld [vmem:[#allocation3] sm:$0xff]  ;;  %v1070_v7 = vld [vmem:[#allocation3 + $0x18] sm:$0xff]  ;;  %v1839_v51 = vmov 0   ;;  %v1282_v47 = vlaneseq }
 0x2a2   :  { %1739 = vset.pattern.permute.xlu1 %v1839_v51  ;;  %1738 = vset.pattern.permute.xlu0 %v1839_v51  ;;  %vm1085_vm0 = vcmp.gt.f32.partialorder %v1069_v11, 0.0  ;;  %vm1083_vm15 = vcmp.gt.f32.partialorder %v1067_v23, 0.0  ;;  %vm1086_vm2 = vcmp.gt.f32.partialorder %v1070_v7, 0.0  ;;  %v1068_v48 = vld [vmem:[#allocation3 + $0x8] sm:$0xff]  ;;  %v1071_v43 = vld [vmem:[#allocation3 + $0x20] sm:$0xff]  ;;  %v1074_v39 = vld [vmem:[#allocation3 + $0x38] sm:$0xff] }
 0x2a3   :  { %v1072_v52 = vld [vmem:[#allocation3 + $0x28] sm:$0xff]  ;;  %v1101_v60 = vsel %vm1085_vm0, %v1069_v11, 1.0  ;;  %v1099_v1 = vsel %vm1083_vm15, %v1067_v23, 1.0  ;;  %v1102_v25 = vsel %vm1086_vm2, %v1070_v7, 1.0  ;;  %vm1084_vm9 = vcmp.gt.f32.partialorder %v1068_v48, 0.0  ;;  %v1073_v58 = vld [vmem:[#allocation3 + $0x30] sm:$0xff] }
 0x2a4   :  { %1740 = vrcp.f32 %v1101_v60  ;;  %v1100_v0 = vsel %vm1084_vm9, %v1068_v48, 1.0  ;;  %vm1088_vm10 = vcmp.gt.f32.partialorder %v1072_v52, 0.0  ;;  %vm1087_vm4 = vcmp.gt.f32.partialorder %v1071_v43, 0.0  ;;  %v1076_v40 = vld [vmem:[#allocation3 + $0x48] sm:$0xff]  ;;  %v1075_v19 = vld [vmem:[#allocation3 + $0x40] sm:$0xff]  ;;  %v1078_v46 = vld [vmem:[#allocation3 + $0x58] sm:$0xff] }
 0x2a5   :  { %1742 = vrcp.f32 %v1099_v1  ;;  %v1104_v9 = vsel %vm1088_vm10, %v1072_v52, 1.0  ;;  %v1103_v22 = vsel %vm1087_vm4, %v1071_v43, 1.0  ;;  %vm1090_vm11 = vcmp.gt.f32.partialorder %v1074_v39, 0.0  ;;  %v1077_v56 = vld [vmem:[#allocation3 + $0x50] sm:$0xff]  ;;  %v1080_v63 = vld [vmem:[#allocation3 + $0x68] sm:$0xff]  ;;  %v1079_v17 = vld [vmem:[#allocation3 + $0x60] sm:$0xff] }
 0x2a6   :  { %1744 = vrcp.f32 %v1102_v25  ;;  %vm1089_vm7 = vcmp.gt.f32.partialorder %v1073_v58, 0.0  ;;  %v1106_v27 = vsel %vm1090_vm11, %v1074_v39, 1.0  ;;  %vm1092_vm1 = vcmp.gt.f32.partialorder %v1076_v40, 0.0  ;;  %v1082_v61 = vld [vmem:[#allocation3 + $0x78] sm:$0xff]  ;;  %v1081_v30 = vld [vmem:[#allocation3 + $0x70] sm:$0xff]  ;;  %v1147_v54 = vld [vmem:[#allocation4] sm:$0xff] }
 0x2a7   :  { %1746 = vrcp.f32 %v1100_v0  ;;  %v1105_v21 = vsel %vm1089_vm7, %v1073_v58, 1.0  ;;  %vm1091_vm8 = vcmp.gt.f32.partialorder %v1075_v19, 0.0  ;;  %v1108_v31 = vsel %vm1092_vm1, %v1076_v40, 1.0  ;;  %v1149_v37 = vld [vmem:[#allocation4 + $0x10] sm:$0xff]  ;;  %v2604_v50 = vld [vmem:[%s2932_s5] ss:$0 sm:$0xff] }
 0x2a8   :  { %1748 = vrcp.f32 %v1104_v9  ;;  %v1107_v42 = vsel %vm1091_vm8, %v1075_v19, 1.0  ;;  %vm1094_vm5 = vcmp.gt.f32.partialorder %v1078_v46, 0.0  ;;  %vm1093_vm6 = vcmp.gt.f32.partialorder %v1077_v56, 0.0  ;;  %v1150_v41 = vld [vmem:[#allocation4 + $0x18] sm:$0xff]  ;;  %v1148_v24 = vld [vmem:[#allocation4 + $0x8] sm:$0xff]  ;;  %v1151_v48 = vld [vmem:[#allocation4 + $0x20] sm:$0xff] }
 0x2a9   :  { %1750 = vrcp.f32 %v1103_v22  ;;  %v1110_v14 = vsel %vm1094_vm5, %v1078_v46, 1.0  ;;  %v1109_v12 = vsel %vm1093_vm6, %v1077_v56, 1.0  ;;  %vm1096_vm12 = vcmp.gt.f32.partialorder %v1080_v63, 0.0  ;;  %v1152_v51 = vld [vmem:[#allocation4 + $0x28] sm:$0xff]  ;;  %v1154_v9 = vld [vmem:[#allocation4 + $0x38] sm:$0xff]  ;;  %v1153_v22 = vld [vmem:[#allocation4 + $0x30] sm:$0xff] }
 0x2aa   :  { %1752 = vrcp.f32 %v1106_v27  ;;  %vm1095_vm13 = vcmp.gt.f32.partialorder %v1079_v17, 0.0  ;;  %v1112_v59 = vsel %vm1096_vm12, %v1080_v63, 1.0  ;;  %vm1098_vm14 = vcmp.gt.f32.partialorder %v1082_v61, 0.0 }
 0x2ab   :  { %1754 = vrcp.f32 %v1105_v21  ;;  %v1111_v26 = vsel %vm1095_vm13, %v1079_v17, 1.0  ;;  %vm1097_vm3 = vcmp.gt.f32.partialorder %v1081_v30, 0.0  ;;  %v1114_v57 = vsel %vm1098_vm14, %v1082_v61, 1.0 }
 0x2ac   :  { %1756 = vrcp.f32 %v1108_v31  ;;  %v1113_v2 = vsel %vm1097_vm3, %v1081_v30, 1.0  ;;  %v2599_v4 = vand.u32 127, %v1282_v47  ;;  %v1156_v31 = vld [vmem:[#allocation4 + $0x48] sm:$0xff]  ;;  %v1157_v30 = vld [vmem:[#allocation4 + $0x50] sm:$0xff] }
 0x2ad   :  { %1758 = vrcp.f32 %v1107_v42 }
 0x2ae   :  { %v1741_v55 = vpop.eup %1740  ;;  %1760 = vrcp.f32 %v1110_v14  ;;  %vm1284_vm0 = vcmp.lt.s32.totalorder %v2599_v4, 4 }
 0x2af   :  { %v1743_v29 = vpop.eup %1742  ;;  %1175 = vperm.xlu1 %1739, %v1741_v55   ;;  %1762 = vrcp.f32 %v1109_v12 }
 0x2b0   :  { %v1745_v38 = vpop.eup %1744  ;;  %1165 = vperm.xlu0 %1738, %v1743_v29   ;;  %1764 = vrcp.f32 %v1112_v59 }
 0x2b1   :  { %v1747_v34 = vpop.eup %1746  ;;  %1766 = vrcp.f32 %v1111_v26 }
 0x2b2   :  { %v1749_v8 = vpop.eup %1748  ;;  %1768 = vrcp.f32 %v1114_v57 }
 0x2b3   :  { %1180 = vperm.xlu1 %1739, %v1745_v38   ;;  %v1751_v16 = vpop.eup %1750  ;;  %1770 = vrcp.f32 %v1113_v2  ;;  %v1155_v38 = vld [vmem:[#allocation4 + $0x40] sm:$0xff] }
 0x2b4   :  { %1170 = vperm.xlu0 %1738, %v1747_v34   ;;  %v1753_v53 = vpop.eup %1752 }
 0x2b5   :  { %v1755_v15 = vpop.eup %1754 }
 0x2b6   :  { %v1757_v44 = vpop.eup %1756 }
 0x2b7   :  { %1190 = vperm.xlu1 %1739, %v1749_v8   ;;  %v1759_v32 = vpop.eup %1758 }
 0x2b8   :  { %1185 = vperm.xlu0 %1738, %v1751_v16   ;;  %v1761_v13 = vpop.eup %1760  ;;  %v1158_v16 = vld [vmem:[#allocation4 + $0x58] sm:$0xff] }
 0x2b9   :  { %v1763_v33 = vpop.eup %1762 }
 0x2ba   :  { %v1765_v6 = vpop.eup %1764 }
 0x2bb   :  { %1200 = vperm.xlu1 %1739, %v1753_v53   ;;  %v1767_v20 = vpop.eup %1766 }
 0x2bc   :  { %1195 = vperm.xlu0 %1738, %v1755_v15   ;;  %v1769_v36 = vpop.eup %1768 }
 0x2bd   :  { %v1771_v10 = vpop.eup %1770 }
 0x2bf   :  { %1210 = vperm.xlu1 %1739, %v1757_v44  }
 0x2c0   :  { %1205 = vperm.xlu0 %1738, %v1759_v32  }
 0x2c3   :  { %1220 = vperm.xlu1 %1739, %v1761_v13   ;;  %v1160_v13 = vld [vmem:[#allocation4 + $0x68] sm:$0xff] }
 0x2c4   :  { %1215 = vperm.xlu0 %1738, %v1763_v33   ;;  %v1159_v33 = vld [vmem:[#allocation4 + $0x60] sm:$0xff] }
 0x2c7   :  { %1230 = vperm.xlu1 %1739, %v1765_v6  }
 0x2c8   :  { %1225 = vperm.xlu0 %1738, %v1767_v20  }
 0x2cb   :  { %1240 = vperm.xlu1 %1739, %v1769_v36  }
 0x2cc   :  { %1235 = vperm.xlu0 %1738, %v1771_v10  }
 0x32e   :  { %v1176_v49 = vpop.permute.xlu1 %1175 }
 0x32f   :  { %v1245_v28 = vmul.f32 %v1176_v49, %v1149_v37  ;;  %v1166_v35 = vpop.permute.xlu0 %1165 }
 0x330   :  { %v1243_v18 = vmul.f32 %v1166_v35, %v1147_v54  ;;  %v1161_v35 = vld [vmem:[#allocation4 + $0x70] sm:$0xff] }
 0x331   :  { %v2611_v62 = vadd.f32 %v2604_v50, %v1245_v28  ;;  %v1162_v28 = vld [vmem:[#allocation4 + $0x78] sm:$0xff] }
 0x332   :  { %v1181_v45 = vpop.permute.xlu1 %1180  ;;  %v2608_v3 = vadd.f32 %v2604_v50, %v1243_v18 }
 0x333   :  { %v1171_v5 = vpop.permute.xlu0 %1170  ;;  %v1246_v11 = vmul.f32 %v1181_v45, %v1150_v41  ;;  %v2622_v43 = vsel %vm1284_vm0, %v2611_v62, -1e+30 }
 0x334   :  { %v1244_v23 = vmul.f32 %v1171_v5, %v1148_v24  ;;  %v2616_v7 = vsel %vm1284_vm0, %v2608_v3, -1e+30 }
 0x335   :  { %1301 = vmax.xlane.f32.xlu0 %v2616_v7  ;;  %v2633_v58 = vadd.f32 %v2604_v50, %v1246_v11 }
 0x336   :  { %v1191_v52 = vpop.permute.xlu1 %1190  ;;  %v2625_v60 = vadd.f32 %v2604_v50, %v1244_v23 }
 0x337   :  { %v1248_v1 = vmul.f32 %v1191_v52, %v1152_v51  ;;  %v1186_v25 = vpop.permute.xlu0 %1185  ;;  %v2646_v56 = vsel %vm1284_vm0, %v2633_v58, -1e+30 }
 0x338   :  { %v1247_v0 = vmul.f32 %v1186_v25, %v1151_v48  ;;  %v2630_v39 = vsel %vm1284_vm0, %v2625_v60, -1e+30 }
 0x339   :  { %1305 = vmax.xlane.f32.xlu0 %v2622_v43  ;;  %1303 = vmax.xlane.f32.xlu1 %v2630_v39  ;;  %v2641_v21 = vadd.f32 %v2604_v50, %v1248_v1 }
 0x33a   :  { %v1201_v40 = vpop.permute.xlu1 %1200  ;;  %v2638_v19 = vadd.f32 %v2604_v50, %v1247_v0 }
 0x33b   :  { %v1196_v27 = vpop.permute.xlu0 %1195  ;;  %v1250_v46 = vmul.f32 %v1201_v40, %v1154_v9  ;;  %v2661_v17 = vsel %vm1284_vm0, %v2641_v21, -1e+30 }
 0x33c   :  { %v1249_v55 = vmul.f32 %v1196_v27, %v1153_v22  ;;  %v2651_v29 = vsel %vm1284_vm0, %v2638_v19, -1e+30 }
 0x33d   :  { %1307 = vmax.xlane.f32.xlu0 %v2646_v56  ;;  %1309 = vmax.xlane.f32.xlu1 %v2651_v29  ;;  %v2669_v61 = vadd.f32 %v2604_v50, %v1250_v46 }
 0x33e   :  { %v1211_v42 = vpop.permute.xlu1 %1210  ;;  %v2656_v34 = vadd.f32 %v2604_v50, %v1249_v55 }
 0x33f   :  { %v1206_v63 = vpop.permute.xlu0 %1205  ;;  %v1252_v14 = vmul.f32 %v1211_v42, %v1156_v31  ;;  %v2679_v44 = vsel %vm1284_vm0, %v2669_v61, -1e+30 }
 0x340   :  { %v1251_v8 = vmul.f32 %v1206_v63, %v1155_v38  ;;  %v2666_v12 = vsel %vm1284_vm0, %v2656_v34, -1e+30 }
 0x341   :  { %1311 = vmax.xlane.f32.xlu0 %v2661_v17  ;;  %1313 = vmax.xlane.f32.xlu1 %v2666_v12  ;;  %v2687_v32 = vadd.f32 %v2604_v50, %v1252_v14 }
 0x342   :  { %v1221_v59 = vpop.permute.xlu1 %1220  ;;  %v2674_v53 = vadd.f32 %v2604_v50, %v1251_v8 }
 0x343   :  { %v1254_v26 = vmul.f32 %v1221_v59, %v1158_v16  ;;  %v1216_v15 = vpop.permute.xlu0 %1215  ;;  %v2700_v54 = vsel %vm1284_vm0, %v2687_v32, -1e+30 }
 0x344   :  { %v1253_v57 = vmul.f32 %v1216_v15, %v1157_v30  ;;  %v2684_v2 = vsel %vm1284_vm0, %v2674_v53, -1e+30 }
 0x345   :  { %1315 = vmax.xlane.f32.xlu0 %v2679_v44  ;;  %1317 = vmax.xlane.f32.xlu1 %v2684_v2  ;;  %v2695_v10 = vadd.f32 %v2604_v50, %v1254_v26 }
 0x346   :  { %v1231_v6 = vpop.permute.xlu1 %1230  ;;  %v2692_v20 = vadd.f32 %v2604_v50, %v1253_v57 }
 0x347   :  { %v1226_v36 = vpop.permute.xlu0 %1225  ;;  %v1256_v47 = vmul.f32 %v1231_v6, %v1160_v13  ;;  %v2715_v45 = vsel %vm1284_vm0, %v2695_v10, -1e+30 }
 0x348   :  { %v1255_v37 = vmul.f32 %v1226_v36, %v1159_v33  ;;  %v2705_v49 = vsel %vm1284_vm0, %v2692_v20, -1e+30 }
 0x349   :  { %1319 = vmax.xlane.f32.xlu0 %v2700_v54  ;;  %1321 = vmax.xlane.f32.xlu1 %v2705_v49  ;;  %v2723_v51 = vadd.f32 %v2604_v50, %v1256_v47 }
 0x34a   :  { %v1241_v18 = vpop.permute.xlu1 %1240  ;;  %v2710_v41 = vadd.f32 %v2604_v50, %v1255_v37 }
 0x34b   :  { %v1236_v24 = vpop.permute.xlu0 %1235  ;;  %v1258_v5 = vmul.f32 %v1241_v18, %v1162_v28  ;;  %v2733_v52 = vsel %vm1284_vm0, %v2723_v51, -1e+30 }
 0x34c   :  { %v1257_v11 = vmul.f32 %v1236_v24, %v1161_v35  ;;  %v2720_v23 = vsel %vm1284_vm0, %v2710_v41, -1e+30 }
 0x34d   :  { %1323 = vmax.xlane.f32.xlu0 %v2715_v45  ;;  %1325 = vmax.xlane.f32.xlu1 %v2720_v23  ;;  %v2741_v25 = vadd.f32 %v2604_v50, %v1258_v5 }
 0x34e   :  { %v2728_v48 = vadd.f32 %v2604_v50, %v1257_v11 }
 0x34f   :  { %v2748_v0 = vsel %vm1284_vm0, %v2741_v25, -1e+30 }
 0x350   :  { %v2738_v1 = vsel %vm1284_vm0, %v2728_v48, -1e+30 }
 0x351   :  { %1327 = vmax.xlane.f32.xlu0 %v2733_v52  ;;  %1329 = vmax.xlane.f32.xlu1 %v2738_v1 }
 0x355   :  { %1331 = vmax.xlane.f32.xlu0 %v2748_v0 }
 0x3c2   :  { %v2751_v9 = vpop.xlane.xlu0 %1301 }
 0x3c3   :  { %v1333_v22 = vsub.f32 %v2616_v7, %v2751_v9 }
 0x3c5   :  { %v1349_v40 = vmul.f32 1.442695, %v1333_v22 }
 0x3c6   :  { %v2755_v27 = vpop.xlane.xlu1 %1303  ;;  %v2757_v50 = vpop.xlane.xlu0 %1305 }
 0x3c7   :  { %1772 = vpow2.f32 %v1349_v40  ;;  %v1334_v46 = vsub.f32 %v2630_v39, %v2755_v27  ;;  %v1335_v55 = vsub.f32 %v2622_v43, %v2757_v50 }
 0x3c9   :  { %v1351_v31 = vmul.f32 1.442695, %v1334_v46  ;;  %v1353_v38 = vmul.f32 1.442695, %v1335_v55 }
 0x3ca   :  { %v2763_v42 = vpop.xlane.xlu1 %1309  ;;  %v2765_v63 = vpop.xlane.xlu0 %1307 }
 0x3cb   :  { %1774 = vpow2.f32 %v1351_v31  ;;  %v1337_v7 = vsub.f32 %v2651_v29, %v2763_v42  ;;  %v1336_v14 = vsub.f32 %v2646_v56, %v2765_v63 }
 0x3cc   :  { %1776 = vpow2.f32 %v1353_v38 }
 0x3cd   :  { %v1357_v8 = vmul.f32 1.442695, %v1337_v7  ;;  %v1355_v16 = vmul.f32 1.442695, %v1336_v14 }
 0x3ce   :  { %v2771_v39 = vpop.xlane.xlu1 %1313  ;;  %v2773_v30 = vpop.xlane.xlu0 %1311 }
 0x3cf   :  { %1778 = vpow2.f32 %v1357_v8  ;;  %v1339_v43 = vsub.f32 %v2666_v12, %v2771_v39  ;;  %v1338_v59 = vsub.f32 %v2661_v17, %v2773_v30 }
 0x3d0   :  { %1780 = vpow2.f32 %v1355_v16 }
 0x3d1   :  { %v1773_v26 = vpop.eup %1772  ;;  %v1361_v29 = vmul.f32 1.442695, %v1339_v43  ;;  %v1359_v15 = vmul.f32 1.442695, %v1338_v59 }
 0x3d2   :  { %v2779_v57 = vpop.xlane.xlu1 %1317  ;;  %v2781_v56 = vpop.xlane.xlu0 %1315  ;;  %v1381_v13 = vsel %vm1284_vm0, %v1773_v26, 0.0 }
 0x3d3   :  { %1782 = vpow2.f32 %v1361_v29  ;;  %v1341_v33 = vsub.f32 %v2684_v2, %v2779_v57  ;;  %v1340_v12 = vsub.f32 %v2679_v44, %v2781_v56  ;;  %1397 = vadd.xlane.f32.xlu1 %v1381_v13 }
 0x3d4   :  { %1784 = vpow2.f32 %v1359_v15 }
 0x3d5   :  { %v1775_v17 = vpop.eup %1774  ;;  %v1365_v6 = vmul.f32 1.442695, %v1341_v33  ;;  %v1363_v36 = vmul.f32 1.442695, %v1340_v12 }
 0x3d6   :  { %v1777_v47 = vpop.eup %1776  ;;  %v2789_v37 = vpop.xlane.xlu1 %1321  ;;  %v1382_v35 = vsel %vm1284_vm0, %v1775_v17, 0.0 }
 0x3d7   :  { %v2791_v28 = vpop.xlane.xlu0 %1319  ;;  %1786 = vpow2.f32 %v1365_v6  ;;  %v1343_v2 = vsub.f32 %v2705_v49, %v2789_v37  ;;  %1399 = vadd.xlane.f32.xlu0 %v1382_v35  ;;  %v1383_v18 = vsel %vm1284_vm0, %v1777_v47, 0.0 }
 0x3d8   :  { %v1342_v44 = vsub.f32 %v2700_v54, %v2791_v28  ;;  %1788 = vpow2.f32 %v1363_v36  ;;  %1401 = vadd.xlane.f32.xlu1 %v1383_v18 }
 0x3d9   :  { %v1779_v24 = vpop.eup %1778  ;;  %v1369_v5 = vmul.f32 1.442695, %v1343_v2 }
 0x3da   :  { %v1367_v11 = vmul.f32 1.442695, %v1342_v44  ;;  %v1781_v22 = vpop.eup %1780  ;;  %v2801_v40 = vpop.xlane.xlu1 %1325  ;;  %v1385_v49 = vsel %vm1284_vm0, %v1779_v24, 0.0 }
 0x3db   :  { %v2803_v46 = vpop.xlane.xlu0 %1323  ;;  %1790 = vpow2.f32 %v1369_v5  ;;  %v1345_v54 = vsub.f32 %v2720_v23, %v2801_v40  ;;  %v1384_v31 = vsel %vm1284_vm0, %v1781_v22, 0.0 }
 0x3dc   :  { %v1344_v55 = vsub.f32 %v2715_v45, %v2803_v46  ;;  %1792 = vpow2.f32 %v1367_v11  ;;  %1405 = vadd.xlane.f32.xlu1 %v1385_v49  ;;  %1403 = vadd.xlane.f32.xlu0 %v1384_v31 }
 0x3dd   :  { %v1783_v38 = vpop.eup %1782  ;;  %v1373_v7 = vmul.f32 1.442695, %v1345_v54 }
 0x3de   :  { %v1371_v14 = vmul.f32 1.442695, %v1344_v55  ;;  %v1785_v8 = vpop.eup %1784  ;;  %v2813_v16 = vpop.xlane.xlu1 %1329  ;;  %v1387_v23 = vsel %vm1284_vm0, %v1783_v38, 0.0 }
 0x3df   :  { %v2815_v43 = vpop.xlane.xlu0 %1327  ;;  %1794 = vpow2.f32 %v1373_v7  ;;  %v1347_v45 = vsub.f32 %v2738_v1, %v2813_v16  ;;  %v1386_v26 = vsel %vm1284_vm0, %v1785_v8, 0.0 }
 0x3e0   :  { %v1346_v59 = vsub.f32 %v2733_v52, %v2815_v43  ;;  %1796 = vpow2.f32 %v1371_v14  ;;  %1409 = vadd.xlane.f32.xlu1 %v1387_v23  ;;  %1407 = vadd.xlane.f32.xlu0 %v1386_v26 }
 0x3e1   :  { %v1787_v29 = vpop.eup %1786  ;;  %v1377_v15 = vmul.f32 1.442695, %v1347_v45 }
 0x3e2   :  { %v1375_v13 = vmul.f32 1.442695, %v1346_v59  ;;  %v1789_v33 = vpop.eup %1788  ;;  %v1389_v17 = vsel %vm1284_vm0, %v1787_v29, 0.0 }
 0x3e3   :  { %v2825_v12 = vpop.xlane.xlu0 %1331  ;;  %1798 = vpow2.f32 %v1377_v15  ;;  %v1388_v52 = vsel %vm1284_vm0, %v1789_v33, 0.0 }
 0x3e4   :  { %v1348_v1 = vsub.f32 %v2748_v0, %v2825_v12  ;;  %1800 = vpow2.f32 %v1375_v13  ;;  %1413 = vadd.xlane.f32.xlu1 %v1389_v17  ;;  %1411 = vadd.xlane.f32.xlu0 %v1388_v52 }
 0x3e5   :  { %v1791_v6 = vpop.eup %1790 }
 0x3e6   :  { %v1379_v36 = vmul.f32 1.442695, %v1348_v1  ;;  %v1793_v47 = vpop.eup %1792  ;;  %v1391_v35 = vsel %vm1284_vm0, %v1791_v6, 0.0 }
 0x3e7   :  { %v1390_v2 = vsel %vm1284_vm0, %v1793_v47, 0.0 }
 0x3e8   :  { %1802 = vpow2.f32 %v1379_v36  ;;  %1417 = vadd.xlane.f32.xlu1 %v1391_v35  ;;  %1415 = vadd.xlane.f32.xlu0 %v1390_v2 }
 0x3e9   :  { %v1795_v44 = vpop.eup %1794 }
 0x3ea   :  { %v1797_v0 = vpop.eup %1796  ;;  %v1393_v18 = vsel %vm1284_vm0, %v1795_v44, 0.0 }
 0x3eb   :  { %v1392_v24 = vsel %vm1284_vm0, %v1797_v0, 0.0 }
 0x3ec   :  { %1421 = vadd.xlane.f32.xlu1 %v1393_v18  ;;  %1419 = vadd.xlane.f32.xlu0 %v1392_v24 }
 0x3ed   :  { %v1799_v5 = vpop.eup %1798 }
 0x3ee   :  { %v1801_v11 = vpop.eup %1800  ;;  %v1395_v22 = vsel %vm1284_vm0, %v1799_v5, 0.0 }
 0x3ef   :  { %v1394_v49 = vsel %vm1284_vm0, %v1801_v11, 0.0 }
 0x3f0   :  { %1425 = vadd.xlane.f32.xlu1 %v1395_v22  ;;  %1423 = vadd.xlane.f32.xlu0 %v1394_v49 }
 0x3f2   :  { %v1803_v54 = vpop.eup %1802 }
 0x3f3   :  { %v1396_v55 = vsel %vm1284_vm0, %v1803_v54, 0.0 }
 0x3f4   :  { %1427 = vadd.xlane.f32.xlu0 %v1396_v55 }
 0x460   :  { %v1398_v31 = vpop.xlane.xlu1 %1397 }
 0x461   :  { %1804 = vlog2.f32 %v1398_v31 }
 0x464   :  { %v1400_v38 = vpop.xlane.xlu0 %1399 }
 0x465   :  { %v1402_v7 = vpop.xlane.xlu1 %1401  ;;  %1806 = vlog2.f32 %v1400_v38 }
 0x466   :  { %1808 = vlog2.f32 %v1402_v7 }
 0x469   :  { %v1406_v14 = vpop.xlane.xlu1 %1405  ;;  %v1404_v8 = vpop.xlane.xlu0 %1403 }
 0x46a   :  { %1810 = vlog2.f32 %v1406_v14 }
 0x46b   :  { %v1805_v23 = vpop.eup %1804  ;;  %1812 = vlog2.f32 %v1404_v8 }
 0x46c   :  { %v1430_v45 = vmul.f32 0.6931472, %v1805_v23 }
 0x46d   :  { %v1410_v59 = vpop.xlane.xlu1 %1409  ;;  %v1408_v26 = vpop.xlane.xlu0 %1407 }
 0x46e   :  { %v1461_v29 = vadd.f32 %v1430_v45, %v2751_v9  ;;  %1814 = vlog2.f32 %v1410_v59 }
 0x46f   :  { %v1807_v4 = vpop.eup %1806  ;;  %1816 = vlog2.f32 %v1408_v26 }
 0x470   :  { %v1809_v15 = vpop.eup %1808  ;;  %v1477_v13 = vsub.f32 %v2608_v3, %v1461_v29  ;;  %v1432_v33 = vmul.f32 0.6931472, %v1807_v4 }
 0x471   :  { %v1434_v17 = vmul.f32 0.6931472, %v1809_v15  ;;  %v1414_v1 = vpop.xlane.xlu1 %1413  ;;  %v1412_v52 = vpop.xlane.xlu0 %1411 }
 0x472   :  { %1493 = vst [vmem:[%s2933_s6] sm:$0xff] %v1477_v13  ;;  %v1462_v6 = vadd.f32 %v1432_v33, %v2755_v27  ;;  %1818 = vlog2.f32 %v1414_v1 }
 0x473   :  { %v1463_v36 = vadd.f32 %v1434_v17, %v2757_v50  ;;  %1820 = vlog2.f32 %v1412_v52 }
 0x474   :  { %v1811_v9 = vpop.eup %1810  ;;  %v1478_v47 = vsub.f32 %v2625_v60, %v1462_v6 }
 0x475   :  { %v1813_v35 = vpop.eup %1812  ;;  %v1479_v3 = vsub.f32 %v2611_v62, %v1463_v36  ;;  %v1438_v2 = vmul.f32 0.6931472, %v1811_v9  ;;  %v1418_v44 = vpop.xlane.xlu1 %1417 }
 0x476   :  { %v1416_v0 = vpop.xlane.xlu0 %1415  ;;  %1494 = vst [vmem:[%s2933_s6 + $0x8] sm:$0xff] %v1478_v47  ;;  %v1436_v18 = vmul.f32 0.6931472, %v1813_v35  ;;  %1822 = vlog2.f32 %v1418_v44 }
 0x477   :  { %1495 = vst [vmem:[%s2933_s6 + $0x10] sm:$0xff] %v1479_v3  ;;  %v1465_v27 = vadd.f32 %v1438_v2, %v2763_v42  ;;  %1824 = vlog2.f32 %v1416_v0 }
 0x478   :  { %v1815_v60 = vpop.eup %1814  ;;  %v1464_v50 = vadd.f32 %v1436_v18, %v2765_v63 }
 0x479   :  { %v1817_v62 = vpop.eup %1816  ;;  %v1481_v24 = vsub.f32 %v2638_v19, %v1465_v27  ;;  %v1442_v5 = vmul.f32 0.6931472, %v1815_v60  ;;  %v1422_v11 = vpop.xlane.xlu1 %1421 }
 0x47a   :  { %v1420_v22 = vpop.xlane.xlu0 %1419  ;;  %v1480_v49 = vsub.f32 %v2633_v58, %v1464_v50  ;;  %v1440_v54 = vmul.f32 0.6931472, %v1817_v62  ;;  %1826 = vlog2.f32 %v1422_v11 }
 0x47b   :  { %1497 = vst [vmem:[%s2933_s6 + $0x20] sm:$0xff] %v1481_v24  ;;  %v1467_v42 = vadd.f32 %v1442_v5, %v2771_v39  ;;  %1828 = vlog2.f32 %v1420_v22 }
 0x47c   :  { %v1819_v55 = vpop.eup %1818  ;;  %1496 = vst [vmem:[%s2933_s6 + $0x18] sm:$0xff] %v1480_v49  ;;  %v1466_v19 = vadd.f32 %v1440_v54, %v2773_v30 }
 0x47d   :  { %v1821_v63 = vpop.eup %1820  ;;  %v1483_v31 = vsub.f32 %v2656_v34, %v1467_v42  ;;  %v1446_v58 = vmul.f32 0.6931472, %v1819_v55  ;;  %v1426_v38 = vpop.xlane.xlu1 %1425 }
 0x47e   :  { %v1424_v7 = vpop.xlane.xlu0 %1423  ;;  %v1482_v14 = vsub.f32 %v2641_v21, %v1466_v19  ;;  %v1444_v8 = vmul.f32 0.6931472, %v1821_v63  ;;  %1830 = vlog2.f32 %v1426_v38 }
 0x47f   :  { %1499 = vst [vmem:[%s2933_s6 + $0x30] sm:$0xff] %v1483_v31  ;;  %v1469_v39 = vadd.f32 %v1446_v58, %v2779_v57  ;;  %1832 = vlog2.f32 %v1424_v7 }
 0x480   :  { %v1823_v23 = vpop.eup %1822  ;;  %1498 = vst [vmem:[%s2933_s6 + $0x28] sm:$0xff] %v1482_v14  ;;  %v1468_v34 = vadd.f32 %v1444_v8, %v2781_v56 }
 0x481   :  { %v1825_v30 = vpop.eup %1824  ;;  %v1485_v45 = vsub.f32 %v2674_v53, %v1469_v39  ;;  %v1450_v21 = vmul.f32 0.6931472, %v1823_v23 }
 0x482   :  { %v1428_v59 = vpop.xlane.xlu0 %1427  ;;  %v1484_v26 = vsub.f32 %v2669_v61, %v1468_v34  ;;  %v1448_v29 = vmul.f32 0.6931472, %v1825_v30 }
 0x483   :  { %1834 = vlog2.f32 %v1428_v59  ;;  %1501 = vst [vmem:[%s2933_s6 + $0x40] sm:$0xff] %v1485_v45  ;;  %v1471_v57 = vadd.f32 %v1450_v21, %v2789_v37 }
 0x484   :  { %v1827_v4 = vpop.eup %1826  ;;  %1500 = vst [vmem:[%s2933_s6 + $0x38] sm:$0xff] %v1484_v26  ;;  %v1470_v56 = vadd.f32 %v1448_v29, %v2791_v28 }
 0x485   :  { %v1829_v53 = vpop.eup %1828  ;;  %v1487_v15 = vsub.f32 %v2692_v20, %v1471_v57  ;;  %v1454_v13 = vmul.f32 0.6931472, %v1827_v4 }
 0x486   :  { %v1486_v61 = vsub.f32 %v2687_v32, %v1470_v56  ;;  %v1452_v33 = vmul.f32 0.6931472, %v1829_v53 }
 0x487   :  { %1503 = vst [vmem:[%s2933_s6 + $0x50] sm:$0xff] %v1487_v15  ;;  %v1473_v37 = vadd.f32 %v1454_v13, %v2801_v40 }
 0x488   :  { %v1831_v17 = vpop.eup %1830  ;;  %1502 = vst [vmem:[%s2933_s6 + $0x48] sm:$0xff] %v1486_v61  ;;  %v1472_v28 = vadd.f32 %v1452_v33, %v2803_v46 }
 0x489   :  { %v1833_v1 = vpop.eup %1832  ;;  %v1489_v20 = vsub.f32 %v2710_v41, %v1473_v37  ;;  %v1458_v52 = vmul.f32 0.6931472, %v1831_v17 }
 0x48a   :  { %v1488_v32 = vsub.f32 %v2695_v10, %v1472_v28  ;;  %v1456_v6 = vmul.f32 0.6931472, %v1833_v1 }
 0x48b   :  { %1505 = vst [vmem:[%s2933_s6 + $0x60] sm:$0xff] %v1489_v20  ;;  %v1475_v40 = vadd.f32 %v1458_v52, %v2813_v16 }
 0x48c   :  { %1504 = vst [vmem:[%s2933_s6 + $0x58] sm:$0xff] %v1488_v32  ;;  %v1474_v46 = vadd.f32 %v1456_v6, %v2815_v43 }
 0x48d   :  { %v1835_v36 = vpop.eup %1834  ;;  %v1491_v9 = vsub.f32 %v2728_v48, %v1475_v40 }
 0x48e   :  { %v1460_v41 = vmul.f32 0.6931472, %v1835_v36  ;;  %v1490_v47 = vsub.f32 %v2723_v51, %v1474_v46 }
 0x48f   :  { %1507 = vst [vmem:[%s2933_s6 + $0x70] sm:$0xff] %v1491_v9 }
 0x490   :  { %v1476_v10 = vadd.f32 %v1460_v41, %v2825_v12  ;;  %1506 = vst [vmem:[%s2933_s6 + $0x68] sm:$0xff] %v1490_v47 }
 0x492   :  { %v1492_v16 = vsub.f32 %v2741_v25, %v1476_v10 }
 0x494   :  { %1508 = vst [vmem:[%s2933_s6 + $0x78] sm:$0xff] %v1492_v16 }

</bundles_post_ra>
